<compile_context>
chip_gen: v7x
topology: tpu7x:2x2x1
jax: 0.10.0
libtpu: 0.0.40
codegen_flags: <defaults>
</compile_context>

<pallas_src>
import functools

import jax
import jax.numpy as jnp
from jax import lax
from jax.experimental import pallas as pl
from jax.experimental.pallas import tpu as pltpu


_LANE = 128     # lane quantum (last dim)
_SUBLANE = 8    # sublane quantum (second-to-last dim, f32)


def _round_up(x, m):
    return ((x + m - 1) // m) * m


def _vmem_capacity_bytes():
    """Per-core VMEM capacity (128 MiB v5e/v6e, 64 MiB v7x); safe fallback."""
    try:
        info = pltpu.get_tpu_info()
        for name in ("vmem_capacity_bytes", "vmem_bytes", "vmem_size_bytes"):
            v = getattr(info, name, None)
            if v:
                return int(v)
    except Exception:
        pass
    return 64 * 1024 * 1024


def _pick_t_tile(T, B, H, x_bytes=2, y_bytes=4):
    """Largest time chunk whose VMEM working set fits the hardware budget."""
    cap = _vmem_capacity_bytes()
    budget = cap - 8 * 1024 * 1024            # headroom for compiler temporaries
    # Loop-invariant footprint (auto-pipeliner double-buffers every operand).
    weights = 2 * (H * 4 * H * 2) * 2          # W_ih^T, W_hh^T bf16, 2 buffers
    bias = (4 * H * 4) * 2
    states = 4 * (B * H * 4) * 2               # h0, c0, hf, cf, 2 buffers
    scratch = 2 * (B * H * 4)                  # carried h/c scratch
    fixed = weights + bias + states + scratch
    # Per-time-step footprint: x block (2 bufs), y block (2 bufs), gx scratch
    # plus one GEMM-result temporary (both f32).
    per_t = (B * H * x_bytes) * 2 + (B * H * y_bytes) * 2 + 2 * (B * 4 * H * 4)
    avail = max(budget - fixed, per_t * 8)
    t_tile = min(T, max(avail // per_t, 8), 256)
    if t_tile < T:
        t_tile = max((t_tile // 8) * 8, 8)
    return int(t_tile), int(cap)


def _reorder_pad_weight(w, H, H_pad):
    """PyTorch (4H, H) [i,f,g,o] -> (H_pad, 4H_pad) transposed, order [i,f,o,g]."""
    i, f, g, o = jnp.split(w, 4, axis=0)
    blocks = [i, f, o, g]
    if H_pad != H:
        pad = ((0, H_pad - H), (0, H_pad - H))
        blocks = [jnp.pad(b, pad) for b in blocks]
    return jnp.concatenate(blocks, axis=0).T.astype(jnp.bfloat16)


def _reorder_pad_bias(b, H, H_pad):
    i, f, g, o = jnp.split(b, 4)
    blocks = [i, f, o, g]
    if H_pad != H:
        blocks = [jnp.pad(v, (0, H_pad - H)) for v in blocks]
    return jnp.concatenate(blocks).reshape(1, 4 * H_pad).astype(jnp.float32)


def _lstm_layer_kernel(x_ref, wih_ref, whh_ref, b_ref, h0_ref, c0_ref,
                       y_ref, hf_ref, cf_ref,
                       h_sc, c_sc, gx_sc,
                       *, hidden, batch, t_tile, seq_len):
    """One LSTM layer.  Grid axis 0 iterates time chunks (sequential recurrence).

    x_ref   : (t_tile*B, H) bf16  flattened input chunk (time-major)
    wih_ref : (H, 4H)       bf16  W_ih^T, gate order [i, f, o, g]
    whh_ref : (H, 4H)       bf16  W_hh^T, gate order [i, f, o, g]
    b_ref   : (1, 4H)       f32   b_ih + b_hh
    h0/c0   : (B, H)        f32   initial hidden / cell state
    y_ref   : (t_tile, B, H)      output chunk (time-major)
    hf/cf   : (B, H)        f32   final hidden / cell state
    h_sc/c_sc : (B, H)      f32   state carried across chunks
    gx_sc   : (t_tile, B, 4H) f32 hoisted input projection for this chunk
    """
    chunk = pl.program_id(0)
    n_chunks = pl.num_programs(0)

    @pl.when(chunk == 0)
    def _():
        h_sc[...] = h0_ref[...].astype(jnp.float32)
        c_sc[...] = c0_ref[...].astype(jnp.float32)

    # Hoisted input projection: one (t_tile*B, H) x (H, 4H) GEMM per chunk.
    gx = (jnp.dot(x_ref[...], wih_ref[...], preferred_element_type=jnp.float32)
          + b_ref[...])
    gx_sc[...] = gx.reshape(t_tile, batch, 4 * hidden)

    # Loop-invariant recurrent weight (ref-backed; see TODO about extra copy).
    whh = whh_ref[...]

    def make_step(mask_tail):
        def step(t, carry):
            h, c = carry  # (B, H) float32
            gates = gx_sc[t] + jnp.dot(h.astype(jnp.bfloat16), whh,
                                       preferred_element_type=jnp.float32)
            # Gate order [i, f, o, g]: one sigmoid over the contiguous 3H block.
            ifo = jax.nn.sigmoid(gates[:, :3 * hidden])
            i_g = ifo[:, 0 * hidden:1 * hidden]
            f_g = ifo[:, 1 * hidden:2 * hidden]
            o_g = ifo[:, 2 * hidden:3 * hidden]
            g_g = jnp.tanh(gates[:, 3 * hidden:])
            c_new = f_g * c + i_g * g_g
            h_new = o_g * jnp.tanh(c_new)
            if mask_tail:
                # Freeze the carried state on padded time steps past seq_len.
                valid = (chunk * t_tile + t) < seq_len
                h_new = jnp.where(valid, h_new, h)
                c_new = jnp.where(valid, c_new, c)
            y_ref[t] = h_new.astype(y_ref.dtype)
            return (h_new, c_new)
        return step

    unroll = min(t_tile, 8)

    def run(mask_tail):
        h, c = lax.fori_loop(0, t_tile, make_step(mask_tail),
                             (h_sc[...], c_sc[...]), unroll=unroll)
        h_sc[...] = h
        c_sc[...] = c

    if seq_len % t_tile != 0:
        # Only the last chunk contains padded steps; keep the per-step selects
        # off the steady-state critical path.
        @pl.when(chunk == n_chunks - 1)
        def _():
            run(True)

        @pl.when(chunk != n_chunks - 1)
        def _():
            run(False)
    else:
        run(False)

    # Constant output index map => only the last chunk's value reaches HBM.
    @pl.when(chunk == n_chunks - 1)
    def _():
        hf_ref[...] = h_sc[...].astype(hf_ref.dtype)
        cf_ref[...] = c_sc[...].astype(cf_ref.dtype)


def _lstm_layer(x2d, wih_t, whh_t, bias, h0, c0, *,
                t_tile, seq_len, out_dtype, vmem_limit):
    """x2d: (T_pad*B, H) bf16, time-major flattened.  Pre-padded shapes.

    Returns (y (T_pad, B, H) out_dtype, h_final (B, H) f32, c_final (B, H) f32).
    """
    TB, H = x2d.shape
    B = h0.shape[0]
    T_pad = TB // B
    n_chunks = T_pad // t_tile

    kernel = functools.partial(_lstm_layer_kernel, hidden=H, batch=B,
                               t_tile=t_tile, seq_len=seq_len)

    grid_spec = pltpu.PrefetchScalarGridSpec(
        num_scalar_prefetch=0,
        grid=(n_chunks,),
        in_specs=[
            pl.BlockSpec((t_tile * B, H), lambda c: (c, 0)),     # x chunk
            pl.BlockSpec((H, 4 * H), lambda c: (0, 0)),          # W_ih^T
            pl.BlockSpec((H, 4 * H), lambda c: (0, 0)),          # W_hh^T
            pl.BlockSpec((1, 4 * H), lambda c: (0, 0)),          # bias
            pl.BlockSpec((B, H), lambda c: (0, 0)),              # h0
            pl.BlockSpec((B, H), lambda c: (0, 0)),              # c0
        ],
        out_specs=[
            pl.BlockSpec((t_tile, B, H), lambda c: (c, 0, 0)),   # y chunk
            pl.BlockSpec((B, H), lambda c: (0, 0)),              # h_final
            pl.BlockSpec((B, H), lambda c: (0, 0)),              # c_final
        ],
        scratch_shapes=[
            pltpu.VMEM((B, H), jnp.float32),                     # carried h
            pltpu.VMEM((B, H), jnp.float32),                     # carried c
            pltpu.VMEM((t_tile, B, 4 * H), jnp.float32),         # gates_x chunk
        ],
    )

    y, hf, cf = pl.pallas_call(
        kernel,
        out_shape=(
            jax.ShapeDtypeStruct((T_pad, B, H), out_dtype),
            jax.ShapeDtypeStruct((B, H), jnp.float32),
            jax.ShapeDtypeStruct((B, H), jnp.float32),
        ),
        grid_spec=grid_spec,
        compiler_params=pltpu.CompilerParams(
            dimension_semantics=("arbitrary",),    # sequential recurrence
            vmem_limit_bytes=vmem_limit),
    )(x2d, wih_t, whh_t, bias, h0, c0)
    return y, hf, cf


def init_encoder_params(key, num_layers, hidden_size, dtype=jnp.float32):
    """PyTorch nn.LSTM parameter shapes: w_ih (4H, in), w_hh (4H, H), b (4H,)."""
    H = hidden_size
    k = 1.0 / float(H) ** 0.5
    params = []
    for _ in range(num_layers):
        key, k1, k2, k3, k4 = jax.random.split(key, 5)
        params.append({
            "w_ih": jax.random.uniform(k1, (4 * H, H), dtype, -k, k),
            "w_hh": jax.random.uniform(k2, (4 * H, H), dtype, -k, k),
            "b_ih": jax.random.uniform(k3, (4 * H,), dtype, -k, k),
            "b_hh": jax.random.uniform(k4, (4 * H,), dtype, -k, k),
        })
    return params


@jax.jit
def encoder_forward(params, input_sequence, hidden_state, hidden_cell):
    """Mirrors Encoder.forward.

    input_sequence: (B, T, H) batch_first; hidden_state/cell: (num_layers, B, H).
    Returns (output, (hidden_state, hidden_cell)).
    """
    B, T, H = input_sequence.shape
    out_dtype = input_sequence.dtype

    # Hardware-friendly padding: lanes (H -> mult of 128), sublanes (B -> mult
    # of 8).  Padded columns/rows are exactly zero and stay zero / independent.
    H_pad = _round_up(H, _LANE)
    B_pad = _round_up(max(B, _SUBLANE), _SUBLANE)

    t_tile, vmem_cap = _pick_t_tile(T, B_pad, H_pad)
    n_chunks = pl.cdiv(T, t_tile)
    T_pad = n_chunks * t_tile

    # Time-major exactly once for the whole layer stack; layers exchange data
    # time-major (and bf16) between pallas_calls.
    x = jnp.transpose(input_sequence, (1, 0, 2))                   # (T, B, H)
    x = jnp.pad(x, ((0, T_pad - T), (0, B_pad - B), (0, H_pad - H)))
    x2d = x.reshape(T_pad * B_pad, H_pad).astype(jnp.bfloat16)     # contiguous

    h0 = jnp.pad(hidden_state.astype(jnp.float32),
                 ((0, 0), (0, B_pad - B), (0, H_pad - H)))
    c0 = jnp.pad(hidden_cell.astype(jnp.float32),
                 ((0, 0), (0, B_pad - B), (0, H_pad - H)))

    num_layers = len(params)
    h_finals, c_finals = [], []
    y = None
    for layer, p in enumerate(params):
        wih_t = _reorder_pad_weight(p["w_ih"], H, H_pad)
        whh_t = _reorder_pad_weight(p["w_hh"], H, H_pad)
        b = _reorder_pad_bias(p["b_ih"] + p["b_hh"], H, H_pad)
        last = layer == num_layers - 1
        y, hf, cf = _lstm_layer(
            x2d, wih_t, whh_t, b, h0[layer], c0[layer],
            t_tile=t_tile, seq_len=T,
            out_dtype=(out_dtype if last else jnp.bfloat16),
            vmem_limit=vmem_cap)
        h_finals.append(hf)
        c_finals.append(cf)
        if not last:
            x2d = y.reshape(T_pad * B_pad, H_pad)   # already bf16, contiguous

    output = jnp.transpose(y[:T, :B, :H], (1, 0, 2)).astype(out_dtype)
    h_n = jnp.stack(h_finals)[:, :B, :H].astype(out_dtype)
    c_n = jnp.stack(c_finals)[:, :B, :H].astype(out_dtype)
    return output, (h_n, c_n)


# ----------------------- pure-JAX reference (for checking) ------------------
def _reference_forward(params, input_sequence, hidden_state, hidden_cell,
                       matmul_dtype=jnp.float32):
    """Plain lax.scan LSTM in PyTorch gate order; matmul operands cast to
    `matmul_dtype` with f32 accumulation (to mirror the kernel's numerics)."""
    x = jnp.transpose(input_sequence, (1, 0, 2)).astype(jnp.float32)  # (T,B,H)
    h_finals, c_finals = [], []
    for layer, p in enumerate(params):
        w_ih_t = p["w_ih"].T.astype(matmul_dtype)
        w_hh_t = p["w_hh"].T.astype(matmul_dtype)
        bias = (p["b_ih"] + p["b_hh"]).astype(jnp.float32)
        H = x.shape[-1]

        def step(carry, x_t):
            h, c = carry
            gates = (jnp.dot(x_t.astype(matmul_dtype), w_ih_t,
                             preferred_element_type=jnp.float32)
                     + jnp.dot(h.astype(matmul_dtype), w_hh_t,
                               preferred_element_type=jnp.float32)
                     + bias)
            i = jax.nn.sigmoid(gates[:, 0 * H:1 * H])
            f = jax.nn.sigmoid(gates[:, 1 * H:2 * H])
            g = jnp.tanh(gates[:, 2 * H:3 * H])
            o = jax.nn.sigmoid(gates[:, 3 * H:4 * H])
            c_new = f * c + i * g
            h_new = o * jnp.tanh(c_new)
            return (h_new, c_new), h_new

        (hf, cf), ys = jax.lax.scan(
            step,
            (hidden_state[layer].astype(jnp.float32),
             hidden_cell[layer].astype(jnp.float32)),
            x)
        x = ys
        h_finals.append(hf)
        c_finals.append(cf)
    return (jnp.transpose(x, (1, 0, 2)),
            (jnp.stack(h_finals), jnp.stack(c_finals)))


if __name__ == "__main__":
    num_layers = 2
    hidden_size = 32
    batch = 2
    seq_len = 8

    key = jax.random.PRNGKey(0)
    key, kp, kx, kh, kc = jax.random.split(key, 5)

    params = init_encoder_params(kp, num_layers, hidden_size)
    input_sequence = jax.random.normal(kx, (batch, seq_len, hidden_size),
                                       jnp.float32)
    hidden_state = jax.random.normal(kh, (num_layers, batch, hidden_size),
                                     jnp.float32)
    hidden_cell = jax.random.normal(kc, (num_layers, batch, hidden_size),
                                    jnp.float32)

    output, (h_n, c_n) = encoder_forward(params, input_sequence,
                                         hidden_state, hidden_cell)
    jax.block_until_ready((output, h_n, c_n))

    assert output.shape == (batch, seq_len, hidden_size)
    assert h_n.shape == (num_layers, batch, hidden_size)
    assert c_n.shape == (num_layers, batch, hidden_size)

    # Tight check vs a reference with matching (bf16-operand) matmul numerics.
    ref_out, (ref_h, ref_c) = _reference_forward(
        params, input_sequence, hidden_state, hidden_cell,
        matmul_dtype=jnp.bfloat16)
    assert jnp.allclose(output, ref_out, atol=1e-3, rtol=1e-3)
    assert jnp.allclose(h_n, ref_h, atol=1e-3, rtol=1e-3)
    assert jnp.allclose(c_n, ref_c, atol=1e-3, rtol=1e-3)

    # Loose sanity check vs a full-float32 reference.
    f32_out, (f32_h, f32_c) = _reference_forward(
        params, input_sequence, hidden_state, hidden_cell,
        matmul_dtype=jnp.float32)
    assert jnp.allclose(output, f32_out, atol=5e-2, rtol=5e-2)
    assert jnp.allclose(h_n, f32_h, atol=5e-2, rtol=5e-2)
    assert jnp.allclose(c_n, f32_c, atol=5e-2, rtol=5e-2)

    print("KERNEL_OK")
</pallas_src>

<mosaic_0001>
module attributes {stable_mosaic.version = 11 : i64} {
  func.func @_lstm_layer_kernel(%arg0: i32, %arg1: memref<64x128xbf16, #tpu.memory_space<vmem>>, %arg2: memref<128x512xbf16, #tpu.memory_space<vmem>>, %arg3: memref<128x512xbf16, #tpu.memory_space<vmem>>, %arg4: memref<1x512xf32, #tpu.memory_space<vmem>>, %arg5: memref<8x128xf32, #tpu.memory_space<vmem>>, %arg6: memref<8x128xf32, #tpu.memory_space<vmem>>, %arg7: memref<8x8x128xbf16, #tpu.memory_space<vmem>>, %arg8: memref<8x128xf32, #tpu.memory_space<vmem>>, %arg9: memref<8x128xf32, #tpu.memory_space<vmem>>, %arg10: memref<8x128xf32, #tpu.memory_space<vmem>>, %arg11: memref<8x128xf32, #tpu.memory_space<vmem>>, %arg12: memref<8x8x512xf32, #tpu.memory_space<vmem>>) attributes {dimension_semantics = [#tpu.dimension_semantics<arbitrary>], iteration_bounds = array<i64: 1>, scalar_prefetch = 0 : i64, scratch_operands = 3 : i64, tpu.core_type = #tpu.core_type<tc>, window_params = [{transform_indices = @transform_0, window_bounds = array<i64: 64, 128>}, {pipeline_mode = #tpu.pipeline_mode<synchronous>, transform_indices = @transform_1, window_bounds = array<i64: 128, 512>}, {pipeline_mode = #tpu.pipeline_mode<synchronous>, transform_indices = @transform_2, window_bounds = array<i64: 128, 512>}, {pipeline_mode = #tpu.pipeline_mode<synchronous>, transform_indices = @transform_3, window_bounds = array<i64: 1, 512>}, {pipeline_mode = #tpu.pipeline_mode<synchronous>, transform_indices = @transform_4, window_bounds = array<i64: 8, 128>}, {pipeline_mode = #tpu.pipeline_mode<synchronous>, transform_indices = @transform_5, window_bounds = array<i64: 8, 128>}, {transform_indices = @transform_6, window_bounds = array<i64: 8, 8, 128>}, {pipeline_mode = #tpu.pipeline_mode<synchronous>, transform_indices = @transform_7, window_bounds = array<i64: 8, 128>}, {pipeline_mode = #tpu.pipeline_mode<synchronous>, transform_indices = @transform_8, window_bounds = array<i64: 8, 128>}]} {
    %c0_i32 = arith.constant 0 : i32
    %0 = arith.cmpi eq, %arg0, %c0_i32 : i32
    %1 = arith.extui %0 : i1 to i32
    %c0_i32_0 = arith.constant 0 : i32
    %2 = arith.cmpi ne, %1, %c0_i32_0 : i32
    scf.if %2 {
      %c0_70 = arith.constant 0 : index
      %c0_71 = arith.constant 0 : index
      %235 = vector.load %arg5[%c0_70, %c0_71] : memref<8x128xf32, #tpu.memory_space<vmem>>, vector<8x128xf32>
      %c0_72 = arith.constant 0 : index
      %c0_73 = arith.constant 0 : index
      %236 = vector.load %arg10[%c0_72, %c0_73] : memref<8x128xf32, #tpu.memory_space<vmem>>, vector<8x128xf32>
      tpu.vector_store %arg10[%c0_72, %c0_73], %235 {strides = array<i32>} : memref<8x128xf32, #tpu.memory_space<vmem>>, vector<8x128xf32>,
      %c0_74 = arith.constant 0 : index
      %c0_75 = arith.constant 0 : index
      %237 = vector.load %arg6[%c0_74, %c0_75] : memref<8x128xf32, #tpu.memory_space<vmem>>, vector<8x128xf32>
      %c0_76 = arith.constant 0 : index
      %c0_77 = arith.constant 0 : index
      %238 = vector.load %arg11[%c0_76, %c0_77] : memref<8x128xf32, #tpu.memory_space<vmem>>, vector<8x128xf32>
      tpu.vector_store %arg11[%c0_76, %c0_77], %237 {strides = array<i32>} : memref<8x128xf32, #tpu.memory_space<vmem>>, vector<8x128xf32>,
    } else {
    }
    %c0 = arith.constant 0 : index
    %c0_1 = arith.constant 0 : index
    %3 = vector.load %arg1[%c0, %c0_1] : memref<64x128xbf16, #tpu.memory_space<vmem>>, vector<64x128xbf16>
    %c0_2 = arith.constant 0 : index
    %c0_3 = arith.constant 0 : index
    %4 = vector.load %arg2[%c0_2, %c0_3] : memref<128x512xbf16, #tpu.memory_space<vmem>>, vector<128x512xbf16>
    %cst = arith.constant dense<0.000000e+00> : vector<64x512xf32>
    %5 = tpu.matmul %3, %4, %cst {dimension_numbers = #tpu.dot_dimension_numbers<[1], [0], [0], [1], [0, 0, 1, 1], [], []>} : vector<64x128xbf16>, vector<128x512xbf16>, vector<64x512xf32> -> vector<64x512xf32>
    %c0_4 = arith.constant 0 : index
    %c0_5 = arith.constant 0 : index
    %6 = vector.load %arg4[%c0_4, %c0_5] : memref<1x512xf32, #tpu.memory_space<vmem>>, vector<1x512xf32>
    %7 = vector.broadcast %6 : vector<1x512xf32> to vector<64x512xf32>
    %8 = arith.addf %5, %7 : vector<64x512xf32>
    %9 = vector.shape_cast %8 : vector<64x512xf32> to vector<8x8x512xf32>
    %c0_6 = arith.constant 0 : index
    %c0_7 = arith.constant 0 : index
    %c0_8 = arith.constant 0 : index
    %10 = vector.load %arg12[%c0_6, %c0_7, %c0_8] : memref<8x8x512xf32, #tpu.memory_space<vmem>>, vector<8x8x512xf32>
    tpu.vector_store %arg12[%c0_6, %c0_7, %c0_8], %9 {strides = array<i32>} : memref<8x8x512xf32, #tpu.memory_space<vmem>>, vector<8x8x512xf32>,
    %c0_9 = arith.constant 0 : index
    %c0_10 = arith.constant 0 : index
    %11 = vector.load %arg3[%c0_9, %c0_10] : memref<128x512xbf16, #tpu.memory_space<vmem>>, vector<128x512xbf16>
    %c0_11 = arith.constant 0 : index
    %c0_12 = arith.constant 0 : index
    %12 = vector.load %arg10[%c0_11, %c0_12] : memref<8x128xf32, #tpu.memory_space<vmem>>, vector<8x128xf32>
    %c0_13 = arith.constant 0 : index
    %c0_14 = arith.constant 0 : index
    %13 = vector.load %arg11[%c0_13, %c0_14] : memref<8x128xf32, #tpu.memory_space<vmem>>, vector<8x128xf32>
    %c0_i32_15 = arith.constant 0 : i32
    %14 = arith.index_cast %c0_i32_15 : i32 to index
    %c0_16 = arith.constant 0 : index
    %c0_17 = arith.constant 0 : index
    %15 = vector.load %arg12[%14, %c0_16, %c0_17] : memref<8x8x512xf32, #tpu.memory_space<vmem>>, vector<1x8x512xf32>
    %16 = vector.shape_cast %15 : vector<1x8x512xf32> to vector<8x512xf32>
    %17 = arith.truncf %12 : vector<8x128xf32> to vector<8x128xbf16>
    %cst_18 = arith.constant dense<0.000000e+00> : vector<8x512xf32>
    %18 = tpu.matmul %17, %11, %cst_18 {dimension_numbers = #tpu.dot_dimension_numbers<[1], [0], [0], [1], [0, 0, 1, 1], [], []>} : vector<8x128xbf16>, vector<128x512xbf16>, vector<8x512xf32> -> vector<8x512xf32>
    %19 = arith.addf %16, %18 : vector<8x512xf32>
    %20 = vector.extract_strided_slice %19 {offsets = [0, 0], sizes = [8, 384], strides = [1, 1]} : vector<8x512xf32> to vector<8x384xf32>
    %21 = arith.negf %20 : vector<8x384xf32>
    %22 = math.exp %21 : vector<8x384xf32>
    %cst_19 = arith.constant 1.000000e+00 : f32
    %23 = vector.broadcast %cst_19 : f32 to vector<8x384xf32>
    %24 = arith.addf %23, %22 : vector<8x384xf32>
    %25 = arith.divf %23, %24 : vector<8x384xf32>
    %26 = vector.extract_strided_slice %25 {offsets = [0, 0], sizes = [8, 128], strides = [1, 1]} : vector<8x384xf32> to vector<8x128xf32>
    %27 = vector.extract_strided_slice %25 {offsets = [0, 128], sizes = [8, 128], strides = [1, 1]} : vector<8x384xf32> to vector<8x128xf32>
    %28 = vector.extract_strided_slice %25 {offsets = [0, 256], sizes = [8, 128], strides = [1, 1]} : vector<8x384xf32> to vector<8x128xf32>
    %29 = vector.extract_strided_slice %19 {offsets = [0, 384], sizes = [8, 128], strides = [1, 1]} : vector<8x512xf32> to vector<8x128xf32>
    %30 = math.tanh %29 : vector<8x128xf32>
    %31 = arith.mulf %27, %13 : vector<8x128xf32>
    %32 = arith.mulf %26, %30 : vector<8x128xf32>
    %33 = arith.addf %31, %32 : vector<8x128xf32>
    %34 = math.tanh %33 : vector<8x128xf32>
    %35 = arith.mulf %28, %34 : vector<8x128xf32>
    %36 = arith.truncf %35 : vector<8x128xf32> to vector<8x128xbf16>
    %37 = arith.index_cast %c0_i32_15 : i32 to index
    %c0_20 = arith.constant 0 : index
    %c0_21 = arith.constant 0 : index
    %38 = vector.load %arg7[%37, %c0_20, %c0_21] : memref<8x8x128xbf16, #tpu.memory_space<vmem>>, vector<1x8x128xbf16>
    %39 = vector.shape_cast %38 : vector<1x8x128xbf16> to vector<8x128xbf16>
    %40 = vector.shape_cast %36 : vector<8x128xbf16> to vector<1x8x128xbf16>
    tpu.vector_store %arg7[%37, %c0_20, %c0_21], %40 {strides = array<i32>} : memref<8x8x128xbf16, #tpu.memory_space<vmem>>, vector<1x8x128xbf16>,
    %c1_i32 = arith.constant 1 : i32
    %41 = arith.index_cast %c1_i32 : i32 to index
    %c0_22 = arith.constant 0 : index
    %c0_23 = arith.constant 0 : index
    %42 = vector.load %arg12[%41, %c0_22, %c0_23] : memref<8x8x512xf32, #tpu.memory_space<vmem>>, vector<1x8x512xf32>
    %43 = vector.shape_cast %42 : vector<1x8x512xf32> to vector<8x512xf32>
    %44 = arith.truncf %35 : vector<8x128xf32> to vector<8x128xbf16>
    %cst_24 = arith.constant dense<0.000000e+00> : vector<8x512xf32>
    %45 = tpu.matmul %44, %11, %cst_24 {dimension_numbers = #tpu.dot_dimension_numbers<[1], [0], [0], [1], [0, 0, 1, 1], [], []>} : vector<8x128xbf16>, vector<128x512xbf16>, vector<8x512xf32> -> vector<8x512xf32>
    %46 = arith.addf %43, %45 : vector<8x512xf32>
    %47 = vector.extract_strided_slice %46 {offsets = [0, 0], sizes = [8, 384], strides = [1, 1]} : vector<8x512xf32> to vector<8x384xf32>
    %48 = arith.negf %47 : vector<8x384xf32>
    %49 = math.exp %48 : vector<8x384xf32>
    %cst_25 = arith.constant 1.000000e+00 : f32
    %50 = vector.broadcast %cst_25 : f32 to vector<8x384xf32>
    %51 = arith.addf %50, %49 : vector<8x384xf32>
    %52 = arith.divf %50, %51 : vector<8x384xf32>
    %53 = vector.extract_strided_slice %52 {offsets = [0, 0], sizes = [8, 128], strides = [1, 1]} : vector<8x384xf32> to vector<8x128xf32>
    %54 = vector.extract_strided_slice %52 {offsets = [0, 128], sizes = [8, 128], strides = [1, 1]} : vector<8x384xf32> to vector<8x128xf32>
    %55 = vector.extract_strided_slice %52 {offsets = [0, 256], sizes = [8, 128], strides = [1, 1]} : vector<8x384xf32> to vector<8x128xf32>
    %56 = vector.extract_strided_slice %46 {offsets = [0, 384], sizes = [8, 128], strides = [1, 1]} : vector<8x512xf32> to vector<8x128xf32>
    %57 = math.tanh %56 : vector<8x128xf32>
    %58 = arith.mulf %54, %33 : vector<8x128xf32>
    %59 = arith.mulf %53, %57 : vector<8x128xf32>
    %60 = arith.addf %58, %59 : vector<8x128xf32>
    %61 = math.tanh %60 : vector<8x128xf32>
    %62 = arith.mulf %55, %61 : vector<8x128xf32>
    %63 = arith.truncf %62 : vector<8x128xf32> to vector<8x128xbf16>
    %64 = arith.index_cast %c1_i32 : i32 to index
    %c0_26 = arith.constant 0 : index
    %c0_27 = arith.constant 0 : index
    %65 = vector.load %arg7[%64, %c0_26, %c0_27] : memref<8x8x128xbf16, #tpu.memory_space<vmem>>, vector<1x8x128xbf16>
    %66 = vector.shape_cast %65 : vector<1x8x128xbf16> to vector<8x128xbf16>
    %67 = vector.shape_cast %63 : vector<8x128xbf16> to vector<1x8x128xbf16>
    tpu.vector_store %arg7[%64, %c0_26, %c0_27], %67 {strides = array<i32>} : memref<8x8x128xbf16, #tpu.memory_space<vmem>>, vector<1x8x128xbf16>,
    %c2_i32 = arith.constant 2 : i32
    %68 = arith.index_cast %c2_i32 : i32 to index
    %c0_28 = arith.constant 0 : index
    %c0_29 = arith.constant 0 : index
    %69 = vector.load %arg12[%68, %c0_28, %c0_29] : memref<8x8x512xf32, #tpu.memory_space<vmem>>, vector<1x8x512xf32>
    %70 = vector.shape_cast %69 : vector<1x8x512xf32> to vector<8x512xf32>
    %71 = arith.truncf %62 : vector<8x128xf32> to vector<8x128xbf16>
    %cst_30 = arith.constant dense<0.000000e+00> : vector<8x512xf32>
    %72 = tpu.matmul %71, %11, %cst_30 {dimension_numbers = #tpu.dot_dimension_numbers<[1], [0], [0], [1], [0, 0, 1, 1], [], []>} : vector<8x128xbf16>, vector<128x512xbf16>, vector<8x512xf32> -> vector<8x512xf32>
    %73 = arith.addf %70, %72 : vector<8x512xf32>
    %74 = vector.extract_strided_slice %73 {offsets = [0, 0], sizes = [8, 384], strides = [1, 1]} : vector<8x512xf32> to vector<8x384xf32>
    %75 = arith.negf %74 : vector<8x384xf32>
    %76 = math.exp %75 : vector<8x384xf32>
    %cst_31 = arith.constant 1.000000e+00 : f32
    %77 = vector.broadcast %cst_31 : f32 to vector<8x384xf32>
    %78 = arith.addf %77, %76 : vector<8x384xf32>
    %79 = arith.divf %77, %78 : vector<8x384xf32>
    %80 = vector.extract_strided_slice %79 {offsets = [0, 0], sizes = [8, 128], strides = [1, 1]} : vector<8x384xf32> to vector<8x128xf32>
    %81 = vector.extract_strided_slice %79 {offsets = [0, 128], sizes = [8, 128], strides = [1, 1]} : vector<8x384xf32> to vector<8x128xf32>
    %82 = vector.extract_strided_slice %79 {offsets = [0, 256], sizes = [8, 128], strides = [1, 1]} : vector<8x384xf32> to vector<8x128xf32>
    %83 = vector.extract_strided_slice %73 {offsets = [0, 384], sizes = [8, 128], strides = [1, 1]} : vector<8x512xf32> to vector<8x128xf32>
    %84 = math.tanh %83 : vector<8x128xf32>
    %85 = arith.mulf %81, %60 : vector<8x128xf32>
    %86 = arith.mulf %80, %84 : vector<8x128xf32>
    %87 = arith.addf %85, %86 : vector<8x128xf32>
    %88 = math.tanh %87 : vector<8x128xf32>
    %89 = arith.mulf %82, %88 : vector<8x128xf32>
    %90 = arith.truncf %89 : vector<8x128xf32> to vector<8x128xbf16>
    %91 = arith.index_cast %c2_i32 : i32 to index
    %c0_32 = arith.constant 0 : index
    %c0_33 = arith.constant 0 : index
    %92 = vector.load %arg7[%91, %c0_32, %c0_33] : memref<8x8x128xbf16, #tpu.memory_space<vmem>>, vector<1x8x128xbf16>
    %93 = vector.shape_cast %92 : vector<1x8x128xbf16> to vector<8x128xbf16>
    %94 = vector.shape_cast %90 : vector<8x128xbf16> to vector<1x8x128xbf16>
    tpu.vector_store %arg7[%91, %c0_32, %c0_33], %94 {strides = array<i32>} : memref<8x8x128xbf16, #tpu.memory_space<vmem>>, vector<1x8x128xbf16>,
    %c3_i32 = arith.constant 3 : i32
    %95 = arith.index_cast %c3_i32 : i32 to index
    %c0_34 = arith.constant 0 : index
    %c0_35 = arith.constant 0 : index
    %96 = vector.load %arg12[%95, %c0_34, %c0_35] : memref<8x8x512xf32, #tpu.memory_space<vmem>>, vector<1x8x512xf32>
    %97 = vector.shape_cast %96 : vector<1x8x512xf32> to vector<8x512xf32>
    %98 = arith.truncf %89 : vector<8x128xf32> to vector<8x128xbf16>
    %cst_36 = arith.constant dense<0.000000e+00> : vector<8x512xf32>
    %99 = tpu.matmul %98, %11, %cst_36 {dimension_numbers = #tpu.dot_dimension_numbers<[1], [0], [0], [1], [0, 0, 1, 1], [], []>} : vector<8x128xbf16>, vector<128x512xbf16>, vector<8x512xf32> -> vector<8x512xf32>
    %100 = arith.addf %97, %99 : vector<8x512xf32>
    %101 = vector.extract_strided_slice %100 {offsets = [0, 0], sizes = [8, 384], strides = [1, 1]} : vector<8x512xf32> to vector<8x384xf32>
    %102 = arith.negf %101 : vector<8x384xf32>
    %103 = math.exp %102 : vector<8x384xf32>
    %cst_37 = arith.constant 1.000000e+00 : f32
    %104 = vector.broadcast %cst_37 : f32 to vector<8x384xf32>
    %105 = arith.addf %104, %103 : vector<8x384xf32>
    %106 = arith.divf %104, %105 : vector<8x384xf32>
    %107 = vector.extract_strided_slice %106 {offsets = [0, 0], sizes = [8, 128], strides = [1, 1]} : vector<8x384xf32> to vector<8x128xf32>
    %108 = vector.extract_strided_slice %106 {offsets = [0, 128], sizes = [8, 128], strides = [1, 1]} : vector<8x384xf32> to vector<8x128xf32>
    %109 = vector.extract_strided_slice %106 {offsets = [0, 256], sizes = [8, 128], strides = [1, 1]} : vector<8x384xf32> to vector<8x128xf32>
    %110 = vector.extract_strided_slice %100 {offsets = [0, 384], sizes = [8, 128], strides = [1, 1]} : vector<8x512xf32> to vector<8x128xf32>
    %111 = math.tanh %110 : vector<8x128xf32>
    %112 = arith.mulf %108, %87 : vector<8x128xf32>
    %113 = arith.mulf %107, %111 : vector<8x128xf32>
    %114 = arith.addf %112, %113 : vector<8x128xf32>
    %115 = math.tanh %114 : vector<8x128xf32>
    %116 = arith.mulf %109, %115 : vector<8x128xf32>
    %117 = arith.truncf %116 : vector<8x128xf32> to vector<8x128xbf16>
    %118 = arith.index_cast %c3_i32 : i32 to index
    %c0_38 = arith.constant 0 : index
    %c0_39 = arith.constant 0 : index
    %119 = vector.load %arg7[%118, %c0_38, %c0_39] : memref<8x8x128xbf16, #tpu.memory_space<vmem>>, vector<1x8x128xbf16>
    %120 = vector.shape_cast %119 : vector<1x8x128xbf16> to vector<8x128xbf16>
    %121 = vector.shape_cast %117 : vector<8x128xbf16> to vector<1x8x128xbf16>
    tpu.vector_store %arg7[%118, %c0_38, %c0_39], %121 {strides = array<i32>} : memref<8x8x128xbf16, #tpu.memory_space<vmem>>, vector<1x8x128xbf16>,
    %c4_i32 = arith.constant 4 : i32
    %122 = arith.index_cast %c4_i32 : i32 to index
    %c0_40 = arith.constant 0 : index
    %c0_41 = arith.constant 0 : index
    %123 = vector.load %arg12[%122, %c0_40, %c0_41] : memref<8x8x512xf32, #tpu.memory_space<vmem>>, vector<1x8x512xf32>
    %124 = vector.shape_cast %123 : vector<1x8x512xf32> to vector<8x512xf32>
    %125 = arith.truncf %116 : vector<8x128xf32> to vector<8x128xbf16>
    %cst_42 = arith.constant dense<0.000000e+00> : vector<8x512xf32>
    %126 = tpu.matmul %125, %11, %cst_42 {dimension_numbers = #tpu.dot_dimension_numbers<[1], [0], [0], [1], [0, 0, 1, 1], [], []>} : vector<8x128xbf16>, vector<128x512xbf16>, vector<8x512xf32> -> vector<8x512xf32>
    %127 = arith.addf %124, %126 : vector<8x512xf32>
    %128 = vector.extract_strided_slice %127 {offsets = [0, 0], sizes = [8, 384], strides = [1, 1]} : vector<8x512xf32> to vector<8x384xf32>
    %129 = arith.negf %128 : vector<8x384xf32>
    %130 = math.exp %129 : vector<8x384xf32>
    %cst_43 = arith.constant 1.000000e+00 : f32
    %131 = vector.broadcast %cst_43 : f32 to vector<8x384xf32>
    %132 = arith.addf %131, %130 : vector<8x384xf32>
    %133 = arith.divf %131, %132 : vector<8x384xf32>
    %134 = vector.extract_strided_slice %133 {offsets = [0, 0], sizes = [8, 128], strides = [1, 1]} : vector<8x384xf32> to vector<8x128xf32>
    %135 = vector.extract_strided_slice %133 {offsets = [0, 128], sizes = [8, 128], strides = [1, 1]} : vector<8x384xf32> to vector<8x128xf32>
    %136 = vector.extract_strided_slice %133 {offsets = [0, 256], sizes = [8, 128], strides = [1, 1]} : vector<8x384xf32> to vector<8x128xf32>
    %137 = vector.extract_strided_slice %127 {offsets = [0, 384], sizes = [8, 128], strides = [1, 1]} : vector<8x512xf32> to vector<8x128xf32>
    %138 = math.tanh %137 : vector<8x128xf32>
    %139 = arith.mulf %135, %114 : vector<8x128xf32>
    %140 = arith.mulf %134, %138 : vector<8x128xf32>
    %141 = arith.addf %139, %140 : vector<8x128xf32>
    %142 = math.tanh %141 : vector<8x128xf32>
    %143 = arith.mulf %136, %142 : vector<8x128xf32>
    %144 = arith.truncf %143 : vector<8x128xf32> to vector<8x128xbf16>
    %145 = arith.index_cast %c4_i32 : i32 to index
    %c0_44 = arith.constant 0 : index
    %c0_45 = arith.constant 0 : index
    %146 = vector.load %arg7[%145, %c0_44, %c0_45] : memref<8x8x128xbf16, #tpu.memory_space<vmem>>, vector<1x8x128xbf16>
    %147 = vector.shape_cast %146 : vector<1x8x128xbf16> to vector<8x128xbf16>
    %148 = vector.shape_cast %144 : vector<8x128xbf16> to vector<1x8x128xbf16>
    tpu.vector_store %arg7[%145, %c0_44, %c0_45], %148 {strides = array<i32>} : memref<8x8x128xbf16, #tpu.memory_space<vmem>>, vector<1x8x128xbf16>,
    %c5_i32 = arith.constant 5 : i32
    %149 = arith.index_cast %c5_i32 : i32 to index
    %c0_46 = arith.constant 0 : index
    %c0_47 = arith.constant 0 : index
    %150 = vector.load %arg12[%149, %c0_46, %c0_47] : memref<8x8x512xf32, #tpu.memory_space<vmem>>, vector<1x8x512xf32>
    %151 = vector.shape_cast %150 : vector<1x8x512xf32> to vector<8x512xf32>
    %152 = arith.truncf %143 : vector<8x128xf32> to vector<8x128xbf16>
    %cst_48 = arith.constant dense<0.000000e+00> : vector<8x512xf32>
    %153 = tpu.matmul %152, %11, %cst_48 {dimension_numbers = #tpu.dot_dimension_numbers<[1], [0], [0], [1], [0, 0, 1, 1], [], []>} : vector<8x128xbf16>, vector<128x512xbf16>, vector<8x512xf32> -> vector<8x512xf32>
    %154 = arith.addf %151, %153 : vector<8x512xf32>
    %155 = vector.extract_strided_slice %154 {offsets = [0, 0], sizes = [8, 384], strides = [1, 1]} : vector<8x512xf32> to vector<8x384xf32>
    %156 = arith.negf %155 : vector<8x384xf32>
    %157 = math.exp %156 : vector<8x384xf32>
    %cst_49 = arith.constant 1.000000e+00 : f32
    %158 = vector.broadcast %cst_49 : f32 to vector<8x384xf32>
    %159 = arith.addf %158, %157 : vector<8x384xf32>
    %160 = arith.divf %158, %159 : vector<8x384xf32>
    %161 = vector.extract_strided_slice %160 {offsets = [0, 0], sizes = [8, 128], strides = [1, 1]} : vector<8x384xf32> to vector<8x128xf32>
    %162 = vector.extract_strided_slice %160 {offsets = [0, 128], sizes = [8, 128], strides = [1, 1]} : vector<8x384xf32> to vector<8x128xf32>
    %163 = vector.extract_strided_slice %160 {offsets = [0, 256], sizes = [8, 128], strides = [1, 1]} : vector<8x384xf32> to vector<8x128xf32>
    %164 = vector.extract_strided_slice %154 {offsets = [0, 384], sizes = [8, 128], strides = [1, 1]} : vector<8x512xf32> to vector<8x128xf32>
    %165 = math.tanh %164 : vector<8x128xf32>
    %166 = arith.mulf %162, %141 : vector<8x128xf32>
    %167 = arith.mulf %161, %165 : vector<8x128xf32>
    %168 = arith.addf %166, %167 : vector<8x128xf32>
    %169 = math.tanh %168 : vector<8x128xf32>
    %170 = arith.mulf %163, %169 : vector<8x128xf32>
    %171 = arith.truncf %170 : vector<8x128xf32> to vector<8x128xbf16>
    %172 = arith.index_cast %c5_i32 : i32 to index
    %c0_50 = arith.constant 0 : index
    %c0_51 = arith.constant 0 : index
    %173 = vector.load %arg7[%172, %c0_50, %c0_51] : memref<8x8x128xbf16, #tpu.memory_space<vmem>>, vector<1x8x128xbf16>
    %174 = vector.shape_cast %173 : vector<1x8x128xbf16> to vector<8x128xbf16>
    %175 = vector.shape_cast %171 : vector<8x128xbf16> to vector<1x8x128xbf16>
    tpu.vector_store %arg7[%172, %c0_50, %c0_51], %175 {strides = array<i32>} : memref<8x8x128xbf16, #tpu.memory_space<vmem>>, vector<1x8x128xbf16>,
    %c6_i32 = arith.constant 6 : i32
    %176 = arith.index_cast %c6_i32 : i32 to index
    %c0_52 = arith.constant 0 : index
    %c0_53 = arith.constant 0 : index
    %177 = vector.load %arg12[%176, %c0_52, %c0_53] : memref<8x8x512xf32, #tpu.memory_space<vmem>>, vector<1x8x512xf32>
    %178 = vector.shape_cast %177 : vector<1x8x512xf32> to vector<8x512xf32>
    %179 = arith.truncf %170 : vector<8x128xf32> to vector<8x128xbf16>
    %cst_54 = arith.constant dense<0.000000e+00> : vector<8x512xf32>
    %180 = tpu.matmul %179, %11, %cst_54 {dimension_numbers = #tpu.dot_dimension_numbers<[1], [0], [0], [1], [0, 0, 1, 1], [], []>} : vector<8x128xbf16>, vector<128x512xbf16>, vector<8x512xf32> -> vector<8x512xf32>
    %181 = arith.addf %178, %180 : vector<8x512xf32>
    %182 = vector.extract_strided_slice %181 {offsets = [0, 0], sizes = [8, 384], strides = [1, 1]} : vector<8x512xf32> to vector<8x384xf32>
    %183 = arith.negf %182 : vector<8x384xf32>
    %184 = math.exp %183 : vector<8x384xf32>
    %cst_55 = arith.constant 1.000000e+00 : f32
    %185 = vector.broadcast %cst_55 : f32 to vector<8x384xf32>
    %186 = arith.addf %185, %184 : vector<8x384xf32>
    %187 = arith.divf %185, %186 : vector<8x384xf32>
    %188 = vector.extract_strided_slice %187 {offsets = [0, 0], sizes = [8, 128], strides = [1, 1]} : vector<8x384xf32> to vector<8x128xf32>
    %189 = vector.extract_strided_slice %187 {offsets = [0, 128], sizes = [8, 128], strides = [1, 1]} : vector<8x384xf32> to vector<8x128xf32>
    %190 = vector.extract_strided_slice %187 {offsets = [0, 256], sizes = [8, 128], strides = [1, 1]} : vector<8x384xf32> to vector<8x128xf32>
    %191 = vector.extract_strided_slice %181 {offsets = [0, 384], sizes = [8, 128], strides = [1, 1]} : vector<8x512xf32> to vector<8x128xf32>
    %192 = math.tanh %191 : vector<8x128xf32>
    %193 = arith.mulf %189, %168 : vector<8x128xf32>
    %194 = arith.mulf %188, %192 : vector<8x128xf32>
    %195 = arith.addf %193, %194 : vector<8x128xf32>
    %196 = math.tanh %195 : vector<8x128xf32>
    %197 = arith.mulf %190, %196 : vector<8x128xf32>
    %198 = arith.truncf %197 : vector<8x128xf32> to vector<8x128xbf16>
    %199 = arith.index_cast %c6_i32 : i32 to index
    %c0_56 = arith.constant 0 : index
    %c0_57 = arith.constant 0 : index
    %200 = vector.load %arg7[%199, %c0_56, %c0_57] : memref<8x8x128xbf16, #tpu.memory_space<vmem>>, vector<1x8x128xbf16>
    %201 = vector.shape_cast %200 : vector<1x8x128xbf16> to vector<8x128xbf16>
    %202 = vector.shape_cast %198 : vector<8x128xbf16> to vector<1x8x128xbf16>
    tpu.vector_store %arg7[%199, %c0_56, %c0_57], %202 {strides = array<i32>} : memref<8x8x128xbf16, #tpu.memory_space<vmem>>, vector<1x8x128xbf16>,
    %c7_i32 = arith.constant 7 : i32
    %203 = arith.index_cast %c7_i32 : i32 to index
    %c0_58 = arith.constant 0 : index
    %c0_59 = arith.constant 0 : index
    %204 = vector.load %arg12[%203, %c0_58, %c0_59] : memref<8x8x512xf32, #tpu.memory_space<vmem>>, vector<1x8x512xf32>
    %205 = vector.shape_cast %204 : vector<1x8x512xf32> to vector<8x512xf32>
    %206 = arith.truncf %197 : vector<8x128xf32> to vector<8x128xbf16>
    %cst_60 = arith.constant dense<0.000000e+00> : vector<8x512xf32>
    %207 = tpu.matmul %206, %11, %cst_60 {dimension_numbers = #tpu.dot_dimension_numbers<[1], [0], [0], [1], [0, 0, 1, 1], [], []>} : vector<8x128xbf16>, vector<128x512xbf16>, vector<8x512xf32> -> vector<8x512xf32>
    %208 = arith.addf %205, %207 : vector<8x512xf32>
    %209 = vector.extract_strided_slice %208 {offsets = [0, 0], sizes = [8, 384], strides = [1, 1]} : vector<8x512xf32> to vector<8x384xf32>
    %210 = arith.negf %209 : vector<8x384xf32>
    %211 = math.exp %210 : vector<8x384xf32>
    %cst_61 = arith.constant 1.000000e+00 : f32
    %212 = vector.broadcast %cst_61 : f32 to vector<8x384xf32>
    %213 = arith.addf %212, %211 : vector<8x384xf32>
    %214 = arith.divf %212, %213 : vector<8x384xf32>
    %215 = vector.extract_strided_slice %214 {offsets = [0, 0], sizes = [8, 128], strides = [1, 1]} : vector<8x384xf32> to vector<8x128xf32>
    %216 = vector.extract_strided_slice %214 {offsets = [0, 128], sizes = [8, 128], strides = [1, 1]} : vector<8x384xf32> to vector<8x128xf32>
    %217 = vector.extract_strided_slice %214 {offsets = [0, 256], sizes = [8, 128], strides = [1, 1]} : vector<8x384xf32> to vector<8x128xf32>
    %218 = vector.extract_strided_slice %208 {offsets = [0, 384], sizes = [8, 128], strides = [1, 1]} : vector<8x512xf32> to vector<8x128xf32>
    %219 = math.tanh %218 : vector<8x128xf32>
    %220 = arith.mulf %216, %195 : vector<8x128xf32>
    %221 = arith.mulf %215, %219 : vector<8x128xf32>
    %222 = arith.addf %220, %221 : vector<8x128xf32>
    %223 = math.tanh %222 : vector<8x128xf32>
    %224 = arith.mulf %217, %223 : vector<8x128xf32>
    %225 = arith.truncf %224 : vector<8x128xf32> to vector<8x128xbf16>
    %226 = arith.index_cast %c7_i32 : i32 to index
    %c0_62 = arith.constant 0 : index
    %c0_63 = arith.constant 0 : index
    %227 = vector.load %arg7[%226, %c0_62, %c0_63] : memref<8x8x128xbf16, #tpu.memory_space<vmem>>, vector<1x8x128xbf16>
    %228 = vector.shape_cast %227 : vector<1x8x128xbf16> to vector<8x128xbf16>
    %229 = vector.shape_cast %225 : vector<8x128xbf16> to vector<1x8x128xbf16>
    tpu.vector_store %arg7[%226, %c0_62, %c0_63], %229 {strides = array<i32>} : memref<8x8x128xbf16, #tpu.memory_space<vmem>>, vector<1x8x128xbf16>,
    %c8_i32 = arith.constant 8 : i32
    %c0_64 = arith.constant 0 : index
    %c0_65 = arith.constant 0 : index
    %230 = vector.load %arg10[%c0_64, %c0_65] : memref<8x128xf32, #tpu.memory_space<vmem>>, vector<8x128xf32>
    tpu.vector_store %arg10[%c0_64, %c0_65], %224 {strides = array<i32>} : memref<8x128xf32, #tpu.memory_space<vmem>>, vector<8x128xf32>,
    %c0_66 = arith.constant 0 : index
    %c0_67 = arith.constant 0 : index
    %231 = vector.load %arg11[%c0_66, %c0_67] : memref<8x128xf32, #tpu.memory_space<vmem>>, vector<8x128xf32>
    tpu.vector_store %arg11[%c0_66, %c0_67], %222 {strides = array<i32>} : memref<8x128xf32, #tpu.memory_space<vmem>>, vector<8x128xf32>,
    %c0_i32_68 = arith.constant 0 : i32
    %232 = arith.cmpi eq, %arg0, %c0_i32_68 : i32
    %233 = arith.extui %232 : i1 to i32
    %c0_i32_69 = arith.constant 0 : i32
    %234 = arith.cmpi ne, %233, %c0_i32_69 : i32
    scf.if %234 {
      %c0_70 = arith.constant 0 : index
      %c0_71 = arith.constant 0 : index
      %235 = vector.load %arg10[%c0_70, %c0_71] : memref<8x128xf32, #tpu.memory_space<vmem>>, vector<8x128xf32>
      %c0_72 = arith.constant 0 : index
      %c0_73 = arith.constant 0 : index
      %236 = vector.load %arg8[%c0_72, %c0_73] : memref<8x128xf32, #tpu.memory_space<vmem>>, vector<8x128xf32>
      tpu.vector_store %arg8[%c0_72, %c0_73], %235 {strides = array<i32>} : memref<8x128xf32, #tpu.memory_space<vmem>>, vector<8x128xf32>,
      %c0_74 = arith.constant 0 : index
      %c0_75 = arith.constant 0 : index
      %237 = vector.load %arg11[%c0_74, %c0_75] : memref<8x128xf32, #tpu.memory_space<vmem>>, vector<8x128xf32>
      %c0_76 = arith.constant 0 : index
      %c0_77 = arith.constant 0 : index
      %238 = vector.load %arg9[%c0_76, %c0_77] : memref<8x128xf32, #tpu.memory_space<vmem>>, vector<8x128xf32>
      tpu.vector_store %arg9[%c0_76, %c0_77], %237 {strides = array<i32>} : memref<8x128xf32, #tpu.memory_space<vmem>>, vector<8x128xf32>,
    } else {
    }
    return
  }
  func.func @transform_0(%arg0: i32) -> (i32, i32) {
    %c0_i32 = arith.constant 0 : i32
    %c0_i32_0 = arith.constant 0 : i32
    return %arg0, %c0_i32 : i32, i32
  }
  func.func @transform_1(%arg0: i32) -> (i32, i32) {
    %c0_i32 = arith.constant 0 : i32
    %c0_i32_0 = arith.constant 0 : i32
    %c0_i32_1 = arith.constant 0 : i32
    return %c0_i32, %c0_i32_0 : i32, i32
  }
  func.func @transform_2(%arg0: i32) -> (i32, i32) {
    %c0_i32 = arith.constant 0 : i32
    %c0_i32_0 = arith.constant 0 : i32
    %c0_i32_1 = arith.constant 0 : i32
    return %c0_i32, %c0_i32_0 : i32, i32
  }
  func.func @transform_3(%arg0: i32) -> (i32, i32) {
    %c0_i32 = arith.constant 0 : i32
    %c0_i32_0 = arith.constant 0 : i32
    %c0_i32_1 = arith.constant 0 : i32
    return %c0_i32, %c0_i32_0 : i32, i32
  }
  func.func @transform_4(%arg0: i32) -> (i32, i32) {
    %c0_i32 = arith.constant 0 : i32
    %c0_i32_0 = arith.constant 0 : i32
    %c0_i32_1 = arith.constant 0 : i32
    return %c0_i32, %c0_i32_0 : i32, i32
  }
  func.func @transform_5(%arg0: i32) -> (i32, i32) {
    %c0_i32 = arith.constant 0 : i32
    %c0_i32_0 = arith.constant 0 : i32
    %c0_i32_1 = arith.constant 0 : i32
    return %c0_i32, %c0_i32_0 : i32, i32
  }
  func.func @transform_6(%arg0: i32) -> (i32, i32, i32) {
    %c0_i32 = arith.constant 0 : i32
    %c0_i32_0 = arith.constant 0 : i32
    %c0_i32_1 = arith.constant 0 : i32
    return %arg0, %c0_i32, %c0_i32_0 : i32, i32, i32
  }
  func.func @transform_7(%arg0: i32) -> (i32, i32) {
    %c0_i32 = arith.constant 0 : i32
    %c0_i32_0 = arith.constant 0 : i32
    %c0_i32_1 = arith.constant 0 : i32
    return %c0_i32, %c0_i32_0 : i32, i32
  }
  func.func @transform_8(%arg0: i32) -> (i32, i32) {
    %c0_i32 = arith.constant 0 : i32
    %c0_i32_0 = arith.constant 0 : i32
    %c0_i32_1 = arith.constant 0 : i32
    return %c0_i32, %c0_i32_0 : i32, i32
  }
}

module attributes {stable_mosaic.version = 11 : i64} {
  func.func @_lstm_layer_kernel(%arg0: i32, %arg1: memref<64x128xbf16, #tpu.memory_space<vmem>>, %arg2: memref<128x512xbf16, #tpu.memory_space<vmem>>, %arg3: memref<128x512xbf16, #tpu.memory_space<vmem>>, %arg4: memref<1x512xf32, #tpu.memory_space<vmem>>, %arg5: memref<8x128xf32, #tpu.memory_space<vmem>>, %arg6: memref<8x128xf32, #tpu.memory_space<vmem>>, %arg7: memref<8x8x128xf32, #tpu.memory_space<vmem>>, %arg8: memref<8x128xf32, #tpu.memory_space<vmem>>, %arg9: memref<8x128xf32, #tpu.memory_space<vmem>>, %arg10: memref<8x128xf32, #tpu.memory_space<vmem>>, %arg11: memref<8x128xf32, #tpu.memory_space<vmem>>, %arg12: memref<8x8x512xf32, #tpu.memory_space<vmem>>) attributes {dimension_semantics = [#tpu.dimension_semantics<arbitrary>], iteration_bounds = array<i64: 1>, scalar_prefetch = 0 : i64, scratch_operands = 3 : i64, tpu.core_type = #tpu.core_type<tc>, window_params = [{transform_indices = @transform_0, window_bounds = array<i64: 64, 128>}, {pipeline_mode = #tpu.pipeline_mode<synchronous>, transform_indices = @transform_1, window_bounds = array<i64: 128, 512>}, {pipeline_mode = #tpu.pipeline_mode<synchronous>, transform_indices = @transform_2, window_bounds = array<i64: 128, 512>}, {pipeline_mode = #tpu.pipeline_mode<synchronous>, transform_indices = @transform_3, window_bounds = array<i64: 1, 512>}, {pipeline_mode = #tpu.pipeline_mode<synchronous>, transform_indices = @transform_4, window_bounds = array<i64: 8, 128>}, {pipeline_mode = #tpu.pipeline_mode<synchronous>, transform_indices = @transform_5, window_bounds = array<i64: 8, 128>}, {transform_indices = @transform_6, window_bounds = array<i64: 8, 8, 128>}, {pipeline_mode = #tpu.pipeline_mode<synchronous>, transform_indices = @transform_7, window_bounds = array<i64: 8, 128>}, {pipeline_mode = #tpu.pipeline_mode<synchronous>, transform_indices = @transform_8, window_bounds = array<i64: 8, 128>}]} {
    %c0_i32 = arith.constant 0 : i32
    %0 = arith.cmpi eq, %arg0, %c0_i32 : i32
    %1 = arith.extui %0 : i1 to i32
    %c0_i32_0 = arith.constant 0 : i32
    %2 = arith.cmpi ne, %1, %c0_i32_0 : i32
    scf.if %2 {
      %c0_70 = arith.constant 0 : index
      %c0_71 = arith.constant 0 : index
      %227 = vector.load %arg5[%c0_70, %c0_71] : memref<8x128xf32, #tpu.memory_space<vmem>>, vector<8x128xf32>
      %c0_72 = arith.constant 0 : index
      %c0_73 = arith.constant 0 : index
      %228 = vector.load %arg10[%c0_72, %c0_73] : memref<8x128xf32, #tpu.memory_space<vmem>>, vector<8x128xf32>
      tpu.vector_store %arg10[%c0_72, %c0_73], %227 {strides = array<i32>} : memref<8x128xf32, #tpu.memory_space<vmem>>, vector<8x128xf32>,
      %c0_74 = arith.constant 0 : index
      %c0_75 = arith.constant 0 : index
      %229 = vector.load %arg6[%c0_74, %c0_75] : memref<8x128xf32, #tpu.memory_space<vmem>>, vector<8x128xf32>
      %c0_76 = arith.constant 0 : index
      %c0_77 = arith.constant 0 : index
      %230 = vector.load %arg11[%c0_76, %c0_77] : memref<8x128xf32, #tpu.memory_space<vmem>>, vector<8x128xf32>
      tpu.vector_store %arg11[%c0_76, %c0_77], %229 {strides = array<i32>} : memref<8x128xf32, #tpu.memory_space<vmem>>, vector<8x128xf32>,
    } else {
    }
    %c0 = arith.constant 0 : index
    %c0_1 = arith.constant 0 : index
    %3 = vector.load %arg1[%c0, %c0_1] : memref<64x128xbf16, #tpu.memory_space<vmem>>, vector<64x128xbf16>
    %c0_2 = arith.constant 0 : index
    %c0_3 = arith.constant 0 : index
    %4 = vector.load %arg2[%c0_2, %c0_3] : memref<128x512xbf16, #tpu.memory_space<vmem>>, vector<128x512xbf16>
    %cst = arith.constant dense<0.000000e+00> : vector<64x512xf32>
    %5 = tpu.matmul %3, %4, %cst {dimension_numbers = #tpu.dot_dimension_numbers<[1], [0], [0], [1], [0, 0, 1, 1], [], []>} : vector<64x128xbf16>, vector<128x512xbf16>, vector<64x512xf32> -> vector<64x512xf32>
    %c0_4 = arith.constant 0 : index
    %c0_5 = arith.constant 0 : index
    %6 = vector.load %arg4[%c0_4, %c0_5] : memref<1x512xf32, #tpu.memory_space<vmem>>, vector<1x512xf32>
    %7 = vector.broadcast %6 : vector<1x512xf32> to vector<64x512xf32>
    %8 = arith.addf %5, %7 : vector<64x512xf32>
    %9 = vector.shape_cast %8 : vector<64x512xf32> to vector<8x8x512xf32>
    %c0_6 = arith.constant 0 : index
    %c0_7 = arith.constant 0 : index
    %c0_8 = arith.constant 0 : index
    %10 = vector.load %arg12[%c0_6, %c0_7, %c0_8] : memref<8x8x512xf32, #tpu.memory_space<vmem>>, vector<8x8x512xf32>
    tpu.vector_store %arg12[%c0_6, %c0_7, %c0_8], %9 {strides = array<i32>} : memref<8x8x512xf32, #tpu.memory_space<vmem>>, vector<8x8x512xf32>,
    %c0_9 = arith.constant 0 : index
    %c0_10 = arith.constant 0 : index
    %11 = vector.load %arg3[%c0_9, %c0_10] : memref<128x512xbf16, #tpu.memory_space<vmem>>, vector<128x512xbf16>
    %c0_11 = arith.constant 0 : index
    %c0_12 = arith.constant 0 : index
    %12 = vector.load %arg10[%c0_11, %c0_12] : memref<8x128xf32, #tpu.memory_space<vmem>>, vector<8x128xf32>
    %c0_13 = arith.constant 0 : index
    %c0_14 = arith.constant 0 : index
    %13 = vector.load %arg11[%c0_13, %c0_14] : memref<8x128xf32, #tpu.memory_space<vmem>>, vector<8x128xf32>
    %c0_i32_15 = arith.constant 0 : i32
    %14 = arith.index_cast %c0_i32_15 : i32 to index
    %c0_16 = arith.constant 0 : index
    %c0_17 = arith.constant 0 : index
    %15 = vector.load %arg12[%14, %c0_16, %c0_17] : memref<8x8x512xf32, #tpu.memory_space<vmem>>, vector<1x8x512xf32>
    %16 = vector.shape_cast %15 : vector<1x8x512xf32> to vector<8x512xf32>
    %17 = arith.truncf %12 : vector<8x128xf32> to vector<8x128xbf16>
    %cst_18 = arith.constant dense<0.000000e+00> : vector<8x512xf32>
    %18 = tpu.matmul %17, %11, %cst_18 {dimension_numbers = #tpu.dot_dimension_numbers<[1], [0], [0], [1], [0, 0, 1, 1], [], []>} : vector<8x128xbf16>, vector<128x512xbf16>, vector<8x512xf32> -> vector<8x512xf32>
    %19 = arith.addf %16, %18 : vector<8x512xf32>
    %20 = vector.extract_strided_slice %19 {offsets = [0, 0], sizes = [8, 384], strides = [1, 1]} : vector<8x512xf32> to vector<8x384xf32>
    %21 = arith.negf %20 : vector<8x384xf32>
    %22 = math.exp %21 : vector<8x384xf32>
    %cst_19 = arith.constant 1.000000e+00 : f32
    %23 = vector.broadcast %cst_19 : f32 to vector<8x384xf32>
    %24 = arith.addf %23, %22 : vector<8x384xf32>
    %25 = arith.divf %23, %24 : vector<8x384xf32>
    %26 = vector.extract_strided_slice %25 {offsets = [0, 0], sizes = [8, 128], strides = [1, 1]} : vector<8x384xf32> to vector<8x128xf32>
    %27 = vector.extract_strided_slice %25 {offsets = [0, 128], sizes = [8, 128], strides = [1, 1]} : vector<8x384xf32> to vector<8x128xf32>
    %28 = vector.extract_strided_slice %25 {offsets = [0, 256], sizes = [8, 128], strides = [1, 1]} : vector<8x384xf32> to vector<8x128xf32>
    %29 = vector.extract_strided_slice %19 {offsets = [0, 384], sizes = [8, 128], strides = [1, 1]} : vector<8x512xf32> to vector<8x128xf32>
    %30 = math.tanh %29 : vector<8x128xf32>
    %31 = arith.mulf %27, %13 : vector<8x128xf32>
    %32 = arith.mulf %26, %30 : vector<8x128xf32>
    %33 = arith.addf %31, %32 : vector<8x128xf32>
    %34 = math.tanh %33 : vector<8x128xf32>
    %35 = arith.mulf %28, %34 : vector<8x128xf32>
    %36 = arith.index_cast %c0_i32_15 : i32 to index
    %c0_20 = arith.constant 0 : index
    %c0_21 = arith.constant 0 : index
    %37 = vector.load %arg7[%36, %c0_20, %c0_21] : memref<8x8x128xf32, #tpu.memory_space<vmem>>, vector<1x8x128xf32>
    %38 = vector.shape_cast %37 : vector<1x8x128xf32> to vector<8x128xf32>
    %39 = vector.shape_cast %35 : vector<8x128xf32> to vector<1x8x128xf32>
    tpu.vector_store %arg7[%36, %c0_20, %c0_21], %39 {strides = array<i32>} : memref<8x8x128xf32, #tpu.memory_space<vmem>>, vector<1x8x128xf32>,
    %c1_i32 = arith.constant 1 : i32
    %40 = arith.index_cast %c1_i32 : i32 to index
    %c0_22 = arith.constant 0 : index
    %c0_23 = arith.constant 0 : index
    %41 = vector.load %arg12[%40, %c0_22, %c0_23] : memref<8x8x512xf32, #tpu.memory_space<vmem>>, vector<1x8x512xf32>
    %42 = vector.shape_cast %41 : vector<1x8x512xf32> to vector<8x512xf32>
    %43 = arith.truncf %35 : vector<8x128xf32> to vector<8x128xbf16>
    %cst_24 = arith.constant dense<0.000000e+00> : vector<8x512xf32>
    %44 = tpu.matmul %43, %11, %cst_24 {dimension_numbers = #tpu.dot_dimension_numbers<[1], [0], [0], [1], [0, 0, 1, 1], [], []>} : vector<8x128xbf16>, vector<128x512xbf16>, vector<8x512xf32> -> vector<8x512xf32>
    %45 = arith.addf %42, %44 : vector<8x512xf32>
    %46 = vector.extract_strided_slice %45 {offsets = [0, 0], sizes = [8, 384], strides = [1, 1]} : vector<8x512xf32> to vector<8x384xf32>
    %47 = arith.negf %46 : vector<8x384xf32>
    %48 = math.exp %47 : vector<8x384xf32>
    %cst_25 = arith.constant 1.000000e+00 : f32
    %49 = vector.broadcast %cst_25 : f32 to vector<8x384xf32>
    %50 = arith.addf %49, %48 : vector<8x384xf32>
    %51 = arith.divf %49, %50 : vector<8x384xf32>
    %52 = vector.extract_strided_slice %51 {offsets = [0, 0], sizes = [8, 128], strides = [1, 1]} : vector<8x384xf32> to vector<8x128xf32>
    %53 = vector.extract_strided_slice %51 {offsets = [0, 128], sizes = [8, 128], strides = [1, 1]} : vector<8x384xf32> to vector<8x128xf32>
    %54 = vector.extract_strided_slice %51 {offsets = [0, 256], sizes = [8, 128], strides = [1, 1]} : vector<8x384xf32> to vector<8x128xf32>
    %55 = vector.extract_strided_slice %45 {offsets = [0, 384], sizes = [8, 128], strides = [1, 1]} : vector<8x512xf32> to vector<8x128xf32>
    %56 = math.tanh %55 : vector<8x128xf32>
    %57 = arith.mulf %53, %33 : vector<8x128xf32>
    %58 = arith.mulf %52, %56 : vector<8x128xf32>
    %59 = arith.addf %57, %58 : vector<8x128xf32>
    %60 = math.tanh %59 : vector<8x128xf32>
    %61 = arith.mulf %54, %60 : vector<8x128xf32>
    %62 = arith.index_cast %c1_i32 : i32 to index
    %c0_26 = arith.constant 0 : index
    %c0_27 = arith.constant 0 : index
    %63 = vector.load %arg7[%62, %c0_26, %c0_27] : memref<8x8x128xf32, #tpu.memory_space<vmem>>, vector<1x8x128xf32>
    %64 = vector.shape_cast %63 : vector<1x8x128xf32> to vector<8x128xf32>
    %65 = vector.shape_cast %61 : vector<8x128xf32> to vector<1x8x128xf32>
    tpu.vector_store %arg7[%62, %c0_26, %c0_27], %65 {strides = array<i32>} : memref<8x8x128xf32, #tpu.memory_space<vmem>>, vector<1x8x128xf32>,
    %c2_i32 = arith.constant 2 : i32
    %66 = arith.index_cast %c2_i32 : i32 to index
    %c0_28 = arith.constant 0 : index
    %c0_29 = arith.constant 0 : index
    %67 = vector.load %arg12[%66, %c0_28, %c0_29] : memref<8x8x512xf32, #tpu.memory_space<vmem>>, vector<1x8x512xf32>
    %68 = vector.shape_cast %67 : vector<1x8x512xf32> to vector<8x512xf32>
    %69 = arith.truncf %61 : vector<8x128xf32> to vector<8x128xbf16>
    %cst_30 = arith.constant dense<0.000000e+00> : vector<8x512xf32>
    %70 = tpu.matmul %69, %11, %cst_30 {dimension_numbers = #tpu.dot_dimension_numbers<[1], [0], [0], [1], [0, 0, 1, 1], [], []>} : vector<8x128xbf16>, vector<128x512xbf16>, vector<8x512xf32> -> vector<8x512xf32>
    %71 = arith.addf %68, %70 : vector<8x512xf32>
    %72 = vector.extract_strided_slice %71 {offsets = [0, 0], sizes = [8, 384], strides = [1, 1]} : vector<8x512xf32> to vector<8x384xf32>
    %73 = arith.negf %72 : vector<8x384xf32>
    %74 = math.exp %73 : vector<8x384xf32>
    %cst_31 = arith.constant 1.000000e+00 : f32
    %75 = vector.broadcast %cst_31 : f32 to vector<8x384xf32>
    %76 = arith.addf %75, %74 : vector<8x384xf32>
    %77 = arith.divf %75, %76 : vector<8x384xf32>
    %78 = vector.extract_strided_slice %77 {offsets = [0, 0], sizes = [8, 128], strides = [1, 1]} : vector<8x384xf32> to vector<8x128xf32>
    %79 = vector.extract_strided_slice %77 {offsets = [0, 128], sizes = [8, 128], strides = [1, 1]} : vector<8x384xf32> to vector<8x128xf32>
    %80 = vector.extract_strided_slice %77 {offsets = [0, 256], sizes = [8, 128], strides = [1, 1]} : vector<8x384xf32> to vector<8x128xf32>
    %81 = vector.extract_strided_slice %71 {offsets = [0, 384], sizes = [8, 128], strides = [1, 1]} : vector<8x512xf32> to vector<8x128xf32>
    %82 = math.tanh %81 : vector<8x128xf32>
    %83 = arith.mulf %79, %59 : vector<8x128xf32>
    %84 = arith.mulf %78, %82 : vector<8x128xf32>
    %85 = arith.addf %83, %84 : vector<8x128xf32>
    %86 = math.tanh %85 : vector<8x128xf32>
    %87 = arith.mulf %80, %86 : vector<8x128xf32>
    %88 = arith.index_cast %c2_i32 : i32 to index
    %c0_32 = arith.constant 0 : index
    %c0_33 = arith.constant 0 : index
    %89 = vector.load %arg7[%88, %c0_32, %c0_33] : memref<8x8x128xf32, #tpu.memory_space<vmem>>, vector<1x8x128xf32>
    %90 = vector.shape_cast %89 : vector<1x8x128xf32> to vector<8x128xf32>
    %91 = vector.shape_cast %87 : vector<8x128xf32> to vector<1x8x128xf32>
    tpu.vector_store %arg7[%88, %c0_32, %c0_33], %91 {strides = array<i32>} : memref<8x8x128xf32, #tpu.memory_space<vmem>>, vector<1x8x128xf32>,
    %c3_i32 = arith.constant 3 : i32
    %92 = arith.index_cast %c3_i32 : i32 to index
    %c0_34 = arith.constant 0 : index
    %c0_35 = arith.constant 0 : index
    %93 = vector.load %arg12[%92, %c0_34, %c0_35] : memref<8x8x512xf32, #tpu.memory_space<vmem>>, vector<1x8x512xf32>
    %94 = vector.shape_cast %93 : vector<1x8x512xf32> to vector<8x512xf32>
    %95 = arith.truncf %87 : vector<8x128xf32> to vector<8x128xbf16>
    %cst_36 = arith.constant dense<0.000000e+00> : vector<8x512xf32>
    %96 = tpu.matmul %95, %11, %cst_36 {dimension_numbers = #tpu.dot_dimension_numbers<[1], [0], [0], [1], [0, 0, 1, 1], [], []>} : vector<8x128xbf16>, vector<128x512xbf16>, vector<8x512xf32> -> vector<8x512xf32>
    %97 = arith.addf %94, %96 : vector<8x512xf32>
    %98 = vector.extract_strided_slice %97 {offsets = [0, 0], sizes = [8, 384], strides = [1, 1]} : vector<8x512xf32> to vector<8x384xf32>
    %99 = arith.negf %98 : vector<8x384xf32>
    %100 = math.exp %99 : vector<8x384xf32>
    %cst_37 = arith.constant 1.000000e+00 : f32
    %101 = vector.broadcast %cst_37 : f32 to vector<8x384xf32>
    %102 = arith.addf %101, %100 : vector<8x384xf32>
    %103 = arith.divf %101, %102 : vector<8x384xf32>
    %104 = vector.extract_strided_slice %103 {offsets = [0, 0], sizes = [8, 128], strides = [1, 1]} : vector<8x384xf32> to vector<8x128xf32>
    %105 = vector.extract_strided_slice %103 {offsets = [0, 128], sizes = [8, 128], strides = [1, 1]} : vector<8x384xf32> to vector<8x128xf32>
    %106 = vector.extract_strided_slice %103 {offsets = [0, 256], sizes = [8, 128], strides = [1, 1]} : vector<8x384xf32> to vector<8x128xf32>
    %107 = vector.extract_strided_slice %97 {offsets = [0, 384], sizes = [8, 128], strides = [1, 1]} : vector<8x512xf32> to vector<8x128xf32>
    %108 = math.tanh %107 : vector<8x128xf32>
    %109 = arith.mulf %105, %85 : vector<8x128xf32>
    %110 = arith.mulf %104, %108 : vector<8x128xf32>
    %111 = arith.addf %109, %110 : vector<8x128xf32>
    %112 = math.tanh %111 : vector<8x128xf32>
    %113 = arith.mulf %106, %112 : vector<8x128xf32>
    %114 = arith.index_cast %c3_i32 : i32 to index
    %c0_38 = arith.constant 0 : index
    %c0_39 = arith.constant 0 : index
    %115 = vector.load %arg7[%114, %c0_38, %c0_39] : memref<8x8x128xf32, #tpu.memory_space<vmem>>, vector<1x8x128xf32>
    %116 = vector.shape_cast %115 : vector<1x8x128xf32> to vector<8x128xf32>
    %117 = vector.shape_cast %113 : vector<8x128xf32> to vector<1x8x128xf32>
    tpu.vector_store %arg7[%114, %c0_38, %c0_39], %117 {strides = array<i32>} : memref<8x8x128xf32, #tpu.memory_space<vmem>>, vector<1x8x128xf32>,
    %c4_i32 = arith.constant 4 : i32
    %118 = arith.index_cast %c4_i32 : i32 to index
    %c0_40 = arith.constant 0 : index
    %c0_41 = arith.constant 0 : index
    %119 = vector.load %arg12[%118, %c0_40, %c0_41] : memref<8x8x512xf32, #tpu.memory_space<vmem>>, vector<1x8x512xf32>
    %120 = vector.shape_cast %119 : vector<1x8x512xf32> to vector<8x512xf32>
    %121 = arith.truncf %113 : vector<8x128xf32> to vector<8x128xbf16>
    %cst_42 = arith.constant dense<0.000000e+00> : vector<8x512xf32>
    %122 = tpu.matmul %121, %11, %cst_42 {dimension_numbers = #tpu.dot_dimension_numbers<[1], [0], [0], [1], [0, 0, 1, 1], [], []>} : vector<8x128xbf16>, vector<128x512xbf16>, vector<8x512xf32> -> vector<8x512xf32>
    %123 = arith.addf %120, %122 : vector<8x512xf32>
    %124 = vector.extract_strided_slice %123 {offsets = [0, 0], sizes = [8, 384], strides = [1, 1]} : vector<8x512xf32> to vector<8x384xf32>
    %125 = arith.negf %124 : vector<8x384xf32>
    %126 = math.exp %125 : vector<8x384xf32>
    %cst_43 = arith.constant 1.000000e+00 : f32
    %127 = vector.broadcast %cst_43 : f32 to vector<8x384xf32>
    %128 = arith.addf %127, %126 : vector<8x384xf32>
    %129 = arith.divf %127, %128 : vector<8x384xf32>
    %130 = vector.extract_strided_slice %129 {offsets = [0, 0], sizes = [8, 128], strides = [1, 1]} : vector<8x384xf32> to vector<8x128xf32>
    %131 = vector.extract_strided_slice %129 {offsets = [0, 128], sizes = [8, 128], strides = [1, 1]} : vector<8x384xf32> to vector<8x128xf32>
    %132 = vector.extract_strided_slice %129 {offsets = [0, 256], sizes = [8, 128], strides = [1, 1]} : vector<8x384xf32> to vector<8x128xf32>
    %133 = vector.extract_strided_slice %123 {offsets = [0, 384], sizes = [8, 128], strides = [1, 1]} : vector<8x512xf32> to vector<8x128xf32>
    %134 = math.tanh %133 : vector<8x128xf32>
    %135 = arith.mulf %131, %111 : vector<8x128xf32>
    %136 = arith.mulf %130, %134 : vector<8x128xf32>
    %137 = arith.addf %135, %136 : vector<8x128xf32>
    %138 = math.tanh %137 : vector<8x128xf32>
    %139 = arith.mulf %132, %138 : vector<8x128xf32>
    %140 = arith.index_cast %c4_i32 : i32 to index
    %c0_44 = arith.constant 0 : index
    %c0_45 = arith.constant 0 : index
    %141 = vector.load %arg7[%140, %c0_44, %c0_45] : memref<8x8x128xf32, #tpu.memory_space<vmem>>, vector<1x8x128xf32>
    %142 = vector.shape_cast %141 : vector<1x8x128xf32> to vector<8x128xf32>
    %143 = vector.shape_cast %139 : vector<8x128xf32> to vector<1x8x128xf32>
    tpu.vector_store %arg7[%140, %c0_44, %c0_45], %143 {strides = array<i32>} : memref<8x8x128xf32, #tpu.memory_space<vmem>>, vector<1x8x128xf32>,
    %c5_i32 = arith.constant 5 : i32
    %144 = arith.index_cast %c5_i32 : i32 to index
    %c0_46 = arith.constant 0 : index
    %c0_47 = arith.constant 0 : index
    %145 = vector.load %arg12[%144, %c0_46, %c0_47] : memref<8x8x512xf32, #tpu.memory_space<vmem>>, vector<1x8x512xf32>
    %146 = vector.shape_cast %145 : vector<1x8x512xf32> to vector<8x512xf32>
    %147 = arith.truncf %139 : vector<8x128xf32> to vector<8x128xbf16>
    %cst_48 = arith.constant dense<0.000000e+00> : vector<8x512xf32>
    %148 = tpu.matmul %147, %11, %cst_48 {dimension_numbers = #tpu.dot_dimension_numbers<[1], [0], [0], [1], [0, 0, 1, 1], [], []>} : vector<8x128xbf16>, vector<128x512xbf16>, vector<8x512xf32> -> vector<8x512xf32>
    %149 = arith.addf %146, %148 : vector<8x512xf32>
    %150 = vector.extract_strided_slice %149 {offsets = [0, 0], sizes = [8, 384], strides = [1, 1]} : vector<8x512xf32> to vector<8x384xf32>
    %151 = arith.negf %150 : vector<8x384xf32>
    %152 = math.exp %151 : vector<8x384xf32>
    %cst_49 = arith.constant 1.000000e+00 : f32
    %153 = vector.broadcast %cst_49 : f32 to vector<8x384xf32>
    %154 = arith.addf %153, %152 : vector<8x384xf32>
    %155 = arith.divf %153, %154 : vector<8x384xf32>
    %156 = vector.extract_strided_slice %155 {offsets = [0, 0], sizes = [8, 128], strides = [1, 1]} : vector<8x384xf32> to vector<8x128xf32>
    %157 = vector.extract_strided_slice %155 {offsets = [0, 128], sizes = [8, 128], strides = [1, 1]} : vector<8x384xf32> to vector<8x128xf32>
    %158 = vector.extract_strided_slice %155 {offsets = [0, 256], sizes = [8, 128], strides = [1, 1]} : vector<8x384xf32> to vector<8x128xf32>
    %159 = vector.extract_strided_slice %149 {offsets = [0, 384], sizes = [8, 128], strides = [1, 1]} : vector<8x512xf32> to vector<8x128xf32>
    %160 = math.tanh %159 : vector<8x128xf32>
    %161 = arith.mulf %157, %137 : vector<8x128xf32>
    %162 = arith.mulf %156, %160 : vector<8x128xf32>
    %163 = arith.addf %161, %162 : vector<8x128xf32>
    %164 = math.tanh %163 : vector<8x128xf32>
    %165 = arith.mulf %158, %164 : vector<8x128xf32>
    %166 = arith.index_cast %c5_i32 : i32 to index
    %c0_50 = arith.constant 0 : index
    %c0_51 = arith.constant 0 : index
    %167 = vector.load %arg7[%166, %c0_50, %c0_51] : memref<8x8x128xf32, #tpu.memory_space<vmem>>, vector<1x8x128xf32>
    %168 = vector.shape_cast %167 : vector<1x8x128xf32> to vector<8x128xf32>
    %169 = vector.shape_cast %165 : vector<8x128xf32> to vector<1x8x128xf32>
    tpu.vector_store %arg7[%166, %c0_50, %c0_51], %169 {strides = array<i32>} : memref<8x8x128xf32, #tpu.memory_space<vmem>>, vector<1x8x128xf32>,
    %c6_i32 = arith.constant 6 : i32
    %170 = arith.index_cast %c6_i32 : i32 to index
    %c0_52 = arith.constant 0 : index
    %c0_53 = arith.constant 0 : index
    %171 = vector.load %arg12[%170, %c0_52, %c0_53] : memref<8x8x512xf32, #tpu.memory_space<vmem>>, vector<1x8x512xf32>
    %172 = vector.shape_cast %171 : vector<1x8x512xf32> to vector<8x512xf32>
    %173 = arith.truncf %165 : vector<8x128xf32> to vector<8x128xbf16>
    %cst_54 = arith.constant dense<0.000000e+00> : vector<8x512xf32>
    %174 = tpu.matmul %173, %11, %cst_54 {dimension_numbers = #tpu.dot_dimension_numbers<[1], [0], [0], [1], [0, 0, 1, 1], [], []>} : vector<8x128xbf16>, vector<128x512xbf16>, vector<8x512xf32> -> vector<8x512xf32>
    %175 = arith.addf %172, %174 : vector<8x512xf32>
    %176 = vector.extract_strided_slice %175 {offsets = [0, 0], sizes = [8, 384], strides = [1, 1]} : vector<8x512xf32> to vector<8x384xf32>
    %177 = arith.negf %176 : vector<8x384xf32>
    %178 = math.exp %177 : vector<8x384xf32>
    %cst_55 = arith.constant 1.000000e+00 : f32
    %179 = vector.broadcast %cst_55 : f32 to vector<8x384xf32>
    %180 = arith.addf %179, %178 : vector<8x384xf32>
    %181 = arith.divf %179, %180 : vector<8x384xf32>
    %182 = vector.extract_strided_slice %181 {offsets = [0, 0], sizes = [8, 128], strides = [1, 1]} : vector<8x384xf32> to vector<8x128xf32>
    %183 = vector.extract_strided_slice %181 {offsets = [0, 128], sizes = [8, 128], strides = [1, 1]} : vector<8x384xf32> to vector<8x128xf32>
    %184 = vector.extract_strided_slice %181 {offsets = [0, 256], sizes = [8, 128], strides = [1, 1]} : vector<8x384xf32> to vector<8x128xf32>
    %185 = vector.extract_strided_slice %175 {offsets = [0, 384], sizes = [8, 128], strides = [1, 1]} : vector<8x512xf32> to vector<8x128xf32>
    %186 = math.tanh %185 : vector<8x128xf32>
    %187 = arith.mulf %183, %163 : vector<8x128xf32>
    %188 = arith.mulf %182, %186 : vector<8x128xf32>
    %189 = arith.addf %187, %188 : vector<8x128xf32>
    %190 = math.tanh %189 : vector<8x128xf32>
    %191 = arith.mulf %184, %190 : vector<8x128xf32>
    %192 = arith.index_cast %c6_i32 : i32 to index
    %c0_56 = arith.constant 0 : index
    %c0_57 = arith.constant 0 : index
    %193 = vector.load %arg7[%192, %c0_56, %c0_57] : memref<8x8x128xf32, #tpu.memory_space<vmem>>, vector<1x8x128xf32>
    %194 = vector.shape_cast %193 : vector<1x8x128xf32> to vector<8x128xf32>
    %195 = vector.shape_cast %191 : vector<8x128xf32> to vector<1x8x128xf32>
    tpu.vector_store %arg7[%192, %c0_56, %c0_57], %195 {strides = array<i32>} : memref<8x8x128xf32, #tpu.memory_space<vmem>>, vector<1x8x128xf32>,
    %c7_i32 = arith.constant 7 : i32
    %196 = arith.index_cast %c7_i32 : i32 to index
    %c0_58 = arith.constant 0 : index
    %c0_59 = arith.constant 0 : index
    %197 = vector.load %arg12[%196, %c0_58, %c0_59] : memref<8x8x512xf32, #tpu.memory_space<vmem>>, vector<1x8x512xf32>
    %198 = vector.shape_cast %197 : vector<1x8x512xf32> to vector<8x512xf32>
    %199 = arith.truncf %191 : vector<8x128xf32> to vector<8x128xbf16>
    %cst_60 = arith.constant dense<0.000000e+00> : vector<8x512xf32>
    %200 = tpu.matmul %199, %11, %cst_60 {dimension_numbers = #tpu.dot_dimension_numbers<[1], [0], [0], [1], [0, 0, 1, 1], [], []>} : vector<8x128xbf16>, vector<128x512xbf16>, vector<8x512xf32> -> vector<8x512xf32>
    %201 = arith.addf %198, %200 : vector<8x512xf32>
    %202 = vector.extract_strided_slice %201 {offsets = [0, 0], sizes = [8, 384], strides = [1, 1]} : vector<8x512xf32> to vector<8x384xf32>
    %203 = arith.negf %202 : vector<8x384xf32>
    %204 = math.exp %203 : vector<8x384xf32>
    %cst_61 = arith.constant 1.000000e+00 : f32
    %205 = vector.broadcast %cst_61 : f32 to vector<8x384xf32>
    %206 = arith.addf %205, %204 : vector<8x384xf32>
    %207 = arith.divf %205, %206 : vector<8x384xf32>
    %208 = vector.extract_strided_slice %207 {offsets = [0, 0], sizes = [8, 128], strides = [1, 1]} : vector<8x384xf32> to vector<8x128xf32>
    %209 = vector.extract_strided_slice %207 {offsets = [0, 128], sizes = [8, 128], strides = [1, 1]} : vector<8x384xf32> to vector<8x128xf32>
    %210 = vector.extract_strided_slice %207 {offsets = [0, 256], sizes = [8, 128], strides = [1, 1]} : vector<8x384xf32> to vector<8x128xf32>
    %211 = vector.extract_strided_slice %201 {offsets = [0, 384], sizes = [8, 128], strides = [1, 1]} : vector<8x512xf32> to vector<8x128xf32>
    %212 = math.tanh %211 : vector<8x128xf32>
    %213 = arith.mulf %209, %189 : vector<8x128xf32>
    %214 = arith.mulf %208, %212 : vector<8x128xf32>
    %215 = arith.addf %213, %214 : vector<8x128xf32>
    %216 = math.tanh %215 : vector<8x128xf32>
    %217 = arith.mulf %210, %216 : vector<8x128xf32>
    %218 = arith.index_cast %c7_i32 : i32 to index
    %c0_62 = arith.constant 0 : index
    %c0_63 = arith.constant 0 : index
    %219 = vector.load %arg7[%218, %c0_62, %c0_63] : memref<8x8x128xf32, #tpu.memory_space<vmem>>, vector<1x8x128xf32>
    %220 = vector.shape_cast %219 : vector<1x8x128xf32> to vector<8x128xf32>
    %221 = vector.shape_cast %217 : vector<8x128xf32> to vector<1x8x128xf32>
    tpu.vector_store %arg7[%218, %c0_62, %c0_63], %221 {strides = array<i32>} : memref<8x8x128xf32, #tpu.memory_space<vmem>>, vector<1x8x128xf32>,
    %c8_i32 = arith.constant 8 : i32
    %c0_64 = arith.constant 0 : index
    %c0_65 = arith.constant 0 : index
    %222 = vector.load %arg10[%c0_64, %c0_65] : memref<8x128xf32, #tpu.memory_space<vmem>>, vector<8x128xf32>
    tpu.vector_store %arg10[%c0_64, %c0_65], %217 {strides = array<i32>} : memref<8x128xf32, #tpu.memory_space<vmem>>, vector<8x128xf32>,
    %c0_66 = arith.constant 0 : index
    %c0_67 = arith.constant 0 : index
    %223 = vector.load %arg11[%c0_66, %c0_67] : memref<8x128xf32, #tpu.memory_space<vmem>>, vector<8x128xf32>
    tpu.vector_store %arg11[%c0_66, %c0_67], %215 {strides = array<i32>} : memref<8x128xf32, #tpu.memory_space<vmem>>, vector<8x128xf32>,
    %c0_i32_68 = arith.constant 0 : i32
    %224 = arith.cmpi eq, %arg0, %c0_i32_68 : i32
    %225 = arith.extui %224 : i1 to i32
    %c0_i32_69 = arith.constant 0 : i32
    %226 = arith.cmpi ne, %225, %c0_i32_69 : i32
    scf.if %226 {
      %c0_70 = arith.constant 0 : index
      %c0_71 = arith.constant 0 : index
      %227 = vector.load %arg10[%c0_70, %c0_71] : memref<8x128xf32, #tpu.memory_space<vmem>>, vector<8x128xf32>
      %c0_72 = arith.constant 0 : index
      %c0_73 = arith.constant 0 : index
      %228 = vector.load %arg8[%c0_72, %c0_73] : memref<8x128xf32, #tpu.memory_space<vmem>>, vector<8x128xf32>
      tpu.vector_store %arg8[%c0_72, %c0_73], %227 {strides = array<i32>} : memref<8x128xf32, #tpu.memory_space<vmem>>, vector<8x128xf32>,
      %c0_74 = arith.constant 0 : index
      %c0_75 = arith.constant 0 : index
      %229 = vector.load %arg11[%c0_74, %c0_75] : memref<8x128xf32, #tpu.memory_space<vmem>>, vector<8x128xf32>
      %c0_76 = arith.constant 0 : index
      %c0_77 = arith.constant 0 : index
      %230 = vector.load %arg9[%c0_76, %c0_77] : memref<8x128xf32, #tpu.memory_space<vmem>>, vector<8x128xf32>
      tpu.vector_store %arg9[%c0_76, %c0_77], %229 {strides = array<i32>} : memref<8x128xf32, #tpu.memory_space<vmem>>, vector<8x128xf32>,
    } else {
    }
    return
  }
  func.func @transform_0(%arg0: i32) -> (i32, i32) {
    %c0_i32 = arith.constant 0 : i32
    %c0_i32_0 = arith.constant 0 : i32
    return %arg0, %c0_i32 : i32, i32
  }
  func.func @transform_1(%arg0: i32) -> (i32, i32) {
    %c0_i32 = arith.constant 0 : i32
    %c0_i32_0 = arith.constant 0 : i32
    %c0_i32_1 = arith.constant 0 : i32
    return %c0_i32, %c0_i32_0 : i32, i32
  }
  func.func @transform_2(%arg0: i32) -> (i32, i32) {
    %c0_i32 = arith.constant 0 : i32
    %c0_i32_0 = arith.constant 0 : i32
    %c0_i32_1 = arith.constant 0 : i32
    return %c0_i32, %c0_i32_0 : i32, i32
  }
  func.func @transform_3(%arg0: i32) -> (i32, i32) {
    %c0_i32 = arith.constant 0 : i32
    %c0_i32_0 = arith.constant 0 : i32
    %c0_i32_1 = arith.constant 0 : i32
    return %c0_i32, %c0_i32_0 : i32, i32
  }
  func.func @transform_4(%arg0: i32) -> (i32, i32) {
    %c0_i32 = arith.constant 0 : i32
    %c0_i32_0 = arith.constant 0 : i32
    %c0_i32_1 = arith.constant 0 : i32
    return %c0_i32, %c0_i32_0 : i32, i32
  }
  func.func @transform_5(%arg0: i32) -> (i32, i32) {
    %c0_i32 = arith.constant 0 : i32
    %c0_i32_0 = arith.constant 0 : i32
    %c0_i32_1 = arith.constant 0 : i32
    return %c0_i32, %c0_i32_0 : i32, i32
  }
  func.func @transform_6(%arg0: i32) -> (i32, i32, i32) {
    %c0_i32 = arith.constant 0 : i32
    %c0_i32_0 = arith.constant 0 : i32
    %c0_i32_1 = arith.constant 0 : i32
    return %arg0, %c0_i32, %c0_i32_0 : i32, i32, i32
  }
  func.func @transform_7(%arg0: i32) -> (i32, i32) {
    %c0_i32 = arith.constant 0 : i32
    %c0_i32_0 = arith.constant 0 : i32
    %c0_i32_1 = arith.constant 0 : i32
    return %c0_i32, %c0_i32_0 : i32, i32
  }
  func.func @transform_8(%arg0: i32) -> (i32, i32) {
    %c0_i32 = arith.constant 0 : i32
    %c0_i32_0 = arith.constant 0 : i32
    %c0_i32_1 = arith.constant 0 : i32
    return %c0_i32, %c0_i32_0 : i32, i32
  }
}

</mosaic_0001>

<bundles_post_ra>
// kernel: encoder_forward.2
= control target key start
LH: loop header
LB: loop body
LE: loop exit
PB: predicated region body
PF: predicated region fallthrough
CT: control target
= control target key end

     0   :  { %14 = vsyncpa [#allocation6], 0  ;;  %s3017_s0 = inlined_call_operand.hbm [shape: bf16[64,128], index: 0, kind: input, shape index: {}]   ;;  %s3018_s1 = inlined_call_operand.hbm [shape: bf16[128,512], index: 1, kind: input, shape index: {}]   ;;  %s3019_s2 = inlined_call_operand.hbm [shape: bf16[128,512], index: 2, kind: input, shape index: {}]   ;;  %s3020_s3 = inlined_call_operand.hbm [shape: f32[1,512], index: 3, kind: input, shape index: {}]   ;;  %s3021_s4 = inlined_call_operand.hbm [shape: f32[8,128], index: 4, kind: input, shape index: {}]   ;;  %s3022_s5 = inlined_call_operand.hbm [shape: f32[8,128], index: 5, kind: input, shape index: {}]   ;;  %s3023_s6 = inlined_call_operand.hbm [shape: bf16[8,8,128], index: 6, kind: output, shape index: {0}]   ;;  %s3024_s7 = inlined_call_operand.hbm [shape: f32[8,128], index: 7, kind: output, shape index: {1}]   ;;  %s3025_s8 = inlined_call_operand.hbm [shape: f32[8,128], index: 8, kind: output, shape index: {2}]  }
   0x1   :  { %15 = vsyncpa [#allocation9], 0 }
   0x2   :  { %16 = vsyncpa [#allocation12], 0 }
   0x3   :  { %17 = vsyncpa [#allocation15], 0 }
   0x4   :  { %18 = vsyncpa [#allocation7], 0 }
   0x5   :  { %19 = vsyncpa [#allocation18], 0  ;;  %s2306_s27 = smov [#allocation8]   ;;  %s2096_s9 = scalar_lea.hbm %s3018_s1, 4096 }
   0x6   :  { %s37_s28 = sshll.u32 %s2306_s27, 4  ;;  %p2097_p0 = scmp.ne.s32.totalorder %s3018_s1, %s2096_s9  ;;  %s38_s28 = int_to_ptr.vmem [resolvable:$true] %s37_s28 }
   0x7   :  { %p2100_p1 = scmp.lt.u32.totalorder %s2096_s9, %s3018_s1 }
   0x9   :  { %p2102_p2 = pnand %p2100_p1, %p2097_p0 }
   0xb   :  { %2105 = shalt.err (!%p2102_p2)
}
   0xc   :  { %s2106_s14 = scalar_lea.vmem %s38_s28, 4096  ;;  %p2111_p4 = scmp.lt.s32.totalorder %s38_s28, %s38_s28 }
   0xd   :  { %p2107_p3 = scmp.ne.s32.totalorder %s38_s28, %s2106_s14  ;;  %p2112_p5 = scmp.lt.s32.totalorder %s2106_s14, %s2106_s14 }
   0xf   :  { %p2113_p6 = por %p2112_p5, %p2111_p4 }
  0x11   :  { %p2114_p7 = pnand %p2113_p6, %p2107_p3 }
  0x13   :  { %2117 = shalt.err (!%p2114_p7)
}
  0x14   :  { %s2307_s15 = smov 256   ;;  %s2308_s16 = smov 16  }
  0x15   :  { %43 = dma.hbm_to_vmem [thread:$0]  %s3018_s1, 4096, %s38_s28, [#allocation9], %s2307_s15, %s2307_s15, %s2308_s16  }
  0x16   :  { %s2309_s19 = smov [#allocation11]   ;;  %s2310_s21 = smov [#allocation5]  }
  0x17   :  { %s62_s20 = sshll.u32 %s2309_s19, 4  ;;  %s25_s22 = sshll.u32 %s2310_s21, 4  ;;  %s63_s20 = int_to_ptr.vmem [resolvable:$true] %s62_s20  ;;  %s26_s22 = int_to_ptr.vmem [resolvable:$true] %s25_s22 }
  0x18   :  { %s2118_s25 = scalar_lea.hbm %s3020_s3, 64 }
  0x19   :  { %p2119_p8 = scmp.ne.s32.totalorder %s3020_s3, %s2118_s25  ;;  %p2122_p9 = scmp.lt.u32.totalorder %s2118_s25, %s3020_s3 }
  0x1b   :  { %p2124_p10 = pnand %p2122_p9, %p2119_p8 }
  0x1d   :  { %2127 = shalt.err (!%p2124_p10)
}
  0x1e   :  { %s2128_s1 = scalar_lea.vmem %s63_s20, 64  ;;  %p2133_p12 = scmp.lt.s32.totalorder %s63_s20, %s63_s20 }
  0x1f   :  { %p2129_p11 = scmp.ne.s32.totalorder %s63_s20, %s2128_s1  ;;  %p2134_p13 = scmp.lt.s32.totalorder %s2128_s1, %s2128_s1 }
  0x21   :  { %p2135_p0 = por %p2134_p13, %p2133_p12 }
  0x23   :  { %p2136_p1 = pnand %p2135_p0, %p2129_p11 }
  0x25   :  { %2139 = shalt.err (!%p2136_p1)
}
  0x26   :  { %65 = dma.hbm_to_vmem [thread:$0]  %s3020_s3, 64, %s63_s20, [#allocation12]  }
  0x27   :  { %s2140_s12 = scalar_lea.hbm %s3017_s0, 512 }
  0x28   :  { %p2141_p2 = scmp.ne.s32.totalorder %s3017_s0, %s2140_s12  ;;  %p2144_p3 = scmp.lt.u32.totalorder %s2140_s12, %s3017_s0 }
  0x2a   :  { %p2146_p4 = pnand %p2144_p3, %p2141_p2 }
  0x2c   :  { %2149 = shalt.err (!%p2146_p4)
}
  0x2d   :  { %s2150_s19 = scalar_lea.vmem %s26_s22, 512  ;;  %p2155_p6 = scmp.lt.s32.totalorder %s26_s22, %s26_s22 }
  0x2e   :  { %p2151_p5 = scmp.ne.s32.totalorder %s26_s22, %s2150_s19  ;;  %p2156_p7 = scmp.lt.s32.totalorder %s2150_s19, %s2150_s19 }
  0x30   :  { %p2157_p8 = por %p2156_p7, %p2155_p6 }
  0x32   :  { %p2158_p9 = pnand %p2157_p8, %p2151_p5 }
  0x34   :  { %2161 = shalt.err (!%p2158_p9)
}
  0x35   :  { %s2311_s3 = smov 64   ;;  %s2312_s20 = smov 4  }
  0x36   :  { %31 = dma.hbm_to_vmem [thread:$0]  %s3017_s0, 512, %s26_s22, [#allocation6], %s2311_s3, %s2311_s3, %s2312_s20  }
  0x37   :  { %s2313_s24 = smov [#allocation10]   ;;  %s2314_s26 = smov [#allocation13]  }
  0x38   :  { %s49_s25 = sshll.u32 %s2313_s24, 4  ;;  %s72_s27 = sshll.u32 %s2314_s26, 4  ;;  %s50_s25 = int_to_ptr.vmem [resolvable:$true] %s49_s25  ;;  %s73_s27 = int_to_ptr.vmem [resolvable:$true] %s72_s27 }
  0x39   :  { %s2162_s1 = scalar_lea.hbm %s3019_s2, 4096 }
  0x3a   :  { %p2163_p10 = scmp.ne.s32.totalorder %s3019_s2, %s2162_s1  ;;  %p2166_p11 = scmp.lt.u32.totalorder %s2162_s1, %s3019_s2 }
  0x3c   :  { %p2168_p12 = pnand %p2166_p11, %p2163_p10 }
  0x3e   :  { %2171 = shalt.err (!%p2168_p12)
}
  0x3f   :  { %s2172_s0 = scalar_lea.vmem %s50_s25, 4096  ;;  %p2177_p0 = scmp.lt.s32.totalorder %s50_s25, %s50_s25 }
  0x40   :  { %p2173_p13 = scmp.ne.s32.totalorder %s50_s25, %s2172_s0  ;;  %p2178_p1 = scmp.lt.s32.totalorder %s2172_s0, %s2172_s0 }
  0x42   :  { %p2179_p2 = por %p2178_p1, %p2177_p0 }
  0x44   :  { %p2180_p3 = pnand %p2179_p2, %p2173_p13 }
  0x46   :  { %2183 = shalt.err (!%p2180_p3)
}
  0x47   :  { %55 = dma.hbm_to_vmem [thread:$0]  %s3019_s2, 4096, %s50_s25, [#allocation9], %s2307_s15, %s2307_s15, %s2308_s16  }
  0x48   :  { %s2184_s17 = scalar_lea.hbm %s3021_s4, 128 }
  0x49   :  { %p2185_p4 = scmp.ne.s32.totalorder %s3021_s4, %s2184_s17  ;;  %p2188_p5 = scmp.lt.u32.totalorder %s2184_s17, %s3021_s4 }
  0x4b   :  { %p2190_p6 = pnand %p2188_p5, %p2185_p4 }
  0x4d   :  { %2193 = shalt.err (!%p2190_p6)
}
  0x4e   :  { %s2194_s24 = scalar_lea.vmem %s73_s27, 128  ;;  %p2199_p8 = scmp.lt.s32.totalorder %s73_s27, %s73_s27 }
  0x4f   :  { %p2195_p7 = scmp.ne.s32.totalorder %s73_s27, %s2194_s24  ;;  %p2200_p9 = scmp.lt.s32.totalorder %s2194_s24, %s2194_s24 }
  0x51   :  { %p2201_p10 = por %p2200_p9, %p2199_p8 }
  0x53   :  { %p2202_p11 = pnand %p2201_p10, %p2195_p7 }
  0x55   :  { %2205 = shalt.err (!%p2202_p11)
}
  0x56   :  { %75 = dma.hbm_to_vmem [thread:$0]  %s3021_s4, 128, %s73_s27, [#allocation12]  }
  0x57   :  { %s2315_s16 = smov [#allocation14]   ;;  %s2206_s30 = scalar_lea.hbm %s3022_s5, 128 }
  0x58   :  { %s82_s25 = sshll.u32 %s2315_s16, 4  ;;  %p2207_p12 = scmp.ne.s32.totalorder %s3022_s5, %s2206_s30  ;;  %s83_s25 = int_to_ptr.vmem [resolvable:$true] %s82_s25 }
  0x59   :  { %p2210_p13 = scmp.lt.u32.totalorder %s2206_s30, %s3022_s5 }
  0x5b   :  { %p2212_p0 = pnand %p2210_p13, %p2207_p12 }
  0x5d   :  { %2215 = shalt.err (!%p2212_p0)
}
  0x5e   :  { %s2216_s11 = scalar_lea.vmem %s83_s25, 128  ;;  %p2221_p2 = scmp.lt.s32.totalorder %s83_s25, %s83_s25 }
  0x5f   :  { %p2217_p1 = scmp.ne.s32.totalorder %s83_s25, %s2216_s11  ;;  %p2222_p3 = scmp.lt.s32.totalorder %s2216_s11, %s2216_s11 }
  0x61   :  { %p2223_p4 = por %p2222_p3, %p2221_p2 }
  0x63   :  { %p2224_p5 = pnand %p2223_p4, %p2217_p1 }
  0x65   :  { %2227 = shalt.err (!%p2224_p5)
}
  0x66   :  { %85 = dma.hbm_to_vmem [thread:$0]  %s3022_s5, 128, %s83_s25, [#allocation15]  }
  0x67   :  { %2294 = dma.done.wait [#allocation6], 512  }
  0x68   :  { %2295 = vsyncadd [#allocation6], 4294966784 }
  0x69   :  { %2296 = dma.done.wait [#allocation9], 8192  }
  0x6a   :  { %2297 = vsyncadd [#allocation9], 4294959104 }
  0x6b   :  { %2298 = dma.done.wait [#allocation12], 192  }
  0x6c   :  { %2299 = vsyncadd [#allocation12], 4294967104 }
  0x6d   :  { %2300 = dma.done.wait [#allocation15], 128  }
  0x6e   :  { %2301 = vsyncadd [#allocation15], 4294967168  ;;  %v3026_v0 = vmov 0   ;;  %v1836_v1 = vld [vmem:[#allocation8 + $0x4] ss:$16 sps:$4 sm:$0xff]   ;;  %v1897_v44 = vld [vmem:[#allocation5 + $0x8] sm:$0xff]  }
  0x6f   :  { %391 = vmatprep.mubr.bf16.mxu0 %v3026_v0  ;;  %464 = vmatprep.mubr.bf16.mxu1 %v3026_v0  ;;  %v1838_v2 = vld [vmem:[#allocation8 + $0xc] ss:$16 sps:$4 sm:$0xff]   ;;  %v1840_v3 = vld [vmem:[#allocation8] ss:$16 sps:$4 sm:$0xff]   ;;  %v1841_v4 = vld [vmem:[#allocation8 + $0x8] ss:$16 sps:$4 sm:$0xff]  }
  0x70   :  { %359 = vmatprep.subr.bf16.mxu0 %v1836_v1  ;;  %432 = vmatprep.subr.bf16.mxu1 %v1838_v2  ;;  %v1842_v5 = vld [vmem:[#allocation8 + $0x24] ss:$16 sps:$4 sm:$0xff]   ;;  %v1844_v6 = vld [vmem:[#allocation8 + $0x2c] ss:$16 sps:$4 sm:$0xff]   ;;  %v1846_v7 = vld [vmem:[#allocation8 + $0x20] ss:$16 sps:$4 sm:$0xff]  }
  0x71   :  { %360 = vmatpush1.bf16.msra.mxu0 %v1840_v3  ;;  %433 = vmatpush1.bf16.msra.mxu1 %v1841_v4  ;;  %v1847_v8 = vld [vmem:[#allocation8 + $0x28] ss:$16 sps:$4 sm:$0xff]   ;;  %v1848_v9 = vld [vmem:[#allocation8 + $0x44] ss:$16 sps:$4 sm:$0xff]   ;;  %v1850_v10 = vld [vmem:[#allocation8 + $0x4c] ss:$16 sps:$4 sm:$0xff]  }
  0x72   :  { %361 = vmatprep.subr.bf16.mxu0 %v1842_v5  ;;  %434 = vmatprep.subr.bf16.mxu1 %v1844_v6  ;;  %v1852_v11 = vld [vmem:[#allocation8 + $0x40] ss:$16 sps:$4 sm:$0xff]   ;;  %v1853_v12 = vld [vmem:[#allocation8 + $0x48] ss:$16 sps:$4 sm:$0xff]   ;;  %v1854_v13 = vld [vmem:[#allocation8 + $0x64] ss:$16 sps:$4 sm:$0xff]  }
  0x73   :  { %v1856_v14 = vld [vmem:[#allocation8 + $0x6c] ss:$16 sps:$4 sm:$0xff]   ;;  %v1858_v15 = vld [vmem:[#allocation8 + $0x60] ss:$16 sps:$4 sm:$0xff]   ;;  %v1859_v16 = vld [vmem:[#allocation8 + $0x68] ss:$16 sps:$4 sm:$0xff]  }
  0x74   :  { %v1860_v17 = vld [vmem:[#allocation8 + $0x84] ss:$16 sps:$4 sm:$0xff]   ;;  %v1862_v18 = vld [vmem:[#allocation8 + $0x8c] ss:$16 sps:$4 sm:$0xff]   ;;  %v1864_v19 = vld [vmem:[#allocation8 + $0x80] ss:$16 sps:$4 sm:$0xff]  }
  0x75   :  { %362 = vmatpush1.bf16.msra.mxu0 %v1846_v7  ;;  %435 = vmatpush1.bf16.msra.mxu1 %v1847_v8  ;;  %v1865_v20 = vld [vmem:[#allocation8 + $0x88] ss:$16 sps:$4 sm:$0xff]   ;;  %v1866_v21 = vld [vmem:[#allocation8 + $0xa4] ss:$16 sps:$4 sm:$0xff]   ;;  %v1868_v22 = vld [vmem:[#allocation8 + $0xac] ss:$16 sps:$4 sm:$0xff]   ;;  %v155_v8 = vlaneseq }
  0x76   :  { %363 = vmatprep.subr.bf16.mxu0 %v1848_v9  ;;  %436 = vmatprep.subr.bf16.mxu1 %v1850_v10  ;;  %v1870_v23 = vld [vmem:[#allocation8 + $0xa0] ss:$16 sps:$4 sm:$0xff]   ;;  %v1871_v24 = vld [vmem:[#allocation8 + $0xa8] ss:$16 sps:$4 sm:$0xff]   ;;  %v1872_v25 = vld [vmem:[#allocation8 + $0xc4] ss:$16 sps:$4 sm:$0xff]  }
  0x77   :  { %v1874_v26 = vld [vmem:[#allocation8 + $0xcc] ss:$16 sps:$4 sm:$0xff]   ;;  %v1876_v27 = vld [vmem:[#allocation8 + $0xc0] ss:$16 sps:$4 sm:$0xff]   ;;  %v1877_v28 = vld [vmem:[#allocation8 + $0xc8] ss:$16 sps:$4 sm:$0xff]  }
  0x78   :  { %v1878_v29 = vld [vmem:[#allocation8 + $0xe4] ss:$16 sps:$4 sm:$0xff]   ;;  %v1880_v30 = vld [vmem:[#allocation8 + $0xec] ss:$16 sps:$4 sm:$0xff]   ;;  %v1882_v31 = vld [vmem:[#allocation8 + $0xe0] ss:$16 sps:$4 sm:$0xff]  }
  0x79   :  { %364 = vmatpush1.bf16.msra.mxu0 %v1852_v11  ;;  %437 = vmatpush1.bf16.msra.mxu1 %v1853_v12  ;;  %v1883_v32 = vld [vmem:[#allocation8 + $0xe8] ss:$16 sps:$4 sm:$0xff]   ;;  %v2448_v33 = vld [vmem:[#allocation10 + $0x4] ss:$16 sps:$4 sm:$0xff]   ;;  %v2450_v34 = vld [vmem:[#allocation10 + $0xc] ss:$16 sps:$4 sm:$0xff]  }
  0x7a   :  { %365 = vmatprep.subr.bf16.mxu0 %v1854_v13  ;;  %438 = vmatprep.subr.bf16.mxu1 %v1856_v14  ;;  %v1884_v35 = vld [vmem:[#allocation5] sm:$0xff]   ;;  %v2454_v37 = vld [vmem:[#allocation10 + $0x8] ss:$16 sps:$4 sm:$0xff]   ;;  %v2460_v39 = vld [vmem:[#allocation10 + $0x2c] ss:$16 sps:$4 sm:$0xff]   ;;  %v156_v9 = vshrl.u32 %v155_v8, 7 }
  0x7b   :  { %v2452_v36 = vld [vmem:[#allocation10] ss:$16 sps:$4 sm:$0xff]   ;;  %v2458_v38 = vld [vmem:[#allocation10 + $0x24] ss:$16 sps:$4 sm:$0xff]   ;;  %v2466_v41 = vld [vmem:[#allocation10 + $0x28] ss:$16 sps:$4 sm:$0xff]  }
  0x7c   :  { %v2462_v40 = vld [vmem:[#allocation10 + $0x20] ss:$16 sps:$4 sm:$0xff]   ;;  %v2470_v42 = vld [vmem:[#allocation10 + $0x44] ss:$16 sps:$4 sm:$0xff]   ;;  %v2472_v43 = vld [vmem:[#allocation10 + $0x4c] ss:$16 sps:$4 sm:$0xff]  }
  0x7d   :  { %366 = vmatpush1.bf16.msra.mxu0 %v1858_v15  ;;  %439 = vmatpush1.bf16.msra.mxu1 %v1859_v16  ;;  %v2476_v45 = vld [vmem:[#allocation10 + $0x40] ss:$16 sps:$4 sm:$0xff]   ;;  %v2478_v46 = vld [vmem:[#allocation10 + $0x48] ss:$16 sps:$4 sm:$0xff]   ;;  %v2482_v47 = vld [vmem:[#allocation10 + $0x64] ss:$16 sps:$4 sm:$0xff]  }
  0x7e   :  { %367 = vmatprep.subr.bf16.mxu0 %v1860_v17  ;;  %440 = vmatprep.subr.bf16.mxu1 %v1862_v18  ;;  %v2486_v48 = vld [vmem:[#allocation10 + $0x6c] ss:$16 sps:$4 sm:$0xff]   ;;  %v2488_v49 = vld [vmem:[#allocation10 + $0x60] ss:$16 sps:$4 sm:$0xff]   ;;  %v2490_v50 = vld [vmem:[#allocation10 + $0x68] ss:$16 sps:$4 sm:$0xff]  }
  0x7f   :  { %v2494_v51 = vld [vmem:[#allocation10 + $0x84] ss:$16 sps:$4 sm:$0xff]   ;;  %v2498_v52 = vld [vmem:[#allocation10 + $0x8c] ss:$16 sps:$4 sm:$0xff]   ;;  %v2504_v54 = vld [vmem:[#allocation10 + $0x80] ss:$16 sps:$4 sm:$0xff]  }
  0x80   :  { %v1910_v53 = vld [vmem:[#allocation5 + $0x10] sm:$0xff]   ;;  %v2506_v55 = vld [vmem:[#allocation10 + $0x88] ss:$16 sps:$4 sm:$0xff]   ;;  %v2512_v57 = vld [vmem:[#allocation10 + $0xac] ss:$16 sps:$4 sm:$0xff]   ;;  %v165_v10 = vsub.s32 2, %v156_v9 }
  0x81   :  { %368 = vmatpush1.bf16.msra.mxu0 %v1864_v19  ;;  %441 = vmatpush1.bf16.msra.mxu1 %v1865_v20  ;;  %v2510_v56 = vld [vmem:[#allocation10 + $0xa4] ss:$16 sps:$4 sm:$0xff]   ;;  %v2516_v58 = vld [vmem:[#allocation10 + $0xa0] ss:$16 sps:$4 sm:$0xff]   ;;  %v2518_v59 = vld [vmem:[#allocation10 + $0xa8] ss:$16 sps:$4 sm:$0xff]  }
  0x82   :  { %369 = vmatprep.subr.bf16.mxu0 %v1866_v21  ;;  %442 = vmatprep.subr.bf16.mxu1 %v1868_v22  ;;  %v2522_v60 = vld [vmem:[#allocation10 + $0xc4] ss:$16 sps:$4 sm:$0xff]   ;;  %v2524_v61 = vld [vmem:[#allocation10 + $0xcc] ss:$16 sps:$4 sm:$0xff]   ;;  %v2530_v63 = vld [vmem:[#allocation10 + $0xc0] ss:$16 sps:$4 sm:$0xff]  }
  0x83   :  { %v1923_v62 = vld [vmem:[#allocation5 + $0x18] sm:$0xff]   ;;  %v2536_v2 = vld [vmem:[#allocation10 + $0xe4] ss:$16 sps:$4 sm:$0xff]   ;;  %v2542_v4 = vld [vmem:[#allocation10 + $0xe0] ss:$16 sps:$4 sm:$0xff]   ;;  %v169_v11 = vsub.s32 3, %v156_v9 }
  0x84   :  { %v2532_v1 = vld [vmem:[#allocation10 + $0xc8] ss:$16 sps:$4 sm:$0xff]   ;;  %v2538_v3 = vld [vmem:[#allocation10 + $0xec] ss:$16 sps:$4 sm:$0xff]   ;;  %v157_v12 = vsub.s32 0, %v156_v9  ;;  %v161_v14 = vsub.s32 1, %v156_v9 }
  0x85   :  { %370 = vmatpush1.bf16.msra.mxu0 %v1870_v23  ;;  %443 = vmatpush1.bf16.msra.mxu1 %v1871_v24  ;;  %v2544_v5 = vld [vmem:[#allocation10 + $0xe8] ss:$16 sps:$4 sm:$0xff]   ;;  %v153_v13 = vld [vmem:[#allocation11] sm:$0xf]  ;;  %s2317_s5 = smov [#allocation17]   ;;  %s2318_s22 = smov [#allocation19]  }
  0x86   :  { %371 = vmatprep.subr.bf16.mxu0 %v1872_v25  ;;  %444 = vmatprep.subr.bf16.mxu1 %v1874_v26  ;;  %v109_v6 = vld [vmem:[#allocation13] sm:$0xff]  ;;  %v2588_v15 = vrot.slane %v153_v13, %v165_v10  ;;  %v2594_v18 = vrot.slane %v153_v13, %v169_v11  ;;  %v158_v19 = vrot.slane %v153_v13, %v157_v12  ;;  %s1701_s0 = sshll.u32 %s2317_s5, 4  ;;  %s1711_s12 = sshll.u32 %s2318_s22, 4  ;;  %s1702_s0 = int_to_ptr.vmem [resolvable:$true] %s1701_s0  ;;  %s2964_s12 = int_to_ptr.vmem [resolvable:$true] %s1711_s12 }
  0x87   :  { %v575_v7 = vpack.c.bf16 %v109_v6, %v109_v6  ;;  %v162_v22 = vrot.slane %v153_v13, %v161_v14  ;;  %s2319_s13 = smov [#allocation16]   ;;  %s2228_s17 = scalar_lea.vmem %s1702_s0, 128 }
  0x88   :  { %s1688_s14 = sshll.u32 %s2319_s13, 4  ;;  %p2229_p6 = scmp.ne.s32.totalorder %s1702_s0, %s2228_s17  ;;  %s2966_s14 = int_to_ptr.vmem [resolvable:$true] %s1688_s14 }
  0x89   :  { %372 = vmatpush1.bf16.msra.mxu0 %v1876_v27  ;;  %445 = vmatpush1.bf16.msra.mxu1 %v1877_v28  ;;  %p2233_p7 = scmp.lt.s32.totalorder %s1702_s0, %s1702_s0  ;;  %p2234_p8 = scmp.lt.s32.totalorder %s2228_s17, %s2228_s17 }
  0x8a   :  { %373 = vmatprep.subr.bf16.mxu0 %v1878_v29  ;;  %446 = vmatprep.subr.bf16.mxu1 %v1880_v30 }
  0x8b   :  { %p2235_p9 = por %p2234_p8, %p2233_p7 }
  0x8d   :  { %374 = vmatpush1.bf16.msra.mxu0 %v1882_v31  ;;  %447 = vmatpush1.bf16.msra.mxu1 %v1883_v32  ;;  %p2236_p10 = pnand %p2235_p9, %p2229_p6 }
  0x8e   :  { %736 = vmatprep.subr.bf16.mxu0 %v2448_v33  ;;  %777 = vmatprep.subr.bf16.mxu1 %v2450_v34 }
  0x90   :  { %392 = vmatmul.mubr.bf16.vlgmr.msra.gmra.mrb[0].mxu0 %v1884_v35  ;;  %465 = vmatmul.mubr.bf16.vlgmr.msra.gmra.mrb[0].mxu1 %v1884_v35 }
  0x91   :  { %737 = vmatpush1.bf16.msra.mxu0 %v2452_v36  ;;  %778 = vmatpush1.bf16.msra.mxu1 %v2454_v37 }
  0x92   :  { %738 = vmatprep.subr.bf16.mxu0 %v2458_v38  ;;  %779 = vmatprep.subr.bf16.mxu1 %v2460_v39 }
  0x93   :  { %401 = vmatprep.mubr.bf16.mxu0 %v3026_v0  ;;  %474 = vmatprep.mubr.bf16.mxu1 %v3026_v0 }
  0x95   :  { %739 = vmatpush1.bf16.msra.mxu0 %v2462_v40  ;;  %780 = vmatpush1.bf16.msra.mxu1 %v2466_v41 }
  0x96   :  { %740 = vmatprep.subr.bf16.mxu0 %v2470_v42  ;;  %781 = vmatprep.subr.bf16.mxu1 %v2472_v43 }
  0x98   :  { %402 = vmatmul.mubr.bf16.gmra.mrb[4].mxu0 %v1897_v44  ;;  %475 = vmatmul.mubr.bf16.gmra.mrb[4].mxu1 %v1897_v44 }
  0x99   :  { %741 = vmatpush1.bf16.msra.mxu0 %v2476_v45  ;;  %782 = vmatpush1.bf16.msra.mxu1 %v2478_v46 }
  0x9a   :  { %742 = vmatprep.subr.bf16.mxu0 %v2482_v47  ;;  %783 = vmatprep.subr.bf16.mxu1 %v2486_v48 }
  0x9b   :  { %411 = vmatprep.mubr.bf16.mxu0 %v3026_v0  ;;  %484 = vmatprep.mubr.bf16.mxu1 %v3026_v0 }
  0x9d   :  { %743 = vmatpush1.bf16.msra.mxu0 %v2488_v49  ;;  %784 = vmatpush1.bf16.msra.mxu1 %v2490_v50 }
  0x9e   :  { %744 = vmatprep.subr.bf16.mxu0 %v2494_v51  ;;  %785 = vmatprep.subr.bf16.mxu1 %v2498_v52 }
  0xa0   :  { %412 = vmatmul.mubr.bf16.gmra.mrb[8].mxu0 %v1910_v53  ;;  %485 = vmatmul.mubr.bf16.gmra.mrb[8].mxu1 %v1910_v53 }
  0xa1   :  { %745 = vmatpush1.bf16.msra.mxu0 %v2504_v54  ;;  %786 = vmatpush1.bf16.msra.mxu1 %v2506_v55 }
  0xa2   :  { %746 = vmatprep.subr.bf16.mxu0 %v2510_v56  ;;  %787 = vmatprep.subr.bf16.mxu1 %v2512_v57 }
  0xa3   :  { %421 = vmatprep.mubr.bf16.mxu0 %v3026_v0  ;;  %494 = vmatprep.mubr.bf16.mxu1 %v3026_v0 }
  0xa5   :  { %747 = vmatpush1.bf16.msra.mxu0 %v2516_v58  ;;  %788 = vmatpush1.bf16.msra.mxu1 %v2518_v59 }
  0xa6   :  { %748 = vmatprep.subr.bf16.mxu0 %v2522_v60  ;;  %789 = vmatprep.subr.bf16.mxu1 %v2524_v61 }
  0xa8   :  { %422 = vmatmul.mubr.bf16.gmra.mrb[12].mxu0 %v1923_v62  ;;  %495 = vmatmul.mubr.bf16.gmra.mrb[12].mxu1 %v1923_v62 }
  0xa9   :  { %749 = vmatpush1.bf16.msra.mxu0 %v2530_v63  ;;  %790 = vmatpush1.bf16.msra.mxu1 %v2532_v1 }
  0xaa   :  { %750 = vmatprep.subr.bf16.mxu0 %v2536_v2  ;;  %791 = vmatprep.subr.bf16.mxu1 %v2538_v3 }
  0xab   :  { %768 = vmatprep.mubr.bf16.mxu0 %v3026_v0  ;;  %809 = vmatprep.mubr.bf16.mxu1 %v3026_v0 }
  0xad   :  { %751 = vmatpush1.bf16.msra.mxu0 %v2542_v4  ;;  %792 = vmatpush1.bf16.msra.mxu1 %v2544_v5 }
  0xae   :  { %853 = vmatprep.subr.bf16.mxu0 %v2448_v33  ;;  %894 = vmatprep.subr.bf16.mxu1 %v2450_v34 }
  0xb0   :  { %769 = vmatmul.mubr.bf16.vlgmr.msra.gmra.mrb[16].mxu0 %v575_v7  ;;  %810 = vmatmul.mubr.bf16.vlgmr.msra.gmra.mrb[16].mxu1 %v575_v7 }
  0xb1   :  { %854 = vmatpush1.bf16.msra.mxu0 %v2452_v36  ;;  %895 = vmatpush1.bf16.msra.mxu1 %v2454_v37 }
  0xb2   :  { %855 = vmatprep.subr.bf16.mxu0 %v2458_v38  ;;  %896 = vmatprep.subr.bf16.mxu1 %v2460_v39 }
  0xb3   :  { %885 = vmatprep.mubr.bf16.mxu0 %v3026_v0  ;;  %926 = vmatprep.mubr.bf16.mxu1 %v3026_v0 }
  0xb5   :  { %856 = vmatpush1.bf16.msra.mxu0 %v2462_v40  ;;  %897 = vmatpush1.bf16.msra.mxu1 %v2466_v41 }
  0xb6   :  { %857 = vmatprep.subr.bf16.mxu0 %v2470_v42  ;;  %898 = vmatprep.subr.bf16.mxu1 %v2472_v43 }
  0xb9   :  { %858 = vmatpush1.bf16.msra.mxu0 %v2476_v45  ;;  %899 = vmatpush1.bf16.msra.mxu1 %v2478_v46 }
  0xba   :  { %859 = vmatprep.subr.bf16.mxu0 %v2482_v47  ;;  %900 = vmatprep.subr.bf16.mxu1 %v2486_v48 }
  0xbd   :  { %860 = vmatpush1.bf16.msra.mxu0 %v2488_v49  ;;  %901 = vmatpush1.bf16.msra.mxu1 %v2490_v50 }
  0xbe   :  { %861 = vmatprep.subr.bf16.mxu0 %v2494_v51  ;;  %902 = vmatprep.subr.bf16.mxu1 %v2498_v52 }
  0xc1   :  { %862 = vmatpush1.bf16.msra.mxu0 %v2504_v54  ;;  %903 = vmatpush1.bf16.msra.mxu1 %v2506_v55 }
  0xc2   :  { %863 = vmatprep.subr.bf16.mxu0 %v2510_v56  ;;  %904 = vmatprep.subr.bf16.mxu1 %v2512_v57 }
  0xc5   :  { %864 = vmatpush1.bf16.msra.mxu0 %v2516_v58  ;;  %905 = vmatpush1.bf16.msra.mxu1 %v2518_v59 }
  0xc6   :  { %865 = vmatprep.subr.bf16.mxu0 %v2522_v60  ;;  %906 = vmatprep.subr.bf16.mxu1 %v2524_v61 }
  0xc9   :  { %866 = vmatpush1.bf16.msra.mxu0 %v2530_v63  ;;  %907 = vmatpush1.bf16.msra.mxu1 %v2532_v1 }
  0xca   :  { %867 = vmatprep.subr.bf16.mxu0 %v2536_v2  ;;  %908 = vmatprep.subr.bf16.mxu1 %v2538_v3 }
  0xcd   :  { %868 = vmatpush1.bf16.msra.mxu0 %v2542_v4  ;;  %909 = vmatpush1.bf16.msra.mxu1 %v2544_v5 }
  0xce   :  { %971 = vmatprep.subr.bf16.mxu0 %v2448_v33  ;;  %1012 = vmatprep.subr.bf16.mxu1 %v2450_v34 }
 0x163   :  { %v2590_v16 = vpop.f32.mrb[0].mxu0  ;;  %v2592_v17 = vpop.f32.mrb[0].mxu1 }
 0x164   :  { %v395_v20 = vpop.f32.mrb[1].mxu0  ;;  %v468_v21 = vpop.f32.mrb[1].mxu1 }
 0x165   :  { %v397_v23 = vpop.f32.mrb[2].mxu0  ;;  %v470_v24 = vpop.f32.mrb[2].mxu1 }
 0x166   :  { %v2596_v25 = vadd.f32 %v397_v23, %v158_v19  ;;  %v399_v26 = vpop.f32.mrb[3].mxu0  ;;  %v2599_v27 = vadd.f32 %v470_v24, %v2588_v15  ;;  %v472_v28 = vpop.f32.mrb[3].mxu1 }
 0x167   :  { %v2601_v29 = vadd.f32 %v399_v26, %v162_v22  ;;  %v2604_v30 = vadd.f32 %v472_v28, %v2594_v18 }
 0x16b   :  { %v403_v31 = vpop.f32.mrb[4].mxu0  ;;  %v476_v32 = vpop.f32.mrb[4].mxu1 }
 0x16c   :  { %v2606_v35 = vadd.f32 %v403_v31, %v158_v19  ;;  %v405_v44 = vpop.f32.mrb[5].mxu0  ;;  %v2609_v53 = vadd.f32 %v476_v32, %v2588_v15  ;;  %v478_v62 = vpop.f32.mrb[5].mxu1 }
 0x16d   :  { %v2611_v6 = vadd.f32 %v405_v44, %v162_v22  ;;  %v407_v7 = vpop.f32.mrb[6].mxu0  ;;  %v2614_v8 = vadd.f32 %v478_v62, %v2594_v18  ;;  %v480_v9 = vpop.f32.mrb[6].mxu1 }
 0x16e   :  { %v2616_v10 = vadd.f32 %v407_v7, %v158_v19  ;;  %v409_v11 = vpop.f32.mrb[7].mxu0  ;;  %v2619_v12 = vadd.f32 %v480_v9, %v2588_v15  ;;  %v482_v13 = vpop.f32.mrb[7].mxu1 }
 0x16f   :  { %3028 = vst [vmem:[#allocation26_spill] sm:$0xff] %v2614_v8  ;;  %v2621_v14 = vadd.f32 %v409_v11, %v162_v22  ;;  %v2624_v23 = vadd.f32 %v482_v13, %v2594_v18 }
 0x170   :  { %3029 = vst [vmem:[#allocation27_spill] sm:$0xff] %v2616_v10  ;;  %3030 = vst [vmem:[#allocation28_spill] sm:$0xff] %v2619_v12 }
 0x171   :  { %3031 = vst [vmem:[#allocation29_spill] sm:$0xff] %v2621_v14  ;;  %3032 = vst [vmem:[#allocation30_spill] sm:$0xff] %v2624_v23 }
 0x173   :  { %v413_v24 = vpop.f32.mrb[8].mxu0  ;;  %v486_v26 = vpop.f32.mrb[8].mxu1 }
 0x174   :  { %v2626_v28 = vadd.f32 %v413_v24, %v158_v19  ;;  %v415_v31 = vpop.f32.mrb[9].mxu0  ;;  %v2629_v32 = vadd.f32 %v486_v26, %v2588_v15  ;;  %v488_v44 = vpop.f32.mrb[9].mxu1 }
 0x175   :  { %v2631_v62 = vadd.f32 %v415_v31, %v162_v22  ;;  %v417_v7 = vpop.f32.mrb[10].mxu0  ;;  %v2634_v9 = vadd.f32 %v488_v44, %v2594_v18  ;;  %v490_v11 = vpop.f32.mrb[10].mxu1 }
 0x176   :  { %3033 = vst [vmem:[#allocation31_spill] sm:$0xff] %v2626_v28  ;;  %3034 = vst [vmem:[#allocation32_spill] sm:$0xff] %v2629_v32  ;;  %v2636_v0 = vadd.f32 %v417_v7, %v158_v19  ;;  %v419_v13 = vpop.f32.mrb[11].mxu0  ;;  %v2639_v23 = vadd.f32 %v490_v11, %v2588_v15  ;;  %v492_v24 = vpop.f32.mrb[11].mxu1 }
 0x177   :  { %3035 = vst [vmem:[#allocation33_spill] sm:$0xff] %v2631_v62  ;;  %3036 = vst [vmem:[#allocation34_spill] sm:$0xff] %v2634_v9  ;;  %v2641_v28 = vadd.f32 %v419_v13, %v162_v22  ;;  %v2644_v26 = vadd.f32 %v492_v24, %v2594_v18 }
 0x178   :  { %3037 = vst [vmem:[#allocation35_spill] sm:$0xff] %v2636_v0  ;;  %3038 = vst [vmem:[#allocation36_spill] sm:$0xff] %v2639_v23 }
 0x179   :  { %3039 = vst [vmem:[#allocation37_spill] sm:$0xff] %v2641_v28  ;;  %3040 = vst [vmem:[#allocation38_spill] sm:$0xff] %v2644_v26 }
 0x17b   :  { %v423_v32 = vpop.f32.mrb[12].mxu0  ;;  %v496_v31 = vpop.f32.mrb[12].mxu1 }
 0x17c   :  { %v2646_v62 = vadd.f32 %v423_v32, %v158_v19  ;;  %v425_v14 = vpop.f32.mrb[13].mxu0  ;;  %v2649_v44 = vadd.f32 %v496_v31, %v2588_v15  ;;  %v498_v7 = vpop.f32.mrb[13].mxu1 }
 0x17d   :  { %v2651_v0 = vadd.f32 %v425_v14, %v162_v22  ;;  %v427_v9 = vpop.f32.mrb[14].mxu0  ;;  %v2654_v11 = vadd.f32 %v498_v7, %v2594_v18  ;;  %v500_v13 = vpop.f32.mrb[14].mxu1  ;;  %v394_v14 = vadd.f32 %v2590_v16, %v158_v19  ;;  %v396_v7 = vadd.f32 %v395_v20, %v162_v22 }
 0x17e   :  { %3041 = vst [vmem:[#allocation39_spill] sm:$0xff] %v2646_v62  ;;  %3042 = vst [vmem:[#allocation40_spill] sm:$0xff] %v2649_v44  ;;  %v2656_v28 = vadd.f32 %v427_v9, %v158_v19  ;;  %v429_v24 = vpop.f32.mrb[15].mxu0  ;;  %v2659_v26 = vadd.f32 %v500_v13, %v2588_v15  ;;  %v502_v32 = vpop.f32.mrb[15].mxu1 }
 0x17f   :  { %3043 = vst [vmem:[#allocation41_spill] sm:$0xff] %v2651_v0  ;;  %3044 = vst [vmem:[#allocation42_spill] sm:$0xff] %v2654_v11  ;;  %v2661_v62 = vadd.f32 %v429_v24, %v162_v22  ;;  %v2664_v31 = vadd.f32 %v502_v32, %v2594_v18  ;;  %v467_v0 = vadd.f32 %v2592_v17, %v2588_v15 }
 0x180   :  { %3045 = vst [vmem:[#allocation43_spill] sm:$0xff] %v2656_v28  ;;  %3046 = vst [vmem:[#allocation44_spill] sm:$0xff] %v2659_v26  ;;  %v469_v11 = vadd.f32 %v468_v21, %v2594_v18 }
 0x181   :  { %3047 = vst [vmem:[#allocation45_spill] sm:$0xff] %v2661_v62  ;;  %3048 = vst [vmem:[#allocation46_spill] sm:$0xff] %v2664_v31 }
 0x183   :  { %v770_v9 = vpop.f32.mrb[16].mxu0  ;;  %v811_v28 = vpop.f32.mrb[16].mxu1 }
 0x184   :  { %v818_v44 = vadd.f32 %v770_v9, %v394_v14  ;;  %v820_v23 = vadd.f32 %v811_v28, %v467_v0  ;;  %v772_v13 = vpop.f32.mrb[17].mxu0  ;;  %v813_v26 = vpop.f32.mrb[17].mxu1  ;;  %v111_v28 = vld [vmem:[#allocation14] sm:$0xff]  ;;  %v3049_v14 = vmov 0  }
 0x185   :  { %v819_v12 = vadd.f32 %v772_v13, %v396_v7  ;;  %v821_v24 = vadd.f32 %v813_v26, %v469_v11  ;;  %v774_v62 = vpop.f32.mrb[18].mxu0  ;;  %v815_v10 = vpop.f32.mrb[18].mxu1 }
 0x186   :  { %v1798_v32 = vmul.f32 -1.442695, %v818_v44  ;;  %v775_v31 = vpop.f32.mrb[19].mxu0  ;;  %v816_v8 = vpop.f32.mrb[19].mxu1  ;;  %v1800_v15 = vmul.f32 -1.442695, %v820_v23 }
 0x187   :  { %v1799_v16 = vmul.f32 -1.442695, %v819_v12 }
 0x188   :  { %1936 = vpow2.f32 %v1798_v32 }
 0x189   :  { %1938 = vpow2.f32 %v1799_v16 }
 0x18a   :  { %1940 = vtanh.f32 %v821_v24 }
 0x18b   :  { %1942 = vpow2.f32 %v1800_v15 }
 0x192   :  { %v1937_v17 = vpop.eup %1936 }
 0x193   :  { %v831_v19 = vadd.f32 1.0, %v1937_v17  ;;  %v1939_v18 = vpop.eup %1938 }
 0x194   :  { %v832_v0 = vadd.f32 1.0, %v1939_v18  ;;  %v1941_v20 = vpop.eup %1940 }
 0x195   :  { %1944 = vrcp.f32 %v831_v19  ;;  %v1943_v21 = vpop.eup %1942 }
 0x196   :  { %1946 = vrcp.f32 %v832_v0  ;;  %v833_v26 = vadd.f32 1.0, %v1943_v21 }
 0x198   :  { %1948 = vrcp.f32 %v833_v26 }
 0x19f   :  { %v1945_v22 = vpop.eup %1944 }
 0x1a0   :  { %v842_v10 = vmul.f32 %v1945_v22, %v1941_v20  ;;  %v1947_v62 = vpop.eup %1946 }
 0x1a1   :  { %v841_v8 = vmul.f32 %v1947_v62, %v111_v28 }
 0x1a2   :  { %v1949_v23 = vpop.eup %1948 }
 0x1a3   :  { %v2670_v12 = vadd.f32 %v842_v10, %v841_v8 }
 0x1a5   :  { %1950 = vtanh.f32 %v2670_v12 }
 0x1af   :  { %v1951_v44 = vpop.eup %1950 }
 0x1b0   :  { %v845_v11 = vmul.f32 %v1951_v44, %v1949_v23 }
 0x1b2   :  { %v846_v31 = vpack.c.bf16 %v845_v11, %v845_v11 }
 0x1b4   :  { %847 = vst [vmem:[#allocation16] sm:$0xf] %v846_v31  ;;  %886 = vmatmul.mubr.bf16.vlgmr.msra.gmra.mrb[20].mxu0 %v846_v31  ;;  %927 = vmatmul.mubr.bf16.vlgmr.msra.gmra.mrb[20].mxu1 %v846_v31 }
 0x1b5   :  { %972 = vmatpush1.bf16.msra.mxu0 %v2452_v36  ;;  %1013 = vmatpush1.bf16.msra.mxu1 %v2454_v37 }
 0x1b6   :  { %973 = vmatprep.subr.bf16.mxu0 %v2458_v38  ;;  %1014 = vmatprep.subr.bf16.mxu1 %v2460_v39 }
 0x1b7   :  { %1003 = vmatprep.mubr.bf16.mxu0 %v3049_v14  ;;  %1044 = vmatprep.mubr.bf16.mxu1 %v3049_v14 }
 0x1b9   :  { %974 = vmatpush1.bf16.msra.mxu0 %v2462_v40  ;;  %1015 = vmatpush1.bf16.msra.mxu1 %v2466_v41 }
 0x1ba   :  { %975 = vmatprep.subr.bf16.mxu0 %v2470_v42  ;;  %1016 = vmatprep.subr.bf16.mxu1 %v2472_v43 }
 0x1bd   :  { %976 = vmatpush1.bf16.msra.mxu0 %v2476_v45  ;;  %1017 = vmatpush1.bf16.msra.mxu1 %v2478_v46 }
 0x1be   :  { %977 = vmatprep.subr.bf16.mxu0 %v2482_v47  ;;  %1018 = vmatprep.subr.bf16.mxu1 %v2486_v48 }
 0x1c1   :  { %978 = vmatpush1.bf16.msra.mxu0 %v2488_v49  ;;  %1019 = vmatpush1.bf16.msra.mxu1 %v2490_v50 }
 0x1c2   :  { %979 = vmatprep.subr.bf16.mxu0 %v2494_v51  ;;  %1020 = vmatprep.subr.bf16.mxu1 %v2498_v52 }
 0x1c5   :  { %980 = vmatpush1.bf16.msra.mxu0 %v2504_v54  ;;  %1021 = vmatpush1.bf16.msra.mxu1 %v2506_v55 }
 0x1c6   :  { %981 = vmatprep.subr.bf16.mxu0 %v2510_v56  ;;  %1022 = vmatprep.subr.bf16.mxu1 %v2512_v57 }
 0x1c9   :  { %982 = vmatpush1.bf16.msra.mxu0 %v2516_v58  ;;  %1023 = vmatpush1.bf16.msra.mxu1 %v2518_v59 }
 0x1ca   :  { %983 = vmatprep.subr.bf16.mxu0 %v2522_v60  ;;  %1024 = vmatprep.subr.bf16.mxu1 %v2524_v61 }
 0x1cd   :  { %984 = vmatpush1.bf16.msra.mxu0 %v2530_v63  ;;  %1025 = vmatpush1.bf16.msra.mxu1 %v2532_v1 }
 0x1ce   :  { %985 = vmatprep.subr.bf16.mxu0 %v2536_v2  ;;  %1026 = vmatprep.subr.bf16.mxu1 %v2538_v3 }
 0x1d1   :  { %986 = vmatpush1.bf16.msra.mxu0 %v2542_v4  ;;  %1027 = vmatpush1.bf16.msra.mxu1 %v2544_v5 }
 0x1d2   :  { %1089 = vmatprep.subr.bf16.mxu0 %v2448_v33  ;;  %1130 = vmatprep.subr.bf16.mxu1 %v2450_v34 }
 0x287   :  { %v887_v7 = vpop.f32.mrb[20].mxu0  ;;  %v928_v9 = vpop.f32.mrb[20].mxu1 }
 0x288   :  { %v935_v13 = vadd.f32 %v887_v7, %v2596_v25  ;;  %v937_v24 = vadd.f32 %v928_v9, %v2599_v27  ;;  %v889_v32 = vpop.f32.mrb[21].mxu0  ;;  %v930_v16 = vpop.f32.mrb[21].mxu1 }
 0x289   :  { %v936_v15 = vadd.f32 %v889_v32, %v2601_v29  ;;  %v938_v17 = vadd.f32 %v930_v16, %v2604_v30  ;;  %v891_v19 = vpop.f32.mrb[22].mxu0  ;;  %v932_v18 = vpop.f32.mrb[22].mxu1 }
 0x28a   :  { %v1801_v0 = vmul.f32 -1.442695, %v935_v13  ;;  %v892_v20 = vpop.f32.mrb[23].mxu0  ;;  %v933_v21 = vpop.f32.mrb[23].mxu1  ;;  %v1803_v28 = vmul.f32 -1.442695, %v937_v24 }
 0x28b   :  { %v1802_v22 = vmul.f32 -1.442695, %v936_v15 }
 0x28c   :  { %1952 = vpow2.f32 %v1801_v0  ;;  %v3050_v0 = vld [vmem:[#allocation26_spill] sm:$0xff] }
 0x28d   :  { %1954 = vpow2.f32 %v1802_v22 }
 0x28e   :  { %1956 = vtanh.f32 %v938_v17 }
 0x28f   :  { %1958 = vpow2.f32 %v1803_v28 }
 0x296   :  { %v1953_v10 = vpop.eup %1952 }
 0x297   :  { %v948_v62 = vadd.f32 1.0, %v1953_v10  ;;  %v1955_v25 = vpop.eup %1954 }
 0x298   :  { %v949_v27 = vadd.f32 1.0, %v1955_v25  ;;  %v1957_v29 = vpop.eup %1956 }
 0x299   :  { %1960 = vrcp.f32 %v948_v62  ;;  %v1959_v26 = vpop.eup %1958 }
 0x29a   :  { %1962 = vrcp.f32 %v949_v27  ;;  %v950_v44 = vadd.f32 1.0, %v1959_v26 }
 0x29c   :  { %1964 = vrcp.f32 %v950_v44 }
 0x2a3   :  { %v1961_v30 = vpop.eup %1960 }
 0x2a4   :  { %v959_v8 = vmul.f32 %v1961_v30, %v1957_v29  ;;  %v1963_v23 = vpop.eup %1962 }
 0x2a5   :  { %v958_v11 = vmul.f32 %v1963_v23, %v2670_v12 }
 0x2a6   :  { %v1965_v7 = vpop.eup %1964 }
 0x2a7   :  { %v2712_v31 = vadd.f32 %v959_v8, %v958_v11 }
 0x2a9   :  { %1966 = vtanh.f32 %v2712_v31 }
 0x2b3   :  { %v1967_v9 = vpop.eup %1966 }
 0x2b4   :  { %v962_v13 = vmul.f32 %v1967_v9, %v1965_v7 }
 0x2b6   :  { %v963_v24 = vpack.c.bf16 %v962_v13, %v962_v13 }
 0x2b8   :  { %965 = vst [vmem:[#allocation16 + $0x4] sm:$0xf] %v963_v24  ;;  %1004 = vmatmul.mubr.bf16.vlgmr.msra.gmra.mrb[24].mxu0 %v963_v24  ;;  %1045 = vmatmul.mubr.bf16.vlgmr.msra.gmra.mrb[24].mxu1 %v963_v24 }
 0x2b9   :  { %1090 = vmatpush1.bf16.msra.mxu0 %v2452_v36  ;;  %1131 = vmatpush1.bf16.msra.mxu1 %v2454_v37 }
 0x2ba   :  { %1091 = vmatprep.subr.bf16.mxu0 %v2458_v38  ;;  %1132 = vmatprep.subr.bf16.mxu1 %v2460_v39 }
 0x2bb   :  { %1121 = vmatprep.mubr.bf16.mxu0 %v3049_v14  ;;  %1162 = vmatprep.mubr.bf16.mxu1 %v3049_v14 }
 0x2bd   :  { %1092 = vmatpush1.bf16.msra.mxu0 %v2462_v40  ;;  %1133 = vmatpush1.bf16.msra.mxu1 %v2466_v41 }
 0x2be   :  { %1093 = vmatprep.subr.bf16.mxu0 %v2470_v42  ;;  %1134 = vmatprep.subr.bf16.mxu1 %v2472_v43 }
 0x2c1   :  { %1094 = vmatpush1.bf16.msra.mxu0 %v2476_v45  ;;  %1135 = vmatpush1.bf16.msra.mxu1 %v2478_v46 }
 0x2c2   :  { %1095 = vmatprep.subr.bf16.mxu0 %v2482_v47  ;;  %1136 = vmatprep.subr.bf16.mxu1 %v2486_v48 }
 0x2c5   :  { %1096 = vmatpush1.bf16.msra.mxu0 %v2488_v49  ;;  %1137 = vmatpush1.bf16.msra.mxu1 %v2490_v50 }
 0x2c6   :  { %1097 = vmatprep.subr.bf16.mxu0 %v2494_v51  ;;  %1138 = vmatprep.subr.bf16.mxu1 %v2498_v52 }
 0x2c9   :  { %1098 = vmatpush1.bf16.msra.mxu0 %v2504_v54  ;;  %1139 = vmatpush1.bf16.msra.mxu1 %v2506_v55 }
 0x2ca   :  { %1099 = vmatprep.subr.bf16.mxu0 %v2510_v56  ;;  %1140 = vmatprep.subr.bf16.mxu1 %v2512_v57 }
 0x2cd   :  { %1100 = vmatpush1.bf16.msra.mxu0 %v2516_v58  ;;  %1141 = vmatpush1.bf16.msra.mxu1 %v2518_v59 }
 0x2ce   :  { %1101 = vmatprep.subr.bf16.mxu0 %v2522_v60  ;;  %1142 = vmatprep.subr.bf16.mxu1 %v2524_v61 }
 0x2d1   :  { %1102 = vmatpush1.bf16.msra.mxu0 %v2530_v63  ;;  %1143 = vmatpush1.bf16.msra.mxu1 %v2532_v1 }
 0x2d2   :  { %1103 = vmatprep.subr.bf16.mxu0 %v2536_v2  ;;  %1144 = vmatprep.subr.bf16.mxu1 %v2538_v3 }
 0x2d5   :  { %1104 = vmatpush1.bf16.msra.mxu0 %v2542_v4  ;;  %1145 = vmatpush1.bf16.msra.mxu1 %v2544_v5 }
 0x2d6   :  { %1207 = vmatprep.subr.bf16.mxu0 %v2448_v33  ;;  %1248 = vmatprep.subr.bf16.mxu1 %v2450_v34 }
 0x38b   :  { %v1005_v12 = vpop.f32.mrb[24].mxu0  ;;  %v1046_v32 = vpop.f32.mrb[24].mxu1 }
 0x38c   :  { %v1053_v16 = vadd.f32 %v1005_v12, %v2606_v35  ;;  %v1055_v15 = vadd.f32 %v1046_v32, %v2609_v53  ;;  %v1007_v17 = vpop.f32.mrb[25].mxu0  ;;  %v1048_v19 = vpop.f32.mrb[25].mxu1 }
 0x38d   :  { %v1054_v18 = vadd.f32 %v1007_v17, %v2611_v6  ;;  %v1056_v20 = vadd.f32 %v1048_v19, %v3050_v0  ;;  %v1009_v21 = vpop.f32.mrb[26].mxu0  ;;  %v1050_v22 = vpop.f32.mrb[26].mxu1  ;;  %v3052_v19 = vld [vmem:[#allocation28_spill] sm:$0xff] }
 0x38e   :  { %v1804_v28 = vmul.f32 -1.442695, %v1053_v16  ;;  %v1010_v10 = vpop.f32.mrb[27].mxu0  ;;  %v1051_v62 = vpop.f32.mrb[27].mxu1  ;;  %v1806_v27 = vmul.f32 -1.442695, %v1055_v15 }
 0x38f   :  { %v1805_v25 = vmul.f32 -1.442695, %v1054_v18  ;;  %v3051_v15 = vld [vmem:[#allocation27_spill] sm:$0xff]  ;;  %v3053_v21 = vld [vmem:[#allocation29_spill] sm:$0xff] }
 0x390   :  { %1968 = vpow2.f32 %v1804_v28  ;;  %v3054_v28 = vld [vmem:[#allocation30_spill] sm:$0xff] }
 0x391   :  { %1970 = vpow2.f32 %v1805_v25 }
 0x392   :  { %1972 = vtanh.f32 %v1056_v20 }
 0x393   :  { %1974 = vpow2.f32 %v1806_v27 }
 0x39a   :  { %v1969_v29 = vpop.eup %1968 }
 0x39b   :  { %v1066_v26 = vadd.f32 1.0, %v1969_v29  ;;  %v1971_v35 = vpop.eup %1970 }
 0x39c   :  { %v1067_v53 = vadd.f32 1.0, %v1971_v35  ;;  %v1973_v6 = vpop.eup %1972 }
 0x39d   :  { %1976 = vrcp.f32 %v1066_v26  ;;  %v1975_v30 = vpop.eup %1974 }
 0x39e   :  { %1978 = vrcp.f32 %v1067_v53  ;;  %v1068_v11 = vadd.f32 1.0, %v1975_v30 }
 0x3a0   :  { %1980 = vrcp.f32 %v1068_v11 }
 0x3a7   :  { %v1977_v8 = vpop.eup %1976 }
 0x3a8   :  { %v1077_v23 = vmul.f32 %v1977_v8, %v1973_v6  ;;  %v1979_v44 = vpop.eup %1978 }
 0x3a9   :  { %v1076_v7 = vmul.f32 %v1979_v44, %v2712_v31 }
 0x3aa   :  { %v1981_v13 = vpop.eup %1980 }
 0x3ab   :  { %v2754_v9 = vadd.f32 %v1077_v23, %v1076_v7 }
 0x3ad   :  { %1982 = vtanh.f32 %v2754_v9 }
 0x3b7   :  { %v1983_v24 = vpop.eup %1982 }
 0x3b8   :  { %v1080_v12 = vmul.f32 %v1983_v24, %v1981_v13 }
 0x3ba   :  { %v1081_v32 = vpack.c.bf16 %v1080_v12, %v1080_v12 }
 0x3bc   :  { %1083 = vst [vmem:[#allocation16 + $0x8] sm:$0xf] %v1081_v32  ;;  %1122 = vmatmul.mubr.bf16.vlgmr.msra.gmra.mrb[28].mxu0 %v1081_v32  ;;  %1163 = vmatmul.mubr.bf16.vlgmr.msra.gmra.mrb[28].mxu1 %v1081_v32 }
 0x3bd   :  { %1208 = vmatpush1.bf16.msra.mxu0 %v2452_v36  ;;  %1249 = vmatpush1.bf16.msra.mxu1 %v2454_v37 }
 0x3be   :  { %1209 = vmatprep.subr.bf16.mxu0 %v2458_v38  ;;  %1250 = vmatprep.subr.bf16.mxu1 %v2460_v39 }
 0x3bf   :  { %1239 = vmatprep.mubr.bf16.mxu0 %v3049_v14  ;;  %1280 = vmatprep.mubr.bf16.mxu1 %v3049_v14 }
 0x3c1   :  { %1210 = vmatpush1.bf16.msra.mxu0 %v2462_v40  ;;  %1251 = vmatpush1.bf16.msra.mxu1 %v2466_v41 }
 0x3c2   :  { %1211 = vmatprep.subr.bf16.mxu0 %v2470_v42  ;;  %1252 = vmatprep.subr.bf16.mxu1 %v2472_v43 }
 0x3c5   :  { %1212 = vmatpush1.bf16.msra.mxu0 %v2476_v45  ;;  %1253 = vmatpush1.bf16.msra.mxu1 %v2478_v46 }
 0x3c6   :  { %1213 = vmatprep.subr.bf16.mxu0 %v2482_v47  ;;  %1254 = vmatprep.subr.bf16.mxu1 %v2486_v48 }
 0x3c9   :  { %1214 = vmatpush1.bf16.msra.mxu0 %v2488_v49  ;;  %1255 = vmatpush1.bf16.msra.mxu1 %v2490_v50 }
 0x3ca   :  { %1215 = vmatprep.subr.bf16.mxu0 %v2494_v51  ;;  %1256 = vmatprep.subr.bf16.mxu1 %v2498_v52 }
 0x3cd   :  { %1216 = vmatpush1.bf16.msra.mxu0 %v2504_v54  ;;  %1257 = vmatpush1.bf16.msra.mxu1 %v2506_v55 }
 0x3ce   :  { %1217 = vmatprep.subr.bf16.mxu0 %v2510_v56  ;;  %1258 = vmatprep.subr.bf16.mxu1 %v2512_v57 }
 0x3d1   :  { %1218 = vmatpush1.bf16.msra.mxu0 %v2516_v58  ;;  %1259 = vmatpush1.bf16.msra.mxu1 %v2518_v59 }
 0x3d2   :  { %1219 = vmatprep.subr.bf16.mxu0 %v2522_v60  ;;  %1260 = vmatprep.subr.bf16.mxu1 %v2524_v61 }
 0x3d5   :  { %1220 = vmatpush1.bf16.msra.mxu0 %v2530_v63  ;;  %1261 = vmatpush1.bf16.msra.mxu1 %v2532_v1 }
 0x3d6   :  { %1221 = vmatprep.subr.bf16.mxu0 %v2536_v2  ;;  %1262 = vmatprep.subr.bf16.mxu1 %v2538_v3 }
 0x3d9   :  { %1222 = vmatpush1.bf16.msra.mxu0 %v2542_v4  ;;  %1263 = vmatpush1.bf16.msra.mxu1 %v2544_v5 }
 0x3da   :  { %1325 = vmatprep.subr.bf16.mxu0 %v2448_v33  ;;  %1366 = vmatprep.subr.bf16.mxu1 %v2450_v34 }
 0x48f   :  { %v1123_v31 = vpop.f32.mrb[28].mxu0  ;;  %v1164_v16 = vpop.f32.mrb[28].mxu1 }
 0x490   :  { %v1171_v17 = vadd.f32 %v1123_v31, %v3051_v15  ;;  %v1173_v18 = vadd.f32 %v1164_v16, %v3052_v19  ;;  %v1125_v0 = vpop.f32.mrb[29].mxu0  ;;  %v1166_v20 = vpop.f32.mrb[29].mxu1 }
 0x491   :  { %v1172_v22 = vadd.f32 %v1125_v0, %v3053_v21  ;;  %v1174_v10 = vadd.f32 %v1166_v20, %v3054_v28  ;;  %v1127_v62 = vpop.f32.mrb[30].mxu0  ;;  %v1168_v25 = vpop.f32.mrb[30].mxu1 }
 0x492   :  { %v1807_v27 = vmul.f32 -1.442695, %v1171_v17  ;;  %v1128_v29 = vpop.f32.mrb[31].mxu0  ;;  %v1169_v26 = vpop.f32.mrb[31].mxu1  ;;  %v1809_v34 = vmul.f32 -1.442695, %v1173_v18 }
 0x493   :  { %v1808_v33 = vmul.f32 -1.442695, %v1172_v22 }
 0x494   :  { %1984 = vpow2.f32 %v1807_v27 }
 0x495   :  { %1986 = vpow2.f32 %v1808_v33  ;;  %v2845_v33 = vld [vmem:[#allocation10] ss:$16 sps:$4 sm:$0xff]  }
 0x496   :  { %1988 = vtanh.f32 %v1174_v10 }
 0x497   :  { %1990 = vpow2.f32 %v1809_v34  ;;  %v2848_v34 = vld [vmem:[#allocation10 + $0x8] ss:$16 sps:$4 sm:$0xff]  }
 0x49e   :  { %v1985_v35 = vpop.eup %1984 }
 0x49f   :  { %v1184_v53 = vadd.f32 1.0, %v1985_v35  ;;  %v1987_v6 = vpop.eup %1986  ;;  %v2851_v35 = vld [vmem:[#allocation10 + $0x24] ss:$16 sps:$4 sm:$0xff]  }
 0x4a0   :  { %v1185_v30 = vadd.f32 1.0, %v1987_v6  ;;  %v1989_v8 = vpop.eup %1988  ;;  %v2859_v6 = vld [vmem:[#allocation10 + $0x20] ss:$16 sps:$4 sm:$0xff]  }
 0x4a1   :  { %1992 = vrcp.f32 %v1184_v53  ;;  %v1991_v23 = vpop.eup %1990  ;;  %v2854_v53 = vld [vmem:[#allocation10 + $0x2c] ss:$16 sps:$4 sm:$0xff]  }
 0x4a2   :  { %1994 = vrcp.f32 %v1185_v30  ;;  %v1186_v13 = vadd.f32 1.0, %v1991_v23  ;;  %v2862_v30 = vld [vmem:[#allocation10 + $0x28] ss:$16 sps:$4 sm:$0xff]   ;;  %v2868_v23 = vld [vmem:[#allocation10 + $0x4c] ss:$16 sps:$4 sm:$0xff]  }
 0x4a4   :  { %1996 = vrcp.f32 %v1186_v13  ;;  %v2880_v13 = vld [vmem:[#allocation10 + $0x6c] ss:$16 sps:$4 sm:$0xff]  }
 0x4ab   :  { %v1993_v44 = vpop.eup %1992 }
 0x4ac   :  { %v1195_v11 = vmul.f32 %v1993_v44, %v1989_v8  ;;  %v1995_v7 = vpop.eup %1994  ;;  %v2865_v8 = vld [vmem:[#allocation10 + $0x44] ss:$16 sps:$4 sm:$0xff]   ;;  %v2871_v44 = vld [vmem:[#allocation10 + $0x40] ss:$16 sps:$4 sm:$0xff]  }
 0x4ad   :  { %v1194_v24 = vmul.f32 %v1995_v7, %v2754_v9  ;;  %v2877_v7 = vld [vmem:[#allocation10 + $0x64] ss:$16 sps:$4 sm:$0xff]  }
 0x4ae   :  { %v1997_v32 = vpop.eup %1996 }
 0x4af   :  { %v2796_v12 = vadd.f32 %v1195_v11, %v1194_v24  ;;  %v2874_v11 = vld [vmem:[#allocation10 + $0x48] ss:$16 sps:$4 sm:$0xff]   ;;  %v2883_v24 = vld [vmem:[#allocation10 + $0x60] ss:$16 sps:$4 sm:$0xff]  }
 0x4b1   :  { %1998 = vtanh.f32 %v2796_v12 }
 0x4bb   :  { %v1999_v31 = vpop.eup %1998 }
 0x4bc   :  { %v1198_v16 = vmul.f32 %v1999_v31, %v1997_v32  ;;  %v2889_v32 = vld [vmem:[#allocation10 + $0x84] ss:$16 sps:$4 sm:$0xff]   ;;  %v2892_v31 = vld [vmem:[#allocation10 + $0x8c] ss:$16 sps:$4 sm:$0xff]  }
 0x4be   :  { %v1199_v15 = vpack.c.bf16 %v1198_v16, %v1198_v16  ;;  %v2895_v16 = vld [vmem:[#allocation10 + $0x80] ss:$16 sps:$4 sm:$0xff]  }
 0x4c0   :  { %1201 = vst [vmem:[#allocation16 + $0xc] sm:$0xf] %v1199_v15  ;;  %1240 = vmatmul.mubr.bf16.vlgmr.msra.gmra.mrb[32].mxu0 %v1199_v15  ;;  %1281 = vmatmul.mubr.bf16.vlgmr.msra.gmra.mrb[32].mxu1 %v1199_v15  ;;  %v2898_v15 = vld [vmem:[#allocation10 + $0x88] ss:$16 sps:$4 sm:$0xff]  }
 0x4c1   :  { %1326 = vmatpush1.bf16.msra.mxu0 %v2452_v36  ;;  %1367 = vmatpush1.bf16.msra.mxu1 %v2454_v37  ;;  %v2831_v36 = vld [vmem:[#allocation10 + $0x4] ss:$16 sps:$4 sm:$0xff]   ;;  %v2834_v37 = vld [vmem:[#allocation10 + $0xc] ss:$16 sps:$4 sm:$0xff]  }
 0x4c2   :  { %1327 = vmatprep.subr.bf16.mxu0 %v2458_v38  ;;  %1368 = vmatprep.subr.bf16.mxu1 %v2460_v39 }
 0x4c3   :  { %1357 = vmatprep.mubr.bf16.mxu0 %v3049_v14  ;;  %1398 = vmatprep.mubr.bf16.mxu1 %v3049_v14 }
 0x4c5   :  { %1328 = vmatpush1.bf16.msra.mxu0 %v2462_v40  ;;  %1369 = vmatpush1.bf16.msra.mxu1 %v2466_v41  ;;  %v3055_v40 = vld [vmem:[#allocation31_spill] sm:$0xff] }
 0x4c6   :  { %1329 = vmatprep.subr.bf16.mxu0 %v2470_v42  ;;  %1370 = vmatprep.subr.bf16.mxu1 %v2472_v43  ;;  %v3056_v42 = vld [vmem:[#allocation32_spill] sm:$0xff] }
 0x4c9   :  { %1330 = vmatpush1.bf16.msra.mxu0 %v2476_v45  ;;  %1371 = vmatpush1.bf16.msra.mxu1 %v2478_v46 }
 0x4ca   :  { %1331 = vmatprep.subr.bf16.mxu0 %v2482_v47  ;;  %1372 = vmatprep.subr.bf16.mxu1 %v2486_v48  ;;  %v3057_v47 = vld [vmem:[#allocation33_spill] sm:$0xff] }
 0x4cd   :  { %1332 = vmatpush1.bf16.msra.mxu0 %v2488_v49  ;;  %1373 = vmatpush1.bf16.msra.mxu1 %v2490_v50  ;;  %v3058_v49 = vld [vmem:[#allocation34_spill] sm:$0xff] }
 0x4ce   :  { %1333 = vmatprep.subr.bf16.mxu0 %v2494_v51  ;;  %1374 = vmatprep.subr.bf16.mxu1 %v2498_v52 }
 0x4d1   :  { %1334 = vmatpush1.bf16.msra.mxu0 %v2504_v54  ;;  %1375 = vmatpush1.bf16.msra.mxu1 %v2506_v55 }
 0x4d2   :  { %1335 = vmatprep.subr.bf16.mxu0 %v2510_v56  ;;  %1376 = vmatprep.subr.bf16.mxu1 %v2512_v57 }
 0x4d5   :  { %1336 = vmatpush1.bf16.msra.mxu0 %v2516_v58  ;;  %1377 = vmatpush1.bf16.msra.mxu1 %v2518_v59 }
 0x4d6   :  { %1337 = vmatprep.subr.bf16.mxu0 %v2522_v60  ;;  %1378 = vmatprep.subr.bf16.mxu1 %v2524_v61 }
 0x4d9   :  { %1338 = vmatpush1.bf16.msra.mxu0 %v2530_v63  ;;  %1379 = vmatpush1.bf16.msra.mxu1 %v2532_v1 }
 0x4da   :  { %1339 = vmatprep.subr.bf16.mxu0 %v2536_v2  ;;  %1380 = vmatprep.subr.bf16.mxu1 %v2538_v3 }
 0x4dd   :  { %1340 = vmatpush1.bf16.msra.mxu0 %v2542_v4  ;;  %1381 = vmatpush1.bf16.msra.mxu1 %v2544_v5 }
 0x4de   :  { %1443 = vmatprep.subr.bf16.mxu0 %v2831_v36  ;;  %1484 = vmatprep.subr.bf16.mxu1 %v2834_v37 }
 0x593   :  { %v1241_v38 = vpop.f32.mrb[32].mxu0  ;;  %v1282_v39 = vpop.f32.mrb[32].mxu1 }
 0x594   :  { %v1289_v41 = vadd.f32 %v1241_v38, %v3055_v40  ;;  %v1291_v43 = vadd.f32 %v1282_v39, %v3056_v42  ;;  %v1243_v45 = vpop.f32.mrb[33].mxu0  ;;  %v1284_v46 = vpop.f32.mrb[33].mxu1  ;;  %v2901_v38 = vld [vmem:[#allocation10 + $0xa4] ss:$16 sps:$4 sm:$0xff]   ;;  %v2904_v39 = vld [vmem:[#allocation10 + $0xac] ss:$16 sps:$4 sm:$0xff]  }
 0x595   :  { %v1290_v48 = vadd.f32 %v1243_v45, %v3057_v47  ;;  %v1292_v50 = vadd.f32 %v1284_v46, %v3058_v49  ;;  %v1245_v51 = vpop.f32.mrb[34].mxu0  ;;  %v1286_v52 = vpop.f32.mrb[34].mxu1  ;;  %v2907_v40 = vld [vmem:[#allocation10 + $0xa0] ss:$16 sps:$4 sm:$0xff]   ;;  %v3060_v45 = vld [vmem:[#allocation36_spill] sm:$0xff] }
 0x596   :  { %v1810_v54 = vmul.f32 -1.442695, %v1289_v41  ;;  %v1246_v55 = vpop.f32.mrb[35].mxu0  ;;  %v1287_v56 = vpop.f32.mrb[35].mxu1  ;;  %v1812_v58 = vmul.f32 -1.442695, %v1291_v43 }
 0x597   :  { %v1811_v57 = vmul.f32 -1.442695, %v1290_v48  ;;  %v2910_v41 = vld [vmem:[#allocation10 + $0xa8] ss:$16 sps:$4 sm:$0xff]   ;;  %v3059_v43 = vld [vmem:[#allocation35_spill] sm:$0xff]  ;;  %v3061_v47 = vld [vmem:[#allocation37_spill] sm:$0xff] }
 0x598   :  { %2000 = vpow2.f32 %v1810_v54  ;;  %v3062_v48 = vld [vmem:[#allocation38_spill] sm:$0xff] }
 0x599   :  { %2002 = vpow2.f32 %v1811_v57 }
 0x59a   :  { %2004 = vtanh.f32 %v1292_v50 }
 0x59b   :  { %2006 = vpow2.f32 %v1812_v58 }
 0x5a2   :  { %v2001_v59 = vpop.eup %2000 }
 0x5a3   :  { %v1302_v9 = vadd.f32 1.0, %v2001_v59  ;;  %v2003_v17 = vpop.eup %2002 }
 0x5a4   :  { %v1303_v19 = vadd.f32 1.0, %v2003_v17  ;;  %v2005_v18 = vpop.eup %2004 }
 0x5a5   :  { %2008 = vrcp.f32 %v1302_v9  ;;  %v2007_v0 = vpop.eup %2006 }
 0x5a6   :  { %2010 = vrcp.f32 %v1303_v19  ;;  %v1304_v28 = vadd.f32 1.0, %v2007_v0 }
 0x5a8   :  { %2012 = vrcp.f32 %v1304_v28 }
 0x5af   :  { %v2009_v20 = vpop.eup %2008 }
 0x5b0   :  { %v1313_v21 = vmul.f32 %v2009_v20, %v2005_v18  ;;  %v2011_v22 = vpop.eup %2010 }
 0x5b1   :  { %v1312_v10 = vmul.f32 %v2011_v22, %v2796_v12  ;;  %v2886_v12 = vld [vmem:[#allocation10 + $0x68] ss:$16 sps:$4 sm:$0xff]  }
 0x5b2   :  { %v2013_v25 = vpop.eup %2012 }
 0x5b3   :  { %v2842_v62 = vadd.f32 %v1313_v21, %v1312_v10  ;;  %v2089_v10 = vld [vmem:[#allocation10 + $0xcc] ss:$16 sps:$4 sm:$0xff]  }
 0x5b5   :  { %2014 = vtanh.f32 %v2842_v62 }
 0x5bf   :  { %v2015_v27 = vpop.eup %2014 }
 0x5c0   :  { %v1316_v29 = vmul.f32 %v2015_v27, %v2013_v25  ;;  %v2091_v25 = vld [vmem:[#allocation10 + $0xc8] ss:$16 sps:$4 sm:$0xff]   ;;  %v2092_v27 = vld [vmem:[#allocation10 + $0xe4] ss:$16 sps:$4 sm:$0xff]  }
 0x5c2   :  { %v1317_v26 = vpack.c.bf16 %v1316_v29, %v1316_v29  ;;  %v2093_v29 = vld [vmem:[#allocation10 + $0xec] ss:$16 sps:$4 sm:$0xff]  }
 0x5c4   :  { %1319 = vst [vmem:[#allocation16 + $0x10] sm:$0xf] %v1317_v26  ;;  %1358 = vmatmul.mubr.bf16.vlgmr.msra.gmra.mrb[36].mxu0 %v1317_v26  ;;  %1399 = vmatmul.mubr.bf16.vlgmr.msra.gmra.mrb[36].mxu1 %v1317_v26  ;;  %v2094_v26 = vld [vmem:[#allocation10 + $0xe0] ss:$16 sps:$4 sm:$0xff]  }
 0x5c5   :  { %1444 = vmatpush1.bf16.msra.mxu0 %v2845_v33  ;;  %1485 = vmatpush1.bf16.msra.mxu1 %v2848_v34 }
 0x5c6   :  { %1445 = vmatprep.subr.bf16.mxu0 %v2851_v35  ;;  %1486 = vmatprep.subr.bf16.mxu1 %v2854_v53 }
 0x5c7   :  { %1475 = vmatprep.mubr.bf16.mxu0 %v3049_v14  ;;  %1516 = vmatprep.mubr.bf16.mxu1 %v3049_v14 }
 0x5c9   :  { %1446 = vmatpush1.bf16.msra.mxu0 %v2859_v6  ;;  %1487 = vmatpush1.bf16.msra.mxu1 %v2862_v30 }
 0x5ca   :  { %1447 = vmatprep.subr.bf16.mxu0 %v2865_v8  ;;  %1488 = vmatprep.subr.bf16.mxu1 %v2868_v23 }
 0x5cd   :  { %1448 = vmatpush1.bf16.msra.mxu0 %v2871_v44  ;;  %1489 = vmatpush1.bf16.msra.mxu1 %v2874_v11 }
 0x5ce   :  { %1449 = vmatprep.subr.bf16.mxu0 %v2877_v7  ;;  %1490 = vmatprep.subr.bf16.mxu1 %v2880_v13 }
 0x5d1   :  { %1450 = vmatpush1.bf16.msra.mxu0 %v2883_v24  ;;  %1491 = vmatpush1.bf16.msra.mxu1 %v2886_v12 }
 0x5d2   :  { %1451 = vmatprep.subr.bf16.mxu0 %v2889_v32  ;;  %1492 = vmatprep.subr.bf16.mxu1 %v2892_v31 }
 0x5d5   :  { %1452 = vmatpush1.bf16.msra.mxu0 %v2895_v16  ;;  %1493 = vmatpush1.bf16.msra.mxu1 %v2898_v15 }
 0x5d6   :  { %1453 = vmatprep.subr.bf16.mxu0 %v2901_v38  ;;  %1494 = vmatprep.subr.bf16.mxu1 %v2904_v39 }
 0x5d9   :  { %1454 = vmatpush1.bf16.msra.mxu0 %v2907_v40  ;;  %1495 = vmatpush1.bf16.msra.mxu1 %v2910_v41 }
 0x5da   :  { %1455 = vmatprep.subr.bf16.mxu0 %v2522_v60  ;;  %1496 = vmatprep.subr.bf16.mxu1 %v2524_v61 }
 0x5dd   :  { %1456 = vmatpush1.bf16.msra.mxu0 %v2530_v63  ;;  %1497 = vmatpush1.bf16.msra.mxu1 %v2532_v1 }
 0x5de   :  { %1457 = vmatprep.subr.bf16.mxu0 %v2536_v2  ;;  %1498 = vmatprep.subr.bf16.mxu1 %v2538_v3 }
 0x5e1   :  { %1458 = vmatpush1.bf16.msra.mxu0 %v2542_v4  ;;  %1499 = vmatpush1.bf16.msra.mxu1 %v2544_v5 }
 0x5e2   :  { %1561 = vmatprep.subr.bf16.mxu0 %v2831_v36  ;;  %1602 = vmatprep.subr.bf16.mxu1 %v2834_v37 }
 0x697   :  { %v1359_v42 = vpop.f32.mrb[36].mxu0  ;;  %v1400_v60 = vpop.f32.mrb[36].mxu1 }
 0x698   :  { %v1407_v61 = vadd.f32 %v1359_v42, %v3059_v43  ;;  %v1409_v63 = vadd.f32 %v1400_v60, %v3060_v45  ;;  %v1361_v46 = vpop.f32.mrb[37].mxu0  ;;  %v1402_v1 = vpop.f32.mrb[37].mxu1 }
 0x699   :  { %v1408_v2 = vadd.f32 %v1361_v46, %v3061_v47  ;;  %v1410_v3 = vadd.f32 %v1402_v1, %v3062_v48  ;;  %v1363_v49 = vpop.f32.mrb[38].mxu0  ;;  %v1404_v4 = vpop.f32.mrb[38].mxu1 }
 0x69a   :  { %v1813_v50 = vmul.f32 -1.442695, %v1407_v61  ;;  %v1364_v5 = vpop.f32.mrb[39].mxu0  ;;  %v1405_v51 = vpop.f32.mrb[39].mxu1  ;;  %v1815_v37 = vmul.f32 -1.442695, %v1409_v63 }
 0x69b   :  { %v1814_v36 = vmul.f32 -1.442695, %v1408_v2  ;;  %v3067_v51 = vld [vmem:[#allocation43_spill] sm:$0xff] }
 0x69c   :  { %2016 = vpow2.f32 %v1813_v50 }
 0x69d   :  { %2018 = vpow2.f32 %v1814_v36 }
 0x69e   :  { %2020 = vtanh.f32 %v1410_v3 }
 0x69f   :  { %2022 = vpow2.f32 %v1815_v37  ;;  %v3068_v37 = vld [vmem:[#allocation44_spill] sm:$0xff] }
 0x6a6   :  { %v2017_v52 = vpop.eup %2016 }
 0x6a7   :  { %v1420_v54 = vadd.f32 1.0, %v2017_v52  ;;  %v2019_v55 = vpop.eup %2018 }
 0x6a8   :  { %v1421_v56 = vadd.f32 1.0, %v2019_v55  ;;  %v2021_v57 = vpop.eup %2020 }
 0x6a9   :  { %2024 = vrcp.f32 %v1420_v54  ;;  %v2023_v58 = vpop.eup %2022 }
 0x6aa   :  { %2026 = vrcp.f32 %v1421_v56  ;;  %v1422_v19 = vadd.f32 1.0, %v2023_v58  ;;  %v3069_v56 = vld [vmem:[#allocation45_spill] sm:$0xff]  ;;  %v3070_v58 = vld [vmem:[#allocation46_spill] sm:$0xff] }
 0x6ac   :  { %2028 = vrcp.f32 %v1422_v19 }
 0x6b3   :  { %v2025_v59 = vpop.eup %2024 }
 0x6b4   :  { %v1431_v9 = vmul.f32 %v2025_v59, %v2021_v57  ;;  %v2027_v17 = vpop.eup %2026 }
 0x6b5   :  { %v1430_v18 = vmul.f32 %v2027_v17, %v2842_v62  ;;  %v2090_v62 = vld [vmem:[#allocation10 + $0xc0] ss:$16 sps:$4 sm:$0xff]  }
 0x6b6   :  { %v2029_v20 = vpop.eup %2028 }
 0x6b7   :  { %v2928_v0 = vadd.f32 %v1431_v9, %v1430_v18 }
 0x6b9   :  { %2030 = vtanh.f32 %v2928_v0 }
 0x6c3   :  { %v2031_v21 = vpop.eup %2030 }
 0x6c4   :  { %v1434_v22 = vmul.f32 %v2031_v21, %v2029_v20 }
 0x6c6   :  { %v1435_v28 = vpack.c.bf16 %v1434_v22, %v1434_v22 }
 0x6c8   :  { %1437 = vst [vmem:[#allocation16 + $0x14] sm:$0xf] %v1435_v28  ;;  %1476 = vmatmul.mubr.bf16.vlgmr.msra.gmra.mrb[40].mxu0 %v1435_v28  ;;  %1517 = vmatmul.mubr.bf16.vlgmr.msra.gmra.mrb[40].mxu1 %v1435_v28 }
 0x6c9   :  { %1562 = vmatpush1.bf16.msra.mxu0 %v2845_v33  ;;  %1603 = vmatpush1.bf16.msra.mxu1 %v2848_v34  ;;  %v2095_v33 = vld [vmem:[#allocation10 + $0xe8] ss:$16 sps:$4 sm:$0xff]  }
 0x6ca   :  { %1563 = vmatprep.subr.bf16.mxu0 %v2851_v35  ;;  %1604 = vmatprep.subr.bf16.mxu1 %v2854_v53  ;;  %v3063_v53 = vld [vmem:[#allocation39_spill] sm:$0xff] }
 0x6cb   :  { %1593 = vmatprep.mubr.bf16.mxu0 %v3049_v14  ;;  %1634 = vmatprep.mubr.bf16.mxu1 %v3049_v14  ;;  %v2088_v14 = vld [vmem:[#allocation10 + $0xc4] ss:$16 sps:$4 sm:$0xff]  }
 0x6cd   :  { %1564 = vmatpush1.bf16.msra.mxu0 %v2859_v6  ;;  %1605 = vmatpush1.bf16.msra.mxu1 %v2862_v30  ;;  %v3064_v30 = vld [vmem:[#allocation40_spill] sm:$0xff] }
 0x6ce   :  { %1565 = vmatprep.subr.bf16.mxu0 %v2865_v8  ;;  %1606 = vmatprep.subr.bf16.mxu1 %v2868_v23 }
 0x6d1   :  { %1566 = vmatpush1.bf16.msra.mxu0 %v2871_v44  ;;  %1607 = vmatpush1.bf16.msra.mxu1 %v2874_v11  ;;  %v3065_v11 = vld [vmem:[#allocation41_spill] sm:$0xff] }
 0x6d2   :  { %1567 = vmatprep.subr.bf16.mxu0 %v2877_v7  ;;  %1608 = vmatprep.subr.bf16.mxu1 %v2880_v13  ;;  %v3066_v13 = vld [vmem:[#allocation42_spill] sm:$0xff] }
 0x6d5   :  { %1568 = vmatpush1.bf16.msra.mxu0 %v2883_v24  ;;  %1609 = vmatpush1.bf16.msra.mxu1 %v2886_v12 }
 0x6d6   :  { %1569 = vmatprep.subr.bf16.mxu0 %v2889_v32  ;;  %1610 = vmatprep.subr.bf16.mxu1 %v2892_v31 }
 0x6d9   :  { %1570 = vmatpush1.bf16.msra.mxu0 %v2895_v16  ;;  %1611 = vmatpush1.bf16.msra.mxu1 %v2898_v15 }
 0x6da   :  { %1571 = vmatprep.subr.bf16.mxu0 %v2901_v38  ;;  %1612 = vmatprep.subr.bf16.mxu1 %v2904_v39 }
 0x6dd   :  { %1572 = vmatpush1.bf16.msra.mxu0 %v2907_v40  ;;  %1613 = vmatpush1.bf16.msra.mxu1 %v2910_v41 }
 0x6de   :  { %1573 = vmatprep.subr.bf16.mxu0 %v2088_v14  ;;  %1614 = vmatprep.subr.bf16.mxu1 %v2089_v10 }
 0x6e1   :  { %1574 = vmatpush1.bf16.msra.mxu0 %v2090_v62  ;;  %1615 = vmatpush1.bf16.msra.mxu1 %v2091_v25 }
 0x6e2   :  { %1575 = vmatprep.subr.bf16.mxu0 %v2092_v27  ;;  %1616 = vmatprep.subr.bf16.mxu1 %v2093_v29 }
 0x6e5   :  { %1576 = vmatpush1.bf16.msra.mxu0 %v2094_v26  ;;  %1617 = vmatpush1.bf16.msra.mxu1 %v2095_v33 }
 0x79b   :  { %v1477_v34 = vpop.f32.mrb[40].mxu0  ;;  %v1518_v35 = vpop.f32.mrb[40].mxu1 }
 0x79c   :  { %v1525_v6 = vadd.f32 %v1477_v34, %v3063_v53  ;;  %v1527_v8 = vadd.f32 %v1518_v35, %v3064_v30  ;;  %v1479_v23 = vpop.f32.mrb[41].mxu0  ;;  %v1520_v44 = vpop.f32.mrb[41].mxu1 }
 0x79d   :  { %v1526_v7 = vadd.f32 %v1479_v23, %v3065_v11  ;;  %v1528_v24 = vadd.f32 %v1520_v44, %v3066_v13  ;;  %v1481_v12 = vpop.f32.mrb[42].mxu0  ;;  %v1522_v32 = vpop.f32.mrb[42].mxu1 }
 0x79e   :  { %v1816_v31 = vmul.f32 -1.442695, %v1525_v6  ;;  %v1482_v16 = vpop.f32.mrb[43].mxu0  ;;  %v1523_v15 = vpop.f32.mrb[43].mxu1  ;;  %v1818_v39 = vmul.f32 -1.442695, %v1527_v8 }
 0x79f   :  { %v1817_v38 = vmul.f32 -1.442695, %v1526_v7 }
 0x7a0   :  { %2032 = vpow2.f32 %v1816_v31 }
 0x7a1   :  { %2034 = vpow2.f32 %v1817_v38 }
 0x7a2   :  { %2036 = vtanh.f32 %v1528_v24 }
 0x7a3   :  { %2038 = vpow2.f32 %v1818_v39 }
 0x7aa   :  { %v2033_v40 = vpop.eup %2032 }
 0x7ab   :  { %v1538_v41 = vadd.f32 1.0, %v2033_v40  ;;  %v2035_v42 = vpop.eup %2034 }
 0x7ac   :  { %v1539_v60 = vadd.f32 1.0, %v2035_v42  ;;  %v2037_v43 = vpop.eup %2036 }
 0x7ad   :  { %2040 = vrcp.f32 %v1538_v41  ;;  %v2039_v61 = vpop.eup %2038 }
 0x7ae   :  { %2042 = vrcp.f32 %v1539_v60  ;;  %v1540_v1 = vadd.f32 1.0, %v2039_v61 }
 0x7b0   :  { %2044 = vrcp.f32 %v1540_v1 }
 0x7b7   :  { %v2041_v45 = vpop.eup %2040 }
 0x7b8   :  { %v1549_v63 = vmul.f32 %v2041_v45, %v2037_v43  ;;  %v2043_v46 = vpop.eup %2042 }
 0x7b9   :  { %v1548_v47 = vmul.f32 %v2043_v46, %v2928_v0 }
 0x7ba   :  { %v2045_v48 = vpop.eup %2044 }
 0x7bb   :  { %v1550_v2 = vadd.f32 %v1549_v63, %v1548_v47 }
 0x7bd   :  { %2046 = vtanh.f32 %v1550_v2 }
 0x7c7   :  { %v2047_v3 = vpop.eup %2046 }
 0x7c8   :  { %v1552_v49 = vmul.f32 %v2047_v3, %v2045_v48 }
 0x7ca   :  { %v1553_v4 = vpack.c.bf16 %v1552_v49, %v1552_v49 }
 0x7cc   :  { %1555 = vst [vmem:[#allocation16 + $0x18] sm:$0xf] %v1553_v4  ;;  %1594 = vmatmul.mubr.bf16.vlgmr.msra.gmra.mrb[44].mxu0 %v1553_v4  ;;  %1635 = vmatmul.mubr.bf16.vlgmr.msra.gmra.mrb[44].mxu1 %v1553_v4 }
 0x89f   :  { %v1595_v50 = vpop.f32.mrb[44].mxu0  ;;  %v1636_v5 = vpop.f32.mrb[44].mxu1 }
 0x8a0   :  { %v1643_v36 = vadd.f32 %v1595_v50, %v3067_v51  ;;  %v1645_v52 = vadd.f32 %v1636_v5, %v3068_v37  ;;  %v1597_v54 = vpop.f32.mrb[45].mxu0  ;;  %v1638_v55 = vpop.f32.mrb[45].mxu1 }
 0x8a1   :  { %v1644_v57 = vadd.f32 %v1597_v54, %v3069_v56  ;;  %v1646_v59 = vadd.f32 %v1638_v55, %v3070_v58  ;;  %v1599_v9 = vpop.f32.mrb[46].mxu0  ;;  %v1640_v17 = vpop.f32.mrb[46].mxu1 }
 0x8a2   :  { %v1819_v19 = vmul.f32 -1.442695, %v1643_v36  ;;  %v1600_v18 = vpop.f32.mrb[47].mxu0  ;;  %v1641_v0 = vpop.f32.mrb[47].mxu1  ;;  %v1821_v21 = vmul.f32 -1.442695, %v1645_v52 }
 0x8a3   :  { %v1820_v20 = vmul.f32 -1.442695, %v1644_v57 }
 0x8a4   :  { %2048 = vpow2.f32 %v1819_v19 }
 0x8a5   :  { %2050 = vpow2.f32 %v1820_v20 }
 0x8a6   :  { %2052 = vtanh.f32 %v1646_v59 }
 0x8a7   :  { %2054 = vpow2.f32 %v1821_v21 }
 0x8ae   :  { %v2049_v22 = vpop.eup %2048 }
 0x8af   :  { %v1656_v28 = vadd.f32 1.0, %v2049_v22  ;;  %v2051_v14 = vpop.eup %2050 }
 0x8b0   :  { %v1657_v10 = vadd.f32 1.0, %v2051_v14  ;;  %v2053_v62 = vpop.eup %2052 }
 0x8b1   :  { %2056 = vrcp.f32 %v1656_v28  ;;  %v2055_v25 = vpop.eup %2054 }
 0x8b2   :  { %2058 = vrcp.f32 %v1657_v10  ;;  %v1658_v33 = vadd.f32 1.0, %v2055_v25 }
 0x8b4   :  { %2060 = vrcp.f32 %v1658_v33 }
 0x8bb   :  { %v2057_v27 = vpop.eup %2056 }
 0x8bc   :  { %v1667_v29 = vmul.f32 %v2057_v27, %v2053_v62  ;;  %v2059_v26 = vpop.eup %2058 }
 0x8bd   :  { %v1666_v34 = vmul.f32 %v2059_v26, %v1550_v2 }
 0x8be   :  { %v2061_v53 = vpop.eup %2060 }
 0x8bf   :  { %v1668_v35 = vadd.f32 %v1667_v29, %v1666_v34 }
 0x8c1   :  { %1682 = vst [vmem:[#allocation19] sm:$0xff] %v1668_v35  ;;  %2062 = vtanh.f32 %v1668_v35 }
 0x8cb   :  { %v2063_v6 = vpop.eup %2062 }
 0x8cc   :  { %v1670_v30 = vmul.f32 %v2063_v6, %v2061_v53 }
 0x8ce   :  { %v1671_v8 = vpack.c.bf16 %v1670_v30, %v1670_v30  ;;  %1680 = vst [vmem:[#allocation17] sm:$0xff] %v1670_v30 }
 0x8cf   :  { %2239 = shalt.err (!%p2236_p10)
}
 0x8d0   :  { %s2240_s21 = scalar_lea.hbm %s3024_s7, 128 }
 0x8d1   :  { %p2241_p11 = scmp.ne.s32.totalorder %s3024_s7, %s2240_s21  ;;  %p2244_p12 = scmp.lt.u32.totalorder %s2240_s21, %s3024_s7 }
 0x8d3   :  { %p2246_p13 = pnand %p2244_p12, %p2241_p11 }
 0x8d5   :  { %2249 = shalt.err (!%p2246_p13)
}
 0x8d6   :  { %1704 = dma.vmem_to_hbm [thread:$0]  %s1702_s0, 128, %s3024_s7, [#allocation18]   ;;  %1673 = vst [vmem:[#allocation16 + $0x1c] sm:$0xf] %v1671_v8 }
 0x8d7   :  { %s2250_s26 = scalar_lea.vmem %s2964_s12, 128  ;;  %p2255_p1 = scmp.lt.s32.totalorder %s2964_s12, %s2964_s12 }
 0x8d8   :  { %p2251_p0 = scmp.ne.s32.totalorder %s2964_s12, %s2250_s26  ;;  %p2256_p2 = scmp.lt.s32.totalorder %s2250_s26, %s2250_s26 }
 0x8da   :  { %p2257_p3 = por %p2256_p2, %p2255_p1 }
 0x8dc   :  { %p2258_p4 = pnand %p2257_p3, %p2251_p0 }
 0x8de   :  { %2261 = shalt.err (!%p2258_p4)
}
 0x8df   :  { %s2262_s1 = scalar_lea.hbm %s3025_s8, 128 }
 0x8e0   :  { %p2263_p5 = scmp.ne.s32.totalorder %s3025_s8, %s2262_s1  ;;  %p2266_p6 = scmp.lt.u32.totalorder %s2262_s1, %s3025_s8 }
 0x8e2   :  { %p2268_p7 = pnand %p2266_p6, %p2263_p5 }
 0x8e4   :  { %2271 = shalt.err (!%p2268_p7)
}
 0x8e5   :  { %1714 = dma.vmem_to_hbm [thread:$0]  %s2964_s12, 128, %s3025_s8, [#allocation18]  }
 0x8e6   :  { %s2272_s27 = scalar_lea.vmem %s2966_s14, 512  ;;  %p2277_p9 = scmp.lt.s32.totalorder %s2966_s14, %s2966_s14 }
 0x8e7   :  { %p2273_p8 = scmp.ne.s32.totalorder %s2966_s14, %s2272_s27  ;;  %p2278_p10 = scmp.lt.s32.totalorder %s2272_s27, %s2272_s27 }
 0x8e9   :  { %p2279_p11 = por %p2278_p10, %p2277_p9 }
 0x8eb   :  { %p2280_p12 = pnand %p2279_p11, %p2273_p8 }
 0x8ed   :  { %2283 = shalt.err (!%p2280_p12)
}
 0x8ee   :  { %s2284_s22 = scalar_lea.hbm %s3023_s6, 512 }
 0x8ef   :  { %p2285_p13 = scmp.ne.s32.totalorder %s3023_s6, %s2284_s22  ;;  %p2288_p0 = scmp.lt.u32.totalorder %s2284_s22, %s3023_s6 }
 0x8f1   :  { %p2290_p1 = pnand %p2288_p0, %p2285_p13 }
 0x8f3   :  { %2293 = shalt.err (!%p2290_p1)
}
 0x8f4   :  { %1694 = dma.vmem_to_hbm [thread:$0]  %s2966_s14, 512, %s3023_s6, [#allocation7], %s2311_s3, %s2311_s3, %s2312_s20  }
 0x8f5   :  { %2302 = dma.done.wait [#allocation7], 512  }
 0x8f6   :  { %2303 = vsyncadd [#allocation7], 4294966784 }
 0x8f7   :  { %2304 = dma.done.wait [#allocation18], 256  }
 0x8f8   :  { %2305 = vsyncadd [#allocation18], 4294967040 }
 0x8f9   :  { %1724 = vsyncpa [#allocation6], 1 }
 0x8fa   :  { %1725 = vsyncpa [#allocation9], 1 }
 0x8fb   :  { %1726 = vsyncpa [#allocation12], 1 }
 0x8fc   :  { %1727 = vsyncpa [#allocation15], 1 }
 0x8fd   :  { %1728 = vsyncpa [#allocation7], 1 }
 0x8fe   :  { %1729 = vsyncpa [#allocation18], 1 }

// kernel: encoder_forward.3
= control target key start
LH: loop header
LB: loop body
LE: loop exit
PB: predicated region body
PF: predicated region fallthrough
CT: control target
= control target key end

     0   :  { %14 = vsyncpa [#allocation6], 0  ;;  %s3014_s0 = inlined_call_operand.hbm [shape: bf16[64,128], index: 0, kind: input, shape index: {}]   ;;  %s3015_s1 = inlined_call_operand.hbm [shape: bf16[128,512], index: 1, kind: input, shape index: {}]   ;;  %s3016_s2 = inlined_call_operand.hbm [shape: bf16[128,512], index: 2, kind: input, shape index: {}]   ;;  %s3017_s3 = inlined_call_operand.hbm [shape: f32[1,512], index: 3, kind: input, shape index: {}]   ;;  %s3018_s4 = inlined_call_operand.hbm [shape: f32[8,128], index: 4, kind: input, shape index: {}]   ;;  %s3019_s5 = inlined_call_operand.hbm [shape: f32[8,128], index: 5, kind: input, shape index: {}]   ;;  %s3020_s6 = inlined_call_operand.hbm [shape: f32[8,8,128], index: 6, kind: output, shape index: {0}]   ;;  %s3021_s7 = inlined_call_operand.hbm [shape: f32[8,128], index: 7, kind: output, shape index: {1}]   ;;  %s3022_s8 = inlined_call_operand.hbm [shape: f32[8,128], index: 8, kind: output, shape index: {2}]  }
   0x1   :  { %15 = vsyncpa [#allocation9], 0 }
   0x2   :  { %16 = vsyncpa [#allocation12], 0 }
   0x3   :  { %17 = vsyncpa [#allocation15], 0 }
   0x4   :  { %18 = vsyncpa [#allocation7], 0 }
   0x5   :  { %19 = vsyncpa [#allocation18], 0  ;;  %s2307_s27 = smov [#allocation8]   ;;  %s2097_s9 = scalar_lea.hbm %s3015_s1, 4096 }
   0x6   :  { %s37_s28 = sshll.u32 %s2307_s27, 4  ;;  %p2098_p0 = scmp.ne.s32.totalorder %s3015_s1, %s2097_s9  ;;  %s38_s28 = int_to_ptr.vmem [resolvable:$true] %s37_s28 }
   0x7   :  { %p2101_p1 = scmp.lt.u32.totalorder %s2097_s9, %s3015_s1 }
   0x9   :  { %p2103_p2 = pnand %p2101_p1, %p2098_p0 }
   0xb   :  { %2106 = shalt.err (!%p2103_p2)
}
   0xc   :  { %s2107_s14 = scalar_lea.vmem %s38_s28, 4096  ;;  %p2112_p4 = scmp.lt.s32.totalorder %s38_s28, %s38_s28 }
   0xd   :  { %p2108_p3 = scmp.ne.s32.totalorder %s38_s28, %s2107_s14  ;;  %p2113_p5 = scmp.lt.s32.totalorder %s2107_s14, %s2107_s14 }
   0xf   :  { %p2114_p6 = por %p2113_p5, %p2112_p4 }
  0x11   :  { %p2115_p7 = pnand %p2114_p6, %p2108_p3 }
  0x13   :  { %2118 = shalt.err (!%p2115_p7)
}
  0x14   :  { %s2308_s15 = smov 256   ;;  %s2309_s16 = smov 16  }
  0x15   :  { %43 = dma.hbm_to_vmem [thread:$0]  %s3015_s1, 4096, %s38_s28, [#allocation9], %s2308_s15, %s2308_s15, %s2309_s16  }
  0x16   :  { %s2310_s19 = smov [#allocation11]   ;;  %s2311_s21 = smov [#allocation5]  }
  0x17   :  { %s62_s20 = sshll.u32 %s2310_s19, 4  ;;  %s25_s22 = sshll.u32 %s2311_s21, 4  ;;  %s63_s20 = int_to_ptr.vmem [resolvable:$true] %s62_s20  ;;  %s26_s22 = int_to_ptr.vmem [resolvable:$true] %s25_s22 }
  0x18   :  { %s2119_s25 = scalar_lea.hbm %s3017_s3, 64 }
  0x19   :  { %p2120_p8 = scmp.ne.s32.totalorder %s3017_s3, %s2119_s25  ;;  %p2123_p9 = scmp.lt.u32.totalorder %s2119_s25, %s3017_s3 }
  0x1b   :  { %p2125_p10 = pnand %p2123_p9, %p2120_p8 }
  0x1d   :  { %2128 = shalt.err (!%p2125_p10)
}
  0x1e   :  { %s2129_s1 = scalar_lea.vmem %s63_s20, 64  ;;  %p2134_p12 = scmp.lt.s32.totalorder %s63_s20, %s63_s20 }
  0x1f   :  { %p2130_p11 = scmp.ne.s32.totalorder %s63_s20, %s2129_s1  ;;  %p2135_p13 = scmp.lt.s32.totalorder %s2129_s1, %s2129_s1 }
  0x21   :  { %p2136_p0 = por %p2135_p13, %p2134_p12 }
  0x23   :  { %p2137_p1 = pnand %p2136_p0, %p2130_p11 }
  0x25   :  { %2140 = shalt.err (!%p2137_p1)
}
  0x26   :  { %65 = dma.hbm_to_vmem [thread:$0]  %s3017_s3, 64, %s63_s20, [#allocation12]  }
  0x27   :  { %s2141_s12 = scalar_lea.hbm %s3014_s0, 512 }
  0x28   :  { %p2142_p2 = scmp.ne.s32.totalorder %s3014_s0, %s2141_s12  ;;  %p2145_p3 = scmp.lt.u32.totalorder %s2141_s12, %s3014_s0 }
  0x2a   :  { %p2147_p4 = pnand %p2145_p3, %p2142_p2 }
  0x2c   :  { %2150 = shalt.err (!%p2147_p4)
}
  0x2d   :  { %s2151_s19 = scalar_lea.vmem %s26_s22, 512  ;;  %p2156_p6 = scmp.lt.s32.totalorder %s26_s22, %s26_s22 }
  0x2e   :  { %p2152_p5 = scmp.ne.s32.totalorder %s26_s22, %s2151_s19  ;;  %p2157_p7 = scmp.lt.s32.totalorder %s2151_s19, %s2151_s19 }
  0x30   :  { %p2158_p8 = por %p2157_p7, %p2156_p6 }
  0x32   :  { %p2159_p9 = pnand %p2158_p8, %p2152_p5 }
  0x34   :  { %2162 = shalt.err (!%p2159_p9)
}
  0x35   :  { %s2312_s3 = smov 64   ;;  %s2313_s20 = smov 4  }
  0x36   :  { %31 = dma.hbm_to_vmem [thread:$0]  %s3014_s0, 512, %s26_s22, [#allocation6], %s2312_s3, %s2312_s3, %s2313_s20  }
  0x37   :  { %s2314_s24 = smov [#allocation10]   ;;  %s2315_s26 = smov [#allocation13]  }
  0x38   :  { %s49_s25 = sshll.u32 %s2314_s24, 4  ;;  %s72_s27 = sshll.u32 %s2315_s26, 4  ;;  %s50_s25 = int_to_ptr.vmem [resolvable:$true] %s49_s25  ;;  %s73_s27 = int_to_ptr.vmem [resolvable:$true] %s72_s27 }
  0x39   :  { %s2163_s1 = scalar_lea.hbm %s3016_s2, 4096 }
  0x3a   :  { %p2164_p10 = scmp.ne.s32.totalorder %s3016_s2, %s2163_s1  ;;  %p2167_p11 = scmp.lt.u32.totalorder %s2163_s1, %s3016_s2 }
  0x3c   :  { %p2169_p12 = pnand %p2167_p11, %p2164_p10 }
  0x3e   :  { %2172 = shalt.err (!%p2169_p12)
}
  0x3f   :  { %s2173_s0 = scalar_lea.vmem %s50_s25, 4096  ;;  %p2178_p0 = scmp.lt.s32.totalorder %s50_s25, %s50_s25 }
  0x40   :  { %p2174_p13 = scmp.ne.s32.totalorder %s50_s25, %s2173_s0  ;;  %p2179_p1 = scmp.lt.s32.totalorder %s2173_s0, %s2173_s0 }
  0x42   :  { %p2180_p2 = por %p2179_p1, %p2178_p0 }
  0x44   :  { %p2181_p3 = pnand %p2180_p2, %p2174_p13 }
  0x46   :  { %2184 = shalt.err (!%p2181_p3)
}
  0x47   :  { %55 = dma.hbm_to_vmem [thread:$0]  %s3016_s2, 4096, %s50_s25, [#allocation9], %s2308_s15, %s2308_s15, %s2309_s16  }
  0x48   :  { %s2185_s17 = scalar_lea.hbm %s3018_s4, 128 }
  0x49   :  { %p2186_p4 = scmp.ne.s32.totalorder %s3018_s4, %s2185_s17  ;;  %p2189_p5 = scmp.lt.u32.totalorder %s2185_s17, %s3018_s4 }
  0x4b   :  { %p2191_p6 = pnand %p2189_p5, %p2186_p4 }
  0x4d   :  { %2194 = shalt.err (!%p2191_p6)
}
  0x4e   :  { %s2195_s21 = scalar_lea.vmem %s73_s27, 128  ;;  %p2200_p8 = scmp.lt.s32.totalorder %s73_s27, %s73_s27 }
  0x4f   :  { %p2196_p7 = scmp.ne.s32.totalorder %s73_s27, %s2195_s21  ;;  %p2201_p9 = scmp.lt.s32.totalorder %s2195_s21, %s2195_s21 }
  0x51   :  { %p2202_p10 = por %p2201_p9, %p2200_p8 }
  0x53   :  { %p2203_p11 = pnand %p2202_p10, %p2196_p7 }
  0x55   :  { %2206 = shalt.err (!%p2203_p11)
}
  0x56   :  { %75 = dma.hbm_to_vmem [thread:$0]  %s3018_s4, 128, %s73_s27, [#allocation12]  }
  0x57   :  { %s2316_s16 = smov [#allocation14]   ;;  %s2207_s26 = scalar_lea.hbm %s3019_s5, 128 }
  0x58   :  { %s82_s23 = sshll.u32 %s2316_s16, 4  ;;  %p2208_p12 = scmp.ne.s32.totalorder %s3019_s5, %s2207_s26  ;;  %s83_s23 = int_to_ptr.vmem [resolvable:$true] %s82_s23 }
  0x59   :  { %p2211_p13 = scmp.lt.u32.totalorder %s2207_s26, %s3019_s5 }
  0x5b   :  { %p2213_p0 = pnand %p2211_p13, %p2208_p12 }
  0x5d   :  { %2216 = shalt.err (!%p2213_p0)
}
  0x5e   :  { %s2217_s9 = scalar_lea.vmem %s83_s23, 128  ;;  %p2222_p2 = scmp.lt.s32.totalorder %s83_s23, %s83_s23 }
  0x5f   :  { %p2218_p1 = scmp.ne.s32.totalorder %s83_s23, %s2217_s9  ;;  %p2223_p3 = scmp.lt.s32.totalorder %s2217_s9, %s2217_s9 }
  0x61   :  { %p2224_p4 = por %p2223_p3, %p2222_p2 }
  0x63   :  { %p2225_p5 = pnand %p2224_p4, %p2218_p1 }
  0x65   :  { %2228 = shalt.err (!%p2225_p5)
}
  0x66   :  { %85 = dma.hbm_to_vmem [thread:$0]  %s3019_s5, 128, %s83_s23, [#allocation15]  }
  0x67   :  { %2295 = dma.done.wait [#allocation6], 512  }
  0x68   :  { %2296 = vsyncadd [#allocation6], 4294966784 }
  0x69   :  { %2297 = dma.done.wait [#allocation9], 8192  }
  0x6a   :  { %2298 = vsyncadd [#allocation9], 4294959104 }
  0x6b   :  { %2299 = dma.done.wait [#allocation12], 192  }
  0x6c   :  { %2300 = vsyncadd [#allocation12], 4294967104 }
  0x6d   :  { %2301 = dma.done.wait [#allocation15], 128  }
  0x6e   :  { %2302 = vsyncadd [#allocation15], 4294967168  ;;  %v3023_v0 = vmov 0   ;;  %v1837_v1 = vld [vmem:[#allocation8 + $0x4] ss:$16 sps:$4 sm:$0xff]   ;;  %v1898_v44 = vld [vmem:[#allocation5 + $0x8] sm:$0xff]  }
  0x6f   :  { %391 = vmatprep.mubr.bf16.mxu0 %v3023_v0  ;;  %464 = vmatprep.mubr.bf16.mxu1 %v3023_v0  ;;  %v1839_v2 = vld [vmem:[#allocation8 + $0xc] ss:$16 sps:$4 sm:$0xff]   ;;  %v1841_v3 = vld [vmem:[#allocation8] ss:$16 sps:$4 sm:$0xff]   ;;  %v1842_v4 = vld [vmem:[#allocation8 + $0x8] ss:$16 sps:$4 sm:$0xff]  }
  0x70   :  { %359 = vmatprep.subr.bf16.mxu0 %v1837_v1  ;;  %432 = vmatprep.subr.bf16.mxu1 %v1839_v2  ;;  %v1843_v5 = vld [vmem:[#allocation8 + $0x24] ss:$16 sps:$4 sm:$0xff]   ;;  %v1845_v6 = vld [vmem:[#allocation8 + $0x2c] ss:$16 sps:$4 sm:$0xff]   ;;  %v1847_v7 = vld [vmem:[#allocation8 + $0x20] ss:$16 sps:$4 sm:$0xff]  }
  0x71   :  { %360 = vmatpush1.bf16.msra.mxu0 %v1841_v3  ;;  %433 = vmatpush1.bf16.msra.mxu1 %v1842_v4  ;;  %v1848_v8 = vld [vmem:[#allocation8 + $0x28] ss:$16 sps:$4 sm:$0xff]   ;;  %v1849_v9 = vld [vmem:[#allocation8 + $0x44] ss:$16 sps:$4 sm:$0xff]   ;;  %v1851_v10 = vld [vmem:[#allocation8 + $0x4c] ss:$16 sps:$4 sm:$0xff]  }
  0x72   :  { %361 = vmatprep.subr.bf16.mxu0 %v1843_v5  ;;  %434 = vmatprep.subr.bf16.mxu1 %v1845_v6  ;;  %v1853_v11 = vld [vmem:[#allocation8 + $0x40] ss:$16 sps:$4 sm:$0xff]   ;;  %v1854_v12 = vld [vmem:[#allocation8 + $0x48] ss:$16 sps:$4 sm:$0xff]   ;;  %v1855_v13 = vld [vmem:[#allocation8 + $0x64] ss:$16 sps:$4 sm:$0xff]  }
  0x73   :  { %v1857_v14 = vld [vmem:[#allocation8 + $0x6c] ss:$16 sps:$4 sm:$0xff]   ;;  %v1859_v15 = vld [vmem:[#allocation8 + $0x60] ss:$16 sps:$4 sm:$0xff]   ;;  %v1860_v16 = vld [vmem:[#allocation8 + $0x68] ss:$16 sps:$4 sm:$0xff]  }
  0x74   :  { %v1861_v17 = vld [vmem:[#allocation8 + $0x84] ss:$16 sps:$4 sm:$0xff]   ;;  %v1863_v18 = vld [vmem:[#allocation8 + $0x8c] ss:$16 sps:$4 sm:$0xff]   ;;  %v1865_v19 = vld [vmem:[#allocation8 + $0x80] ss:$16 sps:$4 sm:$0xff]  }
  0x75   :  { %362 = vmatpush1.bf16.msra.mxu0 %v1847_v7  ;;  %435 = vmatpush1.bf16.msra.mxu1 %v1848_v8  ;;  %v1866_v20 = vld [vmem:[#allocation8 + $0x88] ss:$16 sps:$4 sm:$0xff]   ;;  %v1867_v21 = vld [vmem:[#allocation8 + $0xa4] ss:$16 sps:$4 sm:$0xff]   ;;  %v1869_v22 = vld [vmem:[#allocation8 + $0xac] ss:$16 sps:$4 sm:$0xff]   ;;  %v155_v8 = vlaneseq }
  0x76   :  { %363 = vmatprep.subr.bf16.mxu0 %v1849_v9  ;;  %436 = vmatprep.subr.bf16.mxu1 %v1851_v10  ;;  %v1871_v23 = vld [vmem:[#allocation8 + $0xa0] ss:$16 sps:$4 sm:$0xff]   ;;  %v1872_v24 = vld [vmem:[#allocation8 + $0xa8] ss:$16 sps:$4 sm:$0xff]   ;;  %v1873_v25 = vld [vmem:[#allocation8 + $0xc4] ss:$16 sps:$4 sm:$0xff]  }
  0x77   :  { %v1875_v26 = vld [vmem:[#allocation8 + $0xcc] ss:$16 sps:$4 sm:$0xff]   ;;  %v1877_v27 = vld [vmem:[#allocation8 + $0xc0] ss:$16 sps:$4 sm:$0xff]   ;;  %v1878_v28 = vld [vmem:[#allocation8 + $0xc8] ss:$16 sps:$4 sm:$0xff]  }
  0x78   :  { %v1879_v29 = vld [vmem:[#allocation8 + $0xe4] ss:$16 sps:$4 sm:$0xff]   ;;  %v1881_v30 = vld [vmem:[#allocation8 + $0xec] ss:$16 sps:$4 sm:$0xff]   ;;  %v1883_v31 = vld [vmem:[#allocation8 + $0xe0] ss:$16 sps:$4 sm:$0xff]  }
  0x79   :  { %364 = vmatpush1.bf16.msra.mxu0 %v1853_v11  ;;  %437 = vmatpush1.bf16.msra.mxu1 %v1854_v12  ;;  %v1884_v32 = vld [vmem:[#allocation8 + $0xe8] ss:$16 sps:$4 sm:$0xff]   ;;  %v2448_v33 = vld [vmem:[#allocation10 + $0x4] ss:$16 sps:$4 sm:$0xff]   ;;  %v2450_v34 = vld [vmem:[#allocation10 + $0xc] ss:$16 sps:$4 sm:$0xff]  }
  0x7a   :  { %365 = vmatprep.subr.bf16.mxu0 %v1855_v13  ;;  %438 = vmatprep.subr.bf16.mxu1 %v1857_v14  ;;  %v1885_v35 = vld [vmem:[#allocation5] sm:$0xff]   ;;  %v2454_v37 = vld [vmem:[#allocation10 + $0x8] ss:$16 sps:$4 sm:$0xff]   ;;  %v2460_v39 = vld [vmem:[#allocation10 + $0x2c] ss:$16 sps:$4 sm:$0xff]   ;;  %v156_v9 = vshrl.u32 %v155_v8, 7 }
  0x7b   :  { %v2452_v36 = vld [vmem:[#allocation10] ss:$16 sps:$4 sm:$0xff]   ;;  %v2458_v38 = vld [vmem:[#allocation10 + $0x24] ss:$16 sps:$4 sm:$0xff]   ;;  %v2466_v41 = vld [vmem:[#allocation10 + $0x28] ss:$16 sps:$4 sm:$0xff]  }
  0x7c   :  { %v2462_v40 = vld [vmem:[#allocation10 + $0x20] ss:$16 sps:$4 sm:$0xff]   ;;  %v2470_v42 = vld [vmem:[#allocation10 + $0x44] ss:$16 sps:$4 sm:$0xff]   ;;  %v2472_v43 = vld [vmem:[#allocation10 + $0x4c] ss:$16 sps:$4 sm:$0xff]  }
  0x7d   :  { %366 = vmatpush1.bf16.msra.mxu0 %v1859_v15  ;;  %439 = vmatpush1.bf16.msra.mxu1 %v1860_v16  ;;  %v2476_v45 = vld [vmem:[#allocation10 + $0x40] ss:$16 sps:$4 sm:$0xff]   ;;  %v2478_v46 = vld [vmem:[#allocation10 + $0x48] ss:$16 sps:$4 sm:$0xff]   ;;  %v2482_v47 = vld [vmem:[#allocation10 + $0x64] ss:$16 sps:$4 sm:$0xff]  }
  0x7e   :  { %367 = vmatprep.subr.bf16.mxu0 %v1861_v17  ;;  %440 = vmatprep.subr.bf16.mxu1 %v1863_v18  ;;  %v2486_v48 = vld [vmem:[#allocation10 + $0x6c] ss:$16 sps:$4 sm:$0xff]   ;;  %v2488_v49 = vld [vmem:[#allocation10 + $0x60] ss:$16 sps:$4 sm:$0xff]   ;;  %v2490_v50 = vld [vmem:[#allocation10 + $0x68] ss:$16 sps:$4 sm:$0xff]  }
  0x7f   :  { %v2494_v51 = vld [vmem:[#allocation10 + $0x84] ss:$16 sps:$4 sm:$0xff]   ;;  %v2498_v52 = vld [vmem:[#allocation10 + $0x8c] ss:$16 sps:$4 sm:$0xff]   ;;  %v2504_v54 = vld [vmem:[#allocation10 + $0x80] ss:$16 sps:$4 sm:$0xff]  }
  0x80   :  { %v1911_v53 = vld [vmem:[#allocation5 + $0x10] sm:$0xff]   ;;  %v2506_v55 = vld [vmem:[#allocation10 + $0x88] ss:$16 sps:$4 sm:$0xff]   ;;  %v2512_v57 = vld [vmem:[#allocation10 + $0xac] ss:$16 sps:$4 sm:$0xff]   ;;  %v165_v10 = vsub.s32 2, %v156_v9 }
  0x81   :  { %368 = vmatpush1.bf16.msra.mxu0 %v1865_v19  ;;  %441 = vmatpush1.bf16.msra.mxu1 %v1866_v20  ;;  %v2510_v56 = vld [vmem:[#allocation10 + $0xa4] ss:$16 sps:$4 sm:$0xff]   ;;  %v2516_v58 = vld [vmem:[#allocation10 + $0xa0] ss:$16 sps:$4 sm:$0xff]   ;;  %v2518_v59 = vld [vmem:[#allocation10 + $0xa8] ss:$16 sps:$4 sm:$0xff]  }
  0x82   :  { %369 = vmatprep.subr.bf16.mxu0 %v1867_v21  ;;  %442 = vmatprep.subr.bf16.mxu1 %v1869_v22  ;;  %v2522_v60 = vld [vmem:[#allocation10 + $0xc4] ss:$16 sps:$4 sm:$0xff]   ;;  %v2524_v61 = vld [vmem:[#allocation10 + $0xcc] ss:$16 sps:$4 sm:$0xff]   ;;  %v2530_v63 = vld [vmem:[#allocation10 + $0xc0] ss:$16 sps:$4 sm:$0xff]  }
  0x83   :  { %v1924_v62 = vld [vmem:[#allocation5 + $0x18] sm:$0xff]   ;;  %v2536_v2 = vld [vmem:[#allocation10 + $0xe4] ss:$16 sps:$4 sm:$0xff]   ;;  %v2542_v4 = vld [vmem:[#allocation10 + $0xe0] ss:$16 sps:$4 sm:$0xff]   ;;  %v169_v11 = vsub.s32 3, %v156_v9 }
  0x84   :  { %v2532_v1 = vld [vmem:[#allocation10 + $0xc8] ss:$16 sps:$4 sm:$0xff]   ;;  %v2538_v3 = vld [vmem:[#allocation10 + $0xec] ss:$16 sps:$4 sm:$0xff]   ;;  %v157_v12 = vsub.s32 0, %v156_v9  ;;  %v161_v14 = vsub.s32 1, %v156_v9 }
  0x85   :  { %370 = vmatpush1.bf16.msra.mxu0 %v1871_v23  ;;  %443 = vmatpush1.bf16.msra.mxu1 %v1872_v24  ;;  %v2544_v5 = vld [vmem:[#allocation10 + $0xe8] ss:$16 sps:$4 sm:$0xff]   ;;  %v153_v13 = vld [vmem:[#allocation11] sm:$0xf]  ;;  %s2318_s5 = smov [#allocation17]   ;;  %s2319_s11 = smov [#allocation16]  }
  0x86   :  { %371 = vmatprep.subr.bf16.mxu0 %v1873_v25  ;;  %444 = vmatprep.subr.bf16.mxu1 %v1875_v26  ;;  %v109_v6 = vld [vmem:[#allocation13] sm:$0xff]  ;;  %v2588_v15 = vrot.slane %v153_v13, %v165_v10  ;;  %v2594_v18 = vrot.slane %v153_v13, %v169_v11  ;;  %v158_v19 = vrot.slane %v153_v13, %v157_v12  ;;  %s1700_s10 = sshll.u32 %s2318_s5, 4  ;;  %s1687_s0 = sshll.u32 %s2319_s11, 4  ;;  %s1701_s10 = int_to_ptr.vmem [resolvable:$true] %s1700_s10  ;;  %s2964_s0 = int_to_ptr.vmem [resolvable:$true] %s1687_s0 }
  0x87   :  { %v575_v7 = vpack.c.bf16 %v109_v6, %v109_v6  ;;  %v162_v22 = vrot.slane %v153_v13, %v161_v14  ;;  %s2320_s22 = smov [#allocation19]   ;;  %s2229_s13 = scalar_lea.vmem %s1701_s10, 128 }
  0x88   :  { %s1710_s12 = sshll.u32 %s2320_s22, 4  ;;  %p2230_p6 = scmp.ne.s32.totalorder %s1701_s10, %s2229_s13  ;;  %s2966_s12 = int_to_ptr.vmem [resolvable:$true] %s1710_s12 }
  0x89   :  { %372 = vmatpush1.bf16.msra.mxu0 %v1877_v27  ;;  %445 = vmatpush1.bf16.msra.mxu1 %v1878_v28  ;;  %p2234_p7 = scmp.lt.s32.totalorder %s1701_s10, %s1701_s10  ;;  %p2235_p8 = scmp.lt.s32.totalorder %s2229_s13, %s2229_s13 }
  0x8a   :  { %373 = vmatprep.subr.bf16.mxu0 %v1879_v29  ;;  %446 = vmatprep.subr.bf16.mxu1 %v1881_v30 }
  0x8b   :  { %p2236_p9 = por %p2235_p8, %p2234_p7 }
  0x8d   :  { %374 = vmatpush1.bf16.msra.mxu0 %v1883_v31  ;;  %447 = vmatpush1.bf16.msra.mxu1 %v1884_v32  ;;  %p2237_p10 = pnand %p2236_p9, %p2230_p6 }
  0x8e   :  { %736 = vmatprep.subr.bf16.mxu0 %v2448_v33  ;;  %777 = vmatprep.subr.bf16.mxu1 %v2450_v34 }
  0x90   :  { %392 = vmatmul.mubr.bf16.vlgmr.msra.gmra.mrb[0].mxu0 %v1885_v35  ;;  %465 = vmatmul.mubr.bf16.vlgmr.msra.gmra.mrb[0].mxu1 %v1885_v35 }
  0x91   :  { %737 = vmatpush1.bf16.msra.mxu0 %v2452_v36  ;;  %778 = vmatpush1.bf16.msra.mxu1 %v2454_v37 }
  0x92   :  { %738 = vmatprep.subr.bf16.mxu0 %v2458_v38  ;;  %779 = vmatprep.subr.bf16.mxu1 %v2460_v39 }
  0x93   :  { %401 = vmatprep.mubr.bf16.mxu0 %v3023_v0  ;;  %474 = vmatprep.mubr.bf16.mxu1 %v3023_v0 }
  0x95   :  { %739 = vmatpush1.bf16.msra.mxu0 %v2462_v40  ;;  %780 = vmatpush1.bf16.msra.mxu1 %v2466_v41 }
  0x96   :  { %740 = vmatprep.subr.bf16.mxu0 %v2470_v42  ;;  %781 = vmatprep.subr.bf16.mxu1 %v2472_v43 }
  0x98   :  { %402 = vmatmul.mubr.bf16.gmra.mrb[4].mxu0 %v1898_v44  ;;  %475 = vmatmul.mubr.bf16.gmra.mrb[4].mxu1 %v1898_v44 }
  0x99   :  { %741 = vmatpush1.bf16.msra.mxu0 %v2476_v45  ;;  %782 = vmatpush1.bf16.msra.mxu1 %v2478_v46 }
  0x9a   :  { %742 = vmatprep.subr.bf16.mxu0 %v2482_v47  ;;  %783 = vmatprep.subr.bf16.mxu1 %v2486_v48 }
  0x9b   :  { %411 = vmatprep.mubr.bf16.mxu0 %v3023_v0  ;;  %484 = vmatprep.mubr.bf16.mxu1 %v3023_v0 }
  0x9d   :  { %743 = vmatpush1.bf16.msra.mxu0 %v2488_v49  ;;  %784 = vmatpush1.bf16.msra.mxu1 %v2490_v50 }
  0x9e   :  { %744 = vmatprep.subr.bf16.mxu0 %v2494_v51  ;;  %785 = vmatprep.subr.bf16.mxu1 %v2498_v52 }
  0xa0   :  { %412 = vmatmul.mubr.bf16.gmra.mrb[8].mxu0 %v1911_v53  ;;  %485 = vmatmul.mubr.bf16.gmra.mrb[8].mxu1 %v1911_v53 }
  0xa1   :  { %745 = vmatpush1.bf16.msra.mxu0 %v2504_v54  ;;  %786 = vmatpush1.bf16.msra.mxu1 %v2506_v55 }
  0xa2   :  { %746 = vmatprep.subr.bf16.mxu0 %v2510_v56  ;;  %787 = vmatprep.subr.bf16.mxu1 %v2512_v57 }
  0xa3   :  { %421 = vmatprep.mubr.bf16.mxu0 %v3023_v0  ;;  %494 = vmatprep.mubr.bf16.mxu1 %v3023_v0 }
  0xa5   :  { %747 = vmatpush1.bf16.msra.mxu0 %v2516_v58  ;;  %788 = vmatpush1.bf16.msra.mxu1 %v2518_v59 }
  0xa6   :  { %748 = vmatprep.subr.bf16.mxu0 %v2522_v60  ;;  %789 = vmatprep.subr.bf16.mxu1 %v2524_v61 }
  0xa8   :  { %422 = vmatmul.mubr.bf16.gmra.mrb[12].mxu0 %v1924_v62  ;;  %495 = vmatmul.mubr.bf16.gmra.mrb[12].mxu1 %v1924_v62 }
  0xa9   :  { %749 = vmatpush1.bf16.msra.mxu0 %v2530_v63  ;;  %790 = vmatpush1.bf16.msra.mxu1 %v2532_v1 }
  0xaa   :  { %750 = vmatprep.subr.bf16.mxu0 %v2536_v2  ;;  %791 = vmatprep.subr.bf16.mxu1 %v2538_v3 }
  0xab   :  { %768 = vmatprep.mubr.bf16.mxu0 %v3023_v0  ;;  %809 = vmatprep.mubr.bf16.mxu1 %v3023_v0 }
  0xad   :  { %751 = vmatpush1.bf16.msra.mxu0 %v2542_v4  ;;  %792 = vmatpush1.bf16.msra.mxu1 %v2544_v5 }
  0xae   :  { %853 = vmatprep.subr.bf16.mxu0 %v2448_v33  ;;  %894 = vmatprep.subr.bf16.mxu1 %v2450_v34 }
  0xb0   :  { %769 = vmatmul.mubr.bf16.vlgmr.msra.gmra.mrb[16].mxu0 %v575_v7  ;;  %810 = vmatmul.mubr.bf16.vlgmr.msra.gmra.mrb[16].mxu1 %v575_v7 }
  0xb1   :  { %854 = vmatpush1.bf16.msra.mxu0 %v2452_v36  ;;  %895 = vmatpush1.bf16.msra.mxu1 %v2454_v37 }
  0xb2   :  { %855 = vmatprep.subr.bf16.mxu0 %v2458_v38  ;;  %896 = vmatprep.subr.bf16.mxu1 %v2460_v39 }
  0xb3   :  { %885 = vmatprep.mubr.bf16.mxu0 %v3023_v0  ;;  %926 = vmatprep.mubr.bf16.mxu1 %v3023_v0 }
  0xb5   :  { %856 = vmatpush1.bf16.msra.mxu0 %v2462_v40  ;;  %897 = vmatpush1.bf16.msra.mxu1 %v2466_v41 }
  0xb6   :  { %857 = vmatprep.subr.bf16.mxu0 %v2470_v42  ;;  %898 = vmatprep.subr.bf16.mxu1 %v2472_v43 }
  0xb9   :  { %858 = vmatpush1.bf16.msra.mxu0 %v2476_v45  ;;  %899 = vmatpush1.bf16.msra.mxu1 %v2478_v46 }
  0xba   :  { %859 = vmatprep.subr.bf16.mxu0 %v2482_v47  ;;  %900 = vmatprep.subr.bf16.mxu1 %v2486_v48 }
  0xbd   :  { %860 = vmatpush1.bf16.msra.mxu0 %v2488_v49  ;;  %901 = vmatpush1.bf16.msra.mxu1 %v2490_v50 }
  0xbe   :  { %861 = vmatprep.subr.bf16.mxu0 %v2494_v51  ;;  %902 = vmatprep.subr.bf16.mxu1 %v2498_v52 }
  0xc1   :  { %862 = vmatpush1.bf16.msra.mxu0 %v2504_v54  ;;  %903 = vmatpush1.bf16.msra.mxu1 %v2506_v55 }
  0xc2   :  { %863 = vmatprep.subr.bf16.mxu0 %v2510_v56  ;;  %904 = vmatprep.subr.bf16.mxu1 %v2512_v57 }
  0xc5   :  { %864 = vmatpush1.bf16.msra.mxu0 %v2516_v58  ;;  %905 = vmatpush1.bf16.msra.mxu1 %v2518_v59 }
  0xc6   :  { %865 = vmatprep.subr.bf16.mxu0 %v2522_v60  ;;  %906 = vmatprep.subr.bf16.mxu1 %v2524_v61 }
  0xc9   :  { %866 = vmatpush1.bf16.msra.mxu0 %v2530_v63  ;;  %907 = vmatpush1.bf16.msra.mxu1 %v2532_v1 }
  0xca   :  { %867 = vmatprep.subr.bf16.mxu0 %v2536_v2  ;;  %908 = vmatprep.subr.bf16.mxu1 %v2538_v3 }
  0xcd   :  { %868 = vmatpush1.bf16.msra.mxu0 %v2542_v4  ;;  %909 = vmatpush1.bf16.msra.mxu1 %v2544_v5 }
  0xce   :  { %971 = vmatprep.subr.bf16.mxu0 %v2448_v33  ;;  %1012 = vmatprep.subr.bf16.mxu1 %v2450_v34 }
 0x163   :  { %v2590_v16 = vpop.f32.mrb[0].mxu0  ;;  %v2592_v17 = vpop.f32.mrb[0].mxu1 }
 0x164   :  { %v395_v20 = vpop.f32.mrb[1].mxu0  ;;  %v468_v21 = vpop.f32.mrb[1].mxu1 }
 0x165   :  { %v397_v23 = vpop.f32.mrb[2].mxu0  ;;  %v470_v24 = vpop.f32.mrb[2].mxu1 }
 0x166   :  { %v2596_v25 = vadd.f32 %v397_v23, %v158_v19  ;;  %v399_v26 = vpop.f32.mrb[3].mxu0  ;;  %v2599_v27 = vadd.f32 %v470_v24, %v2588_v15  ;;  %v472_v28 = vpop.f32.mrb[3].mxu1 }
 0x167   :  { %v2601_v29 = vadd.f32 %v399_v26, %v162_v22  ;;  %v2604_v30 = vadd.f32 %v472_v28, %v2594_v18 }
 0x16b   :  { %v403_v31 = vpop.f32.mrb[4].mxu0  ;;  %v476_v32 = vpop.f32.mrb[4].mxu1 }
 0x16c   :  { %v2606_v35 = vadd.f32 %v403_v31, %v158_v19  ;;  %v405_v44 = vpop.f32.mrb[5].mxu0  ;;  %v2609_v53 = vadd.f32 %v476_v32, %v2588_v15  ;;  %v478_v62 = vpop.f32.mrb[5].mxu1 }
 0x16d   :  { %v2611_v6 = vadd.f32 %v405_v44, %v162_v22  ;;  %v407_v7 = vpop.f32.mrb[6].mxu0  ;;  %v2614_v8 = vadd.f32 %v478_v62, %v2594_v18  ;;  %v480_v9 = vpop.f32.mrb[6].mxu1 }
 0x16e   :  { %v2616_v10 = vadd.f32 %v407_v7, %v158_v19  ;;  %v409_v11 = vpop.f32.mrb[7].mxu0  ;;  %v2619_v12 = vadd.f32 %v480_v9, %v2588_v15  ;;  %v482_v13 = vpop.f32.mrb[7].mxu1 }
 0x16f   :  { %3025 = vst [vmem:[#allocation26_spill] sm:$0xff] %v2614_v8  ;;  %v2621_v14 = vadd.f32 %v409_v11, %v162_v22  ;;  %v2624_v23 = vadd.f32 %v482_v13, %v2594_v18 }
 0x170   :  { %3026 = vst [vmem:[#allocation27_spill] sm:$0xff] %v2616_v10  ;;  %3027 = vst [vmem:[#allocation28_spill] sm:$0xff] %v2619_v12 }
 0x171   :  { %3028 = vst [vmem:[#allocation29_spill] sm:$0xff] %v2621_v14  ;;  %3029 = vst [vmem:[#allocation30_spill] sm:$0xff] %v2624_v23 }
 0x173   :  { %v413_v24 = vpop.f32.mrb[8].mxu0  ;;  %v486_v26 = vpop.f32.mrb[8].mxu1 }
 0x174   :  { %v2626_v28 = vadd.f32 %v413_v24, %v158_v19  ;;  %v415_v31 = vpop.f32.mrb[9].mxu0  ;;  %v2629_v32 = vadd.f32 %v486_v26, %v2588_v15  ;;  %v488_v44 = vpop.f32.mrb[9].mxu1 }
 0x175   :  { %v2631_v62 = vadd.f32 %v415_v31, %v162_v22  ;;  %v417_v7 = vpop.f32.mrb[10].mxu0  ;;  %v2634_v9 = vadd.f32 %v488_v44, %v2594_v18  ;;  %v490_v11 = vpop.f32.mrb[10].mxu1 }
 0x176   :  { %3030 = vst [vmem:[#allocation31_spill] sm:$0xff] %v2626_v28  ;;  %3031 = vst [vmem:[#allocation32_spill] sm:$0xff] %v2629_v32  ;;  %v2636_v0 = vadd.f32 %v417_v7, %v158_v19  ;;  %v419_v13 = vpop.f32.mrb[11].mxu0  ;;  %v2639_v23 = vadd.f32 %v490_v11, %v2588_v15  ;;  %v492_v24 = vpop.f32.mrb[11].mxu1 }
 0x177   :  { %3032 = vst [vmem:[#allocation33_spill] sm:$0xff] %v2631_v62  ;;  %3033 = vst [vmem:[#allocation34_spill] sm:$0xff] %v2634_v9  ;;  %v2641_v28 = vadd.f32 %v419_v13, %v162_v22  ;;  %v2644_v26 = vadd.f32 %v492_v24, %v2594_v18 }
 0x178   :  { %3034 = vst [vmem:[#allocation35_spill] sm:$0xff] %v2636_v0  ;;  %3035 = vst [vmem:[#allocation36_spill] sm:$0xff] %v2639_v23 }
 0x179   :  { %3036 = vst [vmem:[#allocation37_spill] sm:$0xff] %v2641_v28  ;;  %3037 = vst [vmem:[#allocation38_spill] sm:$0xff] %v2644_v26 }
 0x17b   :  { %v423_v32 = vpop.f32.mrb[12].mxu0  ;;  %v496_v31 = vpop.f32.mrb[12].mxu1 }
 0x17c   :  { %v2646_v62 = vadd.f32 %v423_v32, %v158_v19  ;;  %v425_v14 = vpop.f32.mrb[13].mxu0  ;;  %v2649_v44 = vadd.f32 %v496_v31, %v2588_v15  ;;  %v498_v7 = vpop.f32.mrb[13].mxu1 }
 0x17d   :  { %v2651_v0 = vadd.f32 %v425_v14, %v162_v22  ;;  %v427_v9 = vpop.f32.mrb[14].mxu0  ;;  %v2654_v11 = vadd.f32 %v498_v7, %v2594_v18  ;;  %v500_v13 = vpop.f32.mrb[14].mxu1  ;;  %v394_v14 = vadd.f32 %v2590_v16, %v158_v19  ;;  %v396_v7 = vadd.f32 %v395_v20, %v162_v22 }
 0x17e   :  { %3038 = vst [vmem:[#allocation39_spill] sm:$0xff] %v2646_v62  ;;  %3039 = vst [vmem:[#allocation40_spill] sm:$0xff] %v2649_v44  ;;  %v2656_v28 = vadd.f32 %v427_v9, %v158_v19  ;;  %v429_v24 = vpop.f32.mrb[15].mxu0  ;;  %v2659_v26 = vadd.f32 %v500_v13, %v2588_v15  ;;  %v502_v32 = vpop.f32.mrb[15].mxu1 }
 0x17f   :  { %3040 = vst [vmem:[#allocation41_spill] sm:$0xff] %v2651_v0  ;;  %3041 = vst [vmem:[#allocation42_spill] sm:$0xff] %v2654_v11  ;;  %v2661_v62 = vadd.f32 %v429_v24, %v162_v22  ;;  %v2664_v31 = vadd.f32 %v502_v32, %v2594_v18  ;;  %v467_v0 = vadd.f32 %v2592_v17, %v2588_v15 }
 0x180   :  { %3042 = vst [vmem:[#allocation43_spill] sm:$0xff] %v2656_v28  ;;  %3043 = vst [vmem:[#allocation44_spill] sm:$0xff] %v2659_v26  ;;  %v469_v11 = vadd.f32 %v468_v21, %v2594_v18 }
 0x181   :  { %3044 = vst [vmem:[#allocation45_spill] sm:$0xff] %v2661_v62  ;;  %3045 = vst [vmem:[#allocation46_spill] sm:$0xff] %v2664_v31 }
 0x183   :  { %v770_v9 = vpop.f32.mrb[16].mxu0  ;;  %v811_v28 = vpop.f32.mrb[16].mxu1 }
 0x184   :  { %v818_v44 = vadd.f32 %v770_v9, %v394_v14  ;;  %v820_v23 = vadd.f32 %v811_v28, %v467_v0  ;;  %v772_v13 = vpop.f32.mrb[17].mxu0  ;;  %v813_v26 = vpop.f32.mrb[17].mxu1  ;;  %v111_v28 = vld [vmem:[#allocation14] sm:$0xff]  ;;  %v3046_v14 = vmov 0  }
 0x185   :  { %v819_v12 = vadd.f32 %v772_v13, %v396_v7  ;;  %v821_v24 = vadd.f32 %v813_v26, %v469_v11  ;;  %v774_v62 = vpop.f32.mrb[18].mxu0  ;;  %v815_v10 = vpop.f32.mrb[18].mxu1 }
 0x186   :  { %v1797_v32 = vmul.f32 -1.442695, %v818_v44  ;;  %v775_v31 = vpop.f32.mrb[19].mxu0  ;;  %v816_v8 = vpop.f32.mrb[19].mxu1  ;;  %v1799_v15 = vmul.f32 -1.442695, %v820_v23 }
 0x187   :  { %v1798_v16 = vmul.f32 -1.442695, %v819_v12 }
 0x188   :  { %1937 = vpow2.f32 %v1797_v32 }
 0x189   :  { %1939 = vpow2.f32 %v1798_v16 }
 0x18a   :  { %1941 = vtanh.f32 %v821_v24 }
 0x18b   :  { %1943 = vpow2.f32 %v1799_v15 }
 0x192   :  { %v1938_v17 = vpop.eup %1937 }
 0x193   :  { %v831_v19 = vadd.f32 1.0, %v1938_v17  ;;  %v1940_v18 = vpop.eup %1939 }
 0x194   :  { %v832_v0 = vadd.f32 1.0, %v1940_v18  ;;  %v1942_v20 = vpop.eup %1941 }
 0x195   :  { %1945 = vrcp.f32 %v831_v19  ;;  %v1944_v21 = vpop.eup %1943 }
 0x196   :  { %1947 = vrcp.f32 %v832_v0  ;;  %v833_v26 = vadd.f32 1.0, %v1944_v21 }
 0x198   :  { %1949 = vrcp.f32 %v833_v26 }
 0x19f   :  { %v1946_v22 = vpop.eup %1945 }
 0x1a0   :  { %v842_v10 = vmul.f32 %v1946_v22, %v1942_v20  ;;  %v1948_v62 = vpop.eup %1947 }
 0x1a1   :  { %v841_v8 = vmul.f32 %v1948_v62, %v111_v28 }
 0x1a2   :  { %v1950_v23 = vpop.eup %1949 }
 0x1a3   :  { %v2670_v12 = vadd.f32 %v842_v10, %v841_v8 }
 0x1a5   :  { %1951 = vtanh.f32 %v2670_v12 }
 0x1af   :  { %v1952_v44 = vpop.eup %1951 }
 0x1b0   :  { %v845_v11 = vmul.f32 %v1952_v44, %v1950_v23 }
 0x1b2   :  { %846 = vst [vmem:[#allocation16] sm:$0xff] %v845_v11  ;;  %v852_v31 = vpack.c.bf16 %v845_v11, %v845_v11 }
 0x1b4   :  { %886 = vmatmul.mubr.bf16.vlgmr.msra.gmra.mrb[20].mxu0 %v852_v31  ;;  %927 = vmatmul.mubr.bf16.vlgmr.msra.gmra.mrb[20].mxu1 %v852_v31 }
 0x1b5   :  { %972 = vmatpush1.bf16.msra.mxu0 %v2452_v36  ;;  %1013 = vmatpush1.bf16.msra.mxu1 %v2454_v37 }
 0x1b6   :  { %973 = vmatprep.subr.bf16.mxu0 %v2458_v38  ;;  %1014 = vmatprep.subr.bf16.mxu1 %v2460_v39 }
 0x1b7   :  { %1003 = vmatprep.mubr.bf16.mxu0 %v3046_v14  ;;  %1044 = vmatprep.mubr.bf16.mxu1 %v3046_v14 }
 0x1b9   :  { %974 = vmatpush1.bf16.msra.mxu0 %v2462_v40  ;;  %1015 = vmatpush1.bf16.msra.mxu1 %v2466_v41 }
 0x1ba   :  { %975 = vmatprep.subr.bf16.mxu0 %v2470_v42  ;;  %1016 = vmatprep.subr.bf16.mxu1 %v2472_v43 }
 0x1bd   :  { %976 = vmatpush1.bf16.msra.mxu0 %v2476_v45  ;;  %1017 = vmatpush1.bf16.msra.mxu1 %v2478_v46 }
 0x1be   :  { %977 = vmatprep.subr.bf16.mxu0 %v2482_v47  ;;  %1018 = vmatprep.subr.bf16.mxu1 %v2486_v48 }
 0x1c1   :  { %978 = vmatpush1.bf16.msra.mxu0 %v2488_v49  ;;  %1019 = vmatpush1.bf16.msra.mxu1 %v2490_v50 }
 0x1c2   :  { %979 = vmatprep.subr.bf16.mxu0 %v2494_v51  ;;  %1020 = vmatprep.subr.bf16.mxu1 %v2498_v52 }
 0x1c5   :  { %980 = vmatpush1.bf16.msra.mxu0 %v2504_v54  ;;  %1021 = vmatpush1.bf16.msra.mxu1 %v2506_v55 }
 0x1c6   :  { %981 = vmatprep.subr.bf16.mxu0 %v2510_v56  ;;  %1022 = vmatprep.subr.bf16.mxu1 %v2512_v57 }
 0x1c9   :  { %982 = vmatpush1.bf16.msra.mxu0 %v2516_v58  ;;  %1023 = vmatpush1.bf16.msra.mxu1 %v2518_v59 }
 0x1ca   :  { %983 = vmatprep.subr.bf16.mxu0 %v2522_v60  ;;  %1024 = vmatprep.subr.bf16.mxu1 %v2524_v61 }
 0x1cd   :  { %984 = vmatpush1.bf16.msra.mxu0 %v2530_v63  ;;  %1025 = vmatpush1.bf16.msra.mxu1 %v2532_v1 }
 0x1ce   :  { %985 = vmatprep.subr.bf16.mxu0 %v2536_v2  ;;  %1026 = vmatprep.subr.bf16.mxu1 %v2538_v3 }
 0x1d1   :  { %986 = vmatpush1.bf16.msra.mxu0 %v2542_v4  ;;  %1027 = vmatpush1.bf16.msra.mxu1 %v2544_v5 }
 0x1d2   :  { %1089 = vmatprep.subr.bf16.mxu0 %v2448_v33  ;;  %1130 = vmatprep.subr.bf16.mxu1 %v2450_v34 }
 0x287   :  { %v887_v7 = vpop.f32.mrb[20].mxu0  ;;  %v928_v9 = vpop.f32.mrb[20].mxu1 }
 0x288   :  { %v935_v13 = vadd.f32 %v887_v7, %v2596_v25  ;;  %v937_v24 = vadd.f32 %v928_v9, %v2599_v27  ;;  %v889_v32 = vpop.f32.mrb[21].mxu0  ;;  %v930_v16 = vpop.f32.mrb[21].mxu1 }
 0x289   :  { %v936_v15 = vadd.f32 %v889_v32, %v2601_v29  ;;  %v938_v17 = vadd.f32 %v930_v16, %v2604_v30  ;;  %v891_v19 = vpop.f32.mrb[22].mxu0  ;;  %v932_v18 = vpop.f32.mrb[22].mxu1 }
 0x28a   :  { %v1800_v0 = vmul.f32 -1.442695, %v935_v13  ;;  %v892_v20 = vpop.f32.mrb[23].mxu0  ;;  %v933_v21 = vpop.f32.mrb[23].mxu1  ;;  %v1802_v28 = vmul.f32 -1.442695, %v937_v24 }
 0x28b   :  { %v1801_v22 = vmul.f32 -1.442695, %v936_v15 }
 0x28c   :  { %1953 = vpow2.f32 %v1800_v0  ;;  %v3047_v0 = vld [vmem:[#allocation26_spill] sm:$0xff] }
 0x28d   :  { %1955 = vpow2.f32 %v1801_v22 }
 0x28e   :  { %1957 = vtanh.f32 %v938_v17 }
 0x28f   :  { %1959 = vpow2.f32 %v1802_v28 }
 0x296   :  { %v1954_v10 = vpop.eup %1953 }
 0x297   :  { %v948_v62 = vadd.f32 1.0, %v1954_v10  ;;  %v1956_v25 = vpop.eup %1955 }
 0x298   :  { %v949_v27 = vadd.f32 1.0, %v1956_v25  ;;  %v1958_v29 = vpop.eup %1957 }
 0x299   :  { %1961 = vrcp.f32 %v948_v62  ;;  %v1960_v26 = vpop.eup %1959 }
 0x29a   :  { %1963 = vrcp.f32 %v949_v27  ;;  %v950_v44 = vadd.f32 1.0, %v1960_v26 }
 0x29c   :  { %1965 = vrcp.f32 %v950_v44 }
 0x2a3   :  { %v1962_v30 = vpop.eup %1961 }
 0x2a4   :  { %v959_v8 = vmul.f32 %v1962_v30, %v1958_v29  ;;  %v1964_v23 = vpop.eup %1963 }
 0x2a5   :  { %v958_v11 = vmul.f32 %v1964_v23, %v2670_v12 }
 0x2a6   :  { %v1966_v7 = vpop.eup %1965 }
 0x2a7   :  { %v2712_v31 = vadd.f32 %v959_v8, %v958_v11 }
 0x2a9   :  { %1967 = vtanh.f32 %v2712_v31 }
 0x2b3   :  { %v1968_v9 = vpop.eup %1967 }
 0x2b4   :  { %v962_v13 = vmul.f32 %v1968_v9, %v1966_v7 }
 0x2b6   :  { %964 = vst [vmem:[#allocation16 + $0x8] sm:$0xff] %v962_v13  ;;  %v970_v24 = vpack.c.bf16 %v962_v13, %v962_v13 }
 0x2b8   :  { %1004 = vmatmul.mubr.bf16.vlgmr.msra.gmra.mrb[24].mxu0 %v970_v24  ;;  %1045 = vmatmul.mubr.bf16.vlgmr.msra.gmra.mrb[24].mxu1 %v970_v24 }
 0x2b9   :  { %1090 = vmatpush1.bf16.msra.mxu0 %v2452_v36  ;;  %1131 = vmatpush1.bf16.msra.mxu1 %v2454_v37 }
 0x2ba   :  { %1091 = vmatprep.subr.bf16.mxu0 %v2458_v38  ;;  %1132 = vmatprep.subr.bf16.mxu1 %v2460_v39 }
 0x2bb   :  { %1121 = vmatprep.mubr.bf16.mxu0 %v3046_v14  ;;  %1162 = vmatprep.mubr.bf16.mxu1 %v3046_v14 }
 0x2bd   :  { %1092 = vmatpush1.bf16.msra.mxu0 %v2462_v40  ;;  %1133 = vmatpush1.bf16.msra.mxu1 %v2466_v41 }
 0x2be   :  { %1093 = vmatprep.subr.bf16.mxu0 %v2470_v42  ;;  %1134 = vmatprep.subr.bf16.mxu1 %v2472_v43 }
 0x2c1   :  { %1094 = vmatpush1.bf16.msra.mxu0 %v2476_v45  ;;  %1135 = vmatpush1.bf16.msra.mxu1 %v2478_v46 }
 0x2c2   :  { %1095 = vmatprep.subr.bf16.mxu0 %v2482_v47  ;;  %1136 = vmatprep.subr.bf16.mxu1 %v2486_v48 }
 0x2c5   :  { %1096 = vmatpush1.bf16.msra.mxu0 %v2488_v49  ;;  %1137 = vmatpush1.bf16.msra.mxu1 %v2490_v50 }
 0x2c6   :  { %1097 = vmatprep.subr.bf16.mxu0 %v2494_v51  ;;  %1138 = vmatprep.subr.bf16.mxu1 %v2498_v52 }
 0x2c9   :  { %1098 = vmatpush1.bf16.msra.mxu0 %v2504_v54  ;;  %1139 = vmatpush1.bf16.msra.mxu1 %v2506_v55 }
 0x2ca   :  { %1099 = vmatprep.subr.bf16.mxu0 %v2510_v56  ;;  %1140 = vmatprep.subr.bf16.mxu1 %v2512_v57 }
 0x2cd   :  { %1100 = vmatpush1.bf16.msra.mxu0 %v2516_v58  ;;  %1141 = vmatpush1.bf16.msra.mxu1 %v2518_v59 }
 0x2ce   :  { %1101 = vmatprep.subr.bf16.mxu0 %v2522_v60  ;;  %1142 = vmatprep.subr.bf16.mxu1 %v2524_v61 }
 0x2d1   :  { %1102 = vmatpush1.bf16.msra.mxu0 %v2530_v63  ;;  %1143 = vmatpush1.bf16.msra.mxu1 %v2532_v1 }
 0x2d2   :  { %1103 = vmatprep.subr.bf16.mxu0 %v2536_v2  ;;  %1144 = vmatprep.subr.bf16.mxu1 %v2538_v3 }
 0x2d5   :  { %1104 = vmatpush1.bf16.msra.mxu0 %v2542_v4  ;;  %1145 = vmatpush1.bf16.msra.mxu1 %v2544_v5 }
 0x2d6   :  { %1207 = vmatprep.subr.bf16.mxu0 %v2448_v33  ;;  %1248 = vmatprep.subr.bf16.mxu1 %v2450_v34 }
 0x38b   :  { %v1005_v12 = vpop.f32.mrb[24].mxu0  ;;  %v1046_v32 = vpop.f32.mrb[24].mxu1 }
 0x38c   :  { %v1053_v16 = vadd.f32 %v1005_v12, %v2606_v35  ;;  %v1055_v15 = vadd.f32 %v1046_v32, %v2609_v53  ;;  %v1007_v17 = vpop.f32.mrb[25].mxu0  ;;  %v1048_v19 = vpop.f32.mrb[25].mxu1 }
 0x38d   :  { %v1054_v18 = vadd.f32 %v1007_v17, %v2611_v6  ;;  %v1056_v20 = vadd.f32 %v1048_v19, %v3047_v0  ;;  %v1009_v21 = vpop.f32.mrb[26].mxu0  ;;  %v1050_v22 = vpop.f32.mrb[26].mxu1  ;;  %v3049_v19 = vld [vmem:[#allocation28_spill] sm:$0xff] }
 0x38e   :  { %v1803_v28 = vmul.f32 -1.442695, %v1053_v16  ;;  %v1010_v10 = vpop.f32.mrb[27].mxu0  ;;  %v1051_v62 = vpop.f32.mrb[27].mxu1  ;;  %v1805_v27 = vmul.f32 -1.442695, %v1055_v15 }
 0x38f   :  { %v1804_v25 = vmul.f32 -1.442695, %v1054_v18  ;;  %v3048_v15 = vld [vmem:[#allocation27_spill] sm:$0xff]  ;;  %v3050_v21 = vld [vmem:[#allocation29_spill] sm:$0xff] }
 0x390   :  { %1969 = vpow2.f32 %v1803_v28  ;;  %v3051_v28 = vld [vmem:[#allocation30_spill] sm:$0xff] }
 0x391   :  { %1971 = vpow2.f32 %v1804_v25 }
 0x392   :  { %1973 = vtanh.f32 %v1056_v20 }
 0x393   :  { %1975 = vpow2.f32 %v1805_v27 }
 0x39a   :  { %v1970_v29 = vpop.eup %1969 }
 0x39b   :  { %v1066_v26 = vadd.f32 1.0, %v1970_v29  ;;  %v1972_v35 = vpop.eup %1971 }
 0x39c   :  { %v1067_v53 = vadd.f32 1.0, %v1972_v35  ;;  %v1974_v6 = vpop.eup %1973 }
 0x39d   :  { %1977 = vrcp.f32 %v1066_v26  ;;  %v1976_v30 = vpop.eup %1975 }
 0x39e   :  { %1979 = vrcp.f32 %v1067_v53  ;;  %v1068_v11 = vadd.f32 1.0, %v1976_v30 }
 0x3a0   :  { %1981 = vrcp.f32 %v1068_v11 }
 0x3a7   :  { %v1978_v8 = vpop.eup %1977 }
 0x3a8   :  { %v1077_v23 = vmul.f32 %v1978_v8, %v1974_v6  ;;  %v1980_v44 = vpop.eup %1979 }
 0x3a9   :  { %v1076_v7 = vmul.f32 %v1980_v44, %v2712_v31 }
 0x3aa   :  { %v1982_v13 = vpop.eup %1981 }
 0x3ab   :  { %v2754_v9 = vadd.f32 %v1077_v23, %v1076_v7 }
 0x3ad   :  { %1983 = vtanh.f32 %v2754_v9 }
 0x3b7   :  { %v1984_v24 = vpop.eup %1983 }
 0x3b8   :  { %v1080_v12 = vmul.f32 %v1984_v24, %v1982_v13 }
 0x3ba   :  { %1082 = vst [vmem:[#allocation16 + $0x10] sm:$0xff] %v1080_v12  ;;  %v1088_v32 = vpack.c.bf16 %v1080_v12, %v1080_v12 }
 0x3bc   :  { %1122 = vmatmul.mubr.bf16.vlgmr.msra.gmra.mrb[28].mxu0 %v1088_v32  ;;  %1163 = vmatmul.mubr.bf16.vlgmr.msra.gmra.mrb[28].mxu1 %v1088_v32 }
 0x3bd   :  { %1208 = vmatpush1.bf16.msra.mxu0 %v2452_v36  ;;  %1249 = vmatpush1.bf16.msra.mxu1 %v2454_v37 }
 0x3be   :  { %1209 = vmatprep.subr.bf16.mxu0 %v2458_v38  ;;  %1250 = vmatprep.subr.bf16.mxu1 %v2460_v39 }
 0x3bf   :  { %1239 = vmatprep.mubr.bf16.mxu0 %v3046_v14  ;;  %1280 = vmatprep.mubr.bf16.mxu1 %v3046_v14 }
 0x3c1   :  { %1210 = vmatpush1.bf16.msra.mxu0 %v2462_v40  ;;  %1251 = vmatpush1.bf16.msra.mxu1 %v2466_v41 }
 0x3c2   :  { %1211 = vmatprep.subr.bf16.mxu0 %v2470_v42  ;;  %1252 = vmatprep.subr.bf16.mxu1 %v2472_v43 }
 0x3c5   :  { %1212 = vmatpush1.bf16.msra.mxu0 %v2476_v45  ;;  %1253 = vmatpush1.bf16.msra.mxu1 %v2478_v46 }
 0x3c6   :  { %1213 = vmatprep.subr.bf16.mxu0 %v2482_v47  ;;  %1254 = vmatprep.subr.bf16.mxu1 %v2486_v48 }
 0x3c9   :  { %1214 = vmatpush1.bf16.msra.mxu0 %v2488_v49  ;;  %1255 = vmatpush1.bf16.msra.mxu1 %v2490_v50 }
 0x3ca   :  { %1215 = vmatprep.subr.bf16.mxu0 %v2494_v51  ;;  %1256 = vmatprep.subr.bf16.mxu1 %v2498_v52 }
 0x3cd   :  { %1216 = vmatpush1.bf16.msra.mxu0 %v2504_v54  ;;  %1257 = vmatpush1.bf16.msra.mxu1 %v2506_v55 }
 0x3ce   :  { %1217 = vmatprep.subr.bf16.mxu0 %v2510_v56  ;;  %1258 = vmatprep.subr.bf16.mxu1 %v2512_v57 }
 0x3d1   :  { %1218 = vmatpush1.bf16.msra.mxu0 %v2516_v58  ;;  %1259 = vmatpush1.bf16.msra.mxu1 %v2518_v59 }
 0x3d2   :  { %1219 = vmatprep.subr.bf16.mxu0 %v2522_v60  ;;  %1260 = vmatprep.subr.bf16.mxu1 %v2524_v61 }
 0x3d5   :  { %1220 = vmatpush1.bf16.msra.mxu0 %v2530_v63  ;;  %1261 = vmatpush1.bf16.msra.mxu1 %v2532_v1 }
 0x3d6   :  { %1221 = vmatprep.subr.bf16.mxu0 %v2536_v2  ;;  %1262 = vmatprep.subr.bf16.mxu1 %v2538_v3 }
 0x3d9   :  { %1222 = vmatpush1.bf16.msra.mxu0 %v2542_v4  ;;  %1263 = vmatpush1.bf16.msra.mxu1 %v2544_v5 }
 0x3da   :  { %1325 = vmatprep.subr.bf16.mxu0 %v2448_v33  ;;  %1366 = vmatprep.subr.bf16.mxu1 %v2450_v34 }
 0x48f   :  { %v1123_v31 = vpop.f32.mrb[28].mxu0  ;;  %v1164_v16 = vpop.f32.mrb[28].mxu1 }
 0x490   :  { %v1171_v17 = vadd.f32 %v1123_v31, %v3048_v15  ;;  %v1173_v18 = vadd.f32 %v1164_v16, %v3049_v19  ;;  %v1125_v0 = vpop.f32.mrb[29].mxu0  ;;  %v1166_v20 = vpop.f32.mrb[29].mxu1 }
 0x491   :  { %v1172_v22 = vadd.f32 %v1125_v0, %v3050_v21  ;;  %v1174_v10 = vadd.f32 %v1166_v20, %v3051_v28  ;;  %v1127_v62 = vpop.f32.mrb[30].mxu0  ;;  %v1168_v25 = vpop.f32.mrb[30].mxu1 }
 0x492   :  { %v1806_v27 = vmul.f32 -1.442695, %v1171_v17  ;;  %v1128_v29 = vpop.f32.mrb[31].mxu0  ;;  %v1169_v26 = vpop.f32.mrb[31].mxu1  ;;  %v1808_v34 = vmul.f32 -1.442695, %v1173_v18 }
 0x493   :  { %v1807_v33 = vmul.f32 -1.442695, %v1172_v22 }
 0x494   :  { %1985 = vpow2.f32 %v1806_v27 }
 0x495   :  { %1987 = vpow2.f32 %v1807_v33  ;;  %v2845_v33 = vld [vmem:[#allocation10] ss:$16 sps:$4 sm:$0xff]  }
 0x496   :  { %1989 = vtanh.f32 %v1174_v10 }
 0x497   :  { %1991 = vpow2.f32 %v1808_v34  ;;  %v2848_v34 = vld [vmem:[#allocation10 + $0x8] ss:$16 sps:$4 sm:$0xff]  }
 0x49e   :  { %v1986_v35 = vpop.eup %1985 }
 0x49f   :  { %v1184_v53 = vadd.f32 1.0, %v1986_v35  ;;  %v1988_v6 = vpop.eup %1987  ;;  %v2851_v35 = vld [vmem:[#allocation10 + $0x24] ss:$16 sps:$4 sm:$0xff]  }
 0x4a0   :  { %v1185_v30 = vadd.f32 1.0, %v1988_v6  ;;  %v1990_v8 = vpop.eup %1989  ;;  %v2859_v6 = vld [vmem:[#allocation10 + $0x20] ss:$16 sps:$4 sm:$0xff]  }
 0x4a1   :  { %1993 = vrcp.f32 %v1184_v53  ;;  %v1992_v23 = vpop.eup %1991  ;;  %v2854_v53 = vld [vmem:[#allocation10 + $0x2c] ss:$16 sps:$4 sm:$0xff]  }
 0x4a2   :  { %1995 = vrcp.f32 %v1185_v30  ;;  %v1186_v13 = vadd.f32 1.0, %v1992_v23  ;;  %v2862_v30 = vld [vmem:[#allocation10 + $0x28] ss:$16 sps:$4 sm:$0xff]   ;;  %v2868_v23 = vld [vmem:[#allocation10 + $0x4c] ss:$16 sps:$4 sm:$0xff]  }
 0x4a4   :  { %1997 = vrcp.f32 %v1186_v13  ;;  %v2880_v13 = vld [vmem:[#allocation10 + $0x6c] ss:$16 sps:$4 sm:$0xff]  }
 0x4ab   :  { %v1994_v44 = vpop.eup %1993 }
 0x4ac   :  { %v1195_v11 = vmul.f32 %v1994_v44, %v1990_v8  ;;  %v1996_v7 = vpop.eup %1995  ;;  %v2865_v8 = vld [vmem:[#allocation10 + $0x44] ss:$16 sps:$4 sm:$0xff]   ;;  %v2871_v44 = vld [vmem:[#allocation10 + $0x40] ss:$16 sps:$4 sm:$0xff]  }
 0x4ad   :  { %v1194_v24 = vmul.f32 %v1996_v7, %v2754_v9  ;;  %v2877_v7 = vld [vmem:[#allocation10 + $0x64] ss:$16 sps:$4 sm:$0xff]  }
 0x4ae   :  { %v1998_v32 = vpop.eup %1997 }
 0x4af   :  { %v2796_v12 = vadd.f32 %v1195_v11, %v1194_v24  ;;  %v2874_v11 = vld [vmem:[#allocation10 + $0x48] ss:$16 sps:$4 sm:$0xff]   ;;  %v2883_v24 = vld [vmem:[#allocation10 + $0x60] ss:$16 sps:$4 sm:$0xff]  }
 0x4b1   :  { %1999 = vtanh.f32 %v2796_v12 }
 0x4bb   :  { %v2000_v31 = vpop.eup %1999 }
 0x4bc   :  { %v1198_v16 = vmul.f32 %v2000_v31, %v1998_v32  ;;  %v2889_v32 = vld [vmem:[#allocation10 + $0x84] ss:$16 sps:$4 sm:$0xff]   ;;  %v2892_v31 = vld [vmem:[#allocation10 + $0x8c] ss:$16 sps:$4 sm:$0xff]  }
 0x4be   :  { %1200 = vst [vmem:[#allocation16 + $0x18] sm:$0xff] %v1198_v16  ;;  %v1206_v15 = vpack.c.bf16 %v1198_v16, %v1198_v16  ;;  %v2895_v16 = vld [vmem:[#allocation10 + $0x80] ss:$16 sps:$4 sm:$0xff]  }
 0x4c0   :  { %1240 = vmatmul.mubr.bf16.vlgmr.msra.gmra.mrb[32].mxu0 %v1206_v15  ;;  %1281 = vmatmul.mubr.bf16.vlgmr.msra.gmra.mrb[32].mxu1 %v1206_v15  ;;  %v2898_v15 = vld [vmem:[#allocation10 + $0x88] ss:$16 sps:$4 sm:$0xff]  }
 0x4c1   :  { %1326 = vmatpush1.bf16.msra.mxu0 %v2452_v36  ;;  %1367 = vmatpush1.bf16.msra.mxu1 %v2454_v37  ;;  %v2831_v36 = vld [vmem:[#allocation10 + $0x4] ss:$16 sps:$4 sm:$0xff]   ;;  %v2834_v37 = vld [vmem:[#allocation10 + $0xc] ss:$16 sps:$4 sm:$0xff]  }
 0x4c2   :  { %1327 = vmatprep.subr.bf16.mxu0 %v2458_v38  ;;  %1368 = vmatprep.subr.bf16.mxu1 %v2460_v39 }
 0x4c3   :  { %1357 = vmatprep.mubr.bf16.mxu0 %v3046_v14  ;;  %1398 = vmatprep.mubr.bf16.mxu1 %v3046_v14 }
 0x4c5   :  { %1328 = vmatpush1.bf16.msra.mxu0 %v2462_v40  ;;  %1369 = vmatpush1.bf16.msra.mxu1 %v2466_v41  ;;  %v3052_v40 = vld [vmem:[#allocation31_spill] sm:$0xff] }
 0x4c6   :  { %1329 = vmatprep.subr.bf16.mxu0 %v2470_v42  ;;  %1370 = vmatprep.subr.bf16.mxu1 %v2472_v43  ;;  %v3053_v42 = vld [vmem:[#allocation32_spill] sm:$0xff] }
 0x4c9   :  { %1330 = vmatpush1.bf16.msra.mxu0 %v2476_v45  ;;  %1371 = vmatpush1.bf16.msra.mxu1 %v2478_v46 }
 0x4ca   :  { %1331 = vmatprep.subr.bf16.mxu0 %v2482_v47  ;;  %1372 = vmatprep.subr.bf16.mxu1 %v2486_v48  ;;  %v3054_v47 = vld [vmem:[#allocation33_spill] sm:$0xff] }
 0x4cd   :  { %1332 = vmatpush1.bf16.msra.mxu0 %v2488_v49  ;;  %1373 = vmatpush1.bf16.msra.mxu1 %v2490_v50  ;;  %v3055_v49 = vld [vmem:[#allocation34_spill] sm:$0xff] }
 0x4ce   :  { %1333 = vmatprep.subr.bf16.mxu0 %v2494_v51  ;;  %1374 = vmatprep.subr.bf16.mxu1 %v2498_v52 }
 0x4d1   :  { %1334 = vmatpush1.bf16.msra.mxu0 %v2504_v54  ;;  %1375 = vmatpush1.bf16.msra.mxu1 %v2506_v55 }
 0x4d2   :  { %1335 = vmatprep.subr.bf16.mxu0 %v2510_v56  ;;  %1376 = vmatprep.subr.bf16.mxu1 %v2512_v57 }
 0x4d5   :  { %1336 = vmatpush1.bf16.msra.mxu0 %v2516_v58  ;;  %1377 = vmatpush1.bf16.msra.mxu1 %v2518_v59 }
 0x4d6   :  { %1337 = vmatprep.subr.bf16.mxu0 %v2522_v60  ;;  %1378 = vmatprep.subr.bf16.mxu1 %v2524_v61 }
 0x4d9   :  { %1338 = vmatpush1.bf16.msra.mxu0 %v2530_v63  ;;  %1379 = vmatpush1.bf16.msra.mxu1 %v2532_v1 }
 0x4da   :  { %1339 = vmatprep.subr.bf16.mxu0 %v2536_v2  ;;  %1380 = vmatprep.subr.bf16.mxu1 %v2538_v3 }
 0x4dd   :  { %1340 = vmatpush1.bf16.msra.mxu0 %v2542_v4  ;;  %1381 = vmatpush1.bf16.msra.mxu1 %v2544_v5 }
 0x4de   :  { %1443 = vmatprep.subr.bf16.mxu0 %v2831_v36  ;;  %1484 = vmatprep.subr.bf16.mxu1 %v2834_v37 }
 0x593   :  { %v1241_v38 = vpop.f32.mrb[32].mxu0  ;;  %v1282_v39 = vpop.f32.mrb[32].mxu1 }
 0x594   :  { %v1289_v41 = vadd.f32 %v1241_v38, %v3052_v40  ;;  %v1291_v43 = vadd.f32 %v1282_v39, %v3053_v42  ;;  %v1243_v45 = vpop.f32.mrb[33].mxu0  ;;  %v1284_v46 = vpop.f32.mrb[33].mxu1  ;;  %v2901_v38 = vld [vmem:[#allocation10 + $0xa4] ss:$16 sps:$4 sm:$0xff]   ;;  %v2904_v39 = vld [vmem:[#allocation10 + $0xac] ss:$16 sps:$4 sm:$0xff]  }
 0x595   :  { %v1290_v48 = vadd.f32 %v1243_v45, %v3054_v47  ;;  %v1292_v50 = vadd.f32 %v1284_v46, %v3055_v49  ;;  %v1245_v51 = vpop.f32.mrb[34].mxu0  ;;  %v1286_v52 = vpop.f32.mrb[34].mxu1  ;;  %v2907_v40 = vld [vmem:[#allocation10 + $0xa0] ss:$16 sps:$4 sm:$0xff]   ;;  %v3057_v45 = vld [vmem:[#allocation36_spill] sm:$0xff] }
 0x596   :  { %v1809_v54 = vmul.f32 -1.442695, %v1289_v41  ;;  %v1246_v55 = vpop.f32.mrb[35].mxu0  ;;  %v1287_v56 = vpop.f32.mrb[35].mxu1  ;;  %v1811_v58 = vmul.f32 -1.442695, %v1291_v43 }
 0x597   :  { %v1810_v57 = vmul.f32 -1.442695, %v1290_v48  ;;  %v2910_v41 = vld [vmem:[#allocation10 + $0xa8] ss:$16 sps:$4 sm:$0xff]   ;;  %v3056_v43 = vld [vmem:[#allocation35_spill] sm:$0xff]  ;;  %v3058_v47 = vld [vmem:[#allocation37_spill] sm:$0xff] }
 0x598   :  { %2001 = vpow2.f32 %v1809_v54  ;;  %v3059_v48 = vld [vmem:[#allocation38_spill] sm:$0xff] }
 0x599   :  { %2003 = vpow2.f32 %v1810_v57 }
 0x59a   :  { %2005 = vtanh.f32 %v1292_v50 }
 0x59b   :  { %2007 = vpow2.f32 %v1811_v58 }
 0x5a2   :  { %v2002_v59 = vpop.eup %2001 }
 0x5a3   :  { %v1302_v9 = vadd.f32 1.0, %v2002_v59  ;;  %v2004_v17 = vpop.eup %2003 }
 0x5a4   :  { %v1303_v19 = vadd.f32 1.0, %v2004_v17  ;;  %v2006_v18 = vpop.eup %2005 }
 0x5a5   :  { %2009 = vrcp.f32 %v1302_v9  ;;  %v2008_v0 = vpop.eup %2007 }
 0x5a6   :  { %2011 = vrcp.f32 %v1303_v19  ;;  %v1304_v28 = vadd.f32 1.0, %v2008_v0 }
 0x5a8   :  { %2013 = vrcp.f32 %v1304_v28 }
 0x5af   :  { %v2010_v20 = vpop.eup %2009 }
 0x5b0   :  { %v1313_v21 = vmul.f32 %v2010_v20, %v2006_v18  ;;  %v2012_v22 = vpop.eup %2011 }
 0x5b1   :  { %v1312_v10 = vmul.f32 %v2012_v22, %v2796_v12  ;;  %v2886_v12 = vld [vmem:[#allocation10 + $0x68] ss:$16 sps:$4 sm:$0xff]  }
 0x5b2   :  { %v2014_v25 = vpop.eup %2013 }
 0x5b3   :  { %v2842_v62 = vadd.f32 %v1313_v21, %v1312_v10  ;;  %v2090_v10 = vld [vmem:[#allocation10 + $0xcc] ss:$16 sps:$4 sm:$0xff]  }
 0x5b5   :  { %2015 = vtanh.f32 %v2842_v62 }
 0x5bf   :  { %v2016_v27 = vpop.eup %2015 }
 0x5c0   :  { %v1316_v29 = vmul.f32 %v2016_v27, %v2014_v25  ;;  %v2092_v25 = vld [vmem:[#allocation10 + $0xc8] ss:$16 sps:$4 sm:$0xff]   ;;  %v2093_v27 = vld [vmem:[#allocation10 + $0xe4] ss:$16 sps:$4 sm:$0xff]  }
 0x5c2   :  { %1318 = vst [vmem:[#allocation16 + $0x20] sm:$0xff] %v1316_v29  ;;  %v1324_v26 = vpack.c.bf16 %v1316_v29, %v1316_v29  ;;  %v2094_v29 = vld [vmem:[#allocation10 + $0xec] ss:$16 sps:$4 sm:$0xff]  }
 0x5c4   :  { %1358 = vmatmul.mubr.bf16.vlgmr.msra.gmra.mrb[36].mxu0 %v1324_v26  ;;  %1399 = vmatmul.mubr.bf16.vlgmr.msra.gmra.mrb[36].mxu1 %v1324_v26  ;;  %v2095_v26 = vld [vmem:[#allocation10 + $0xe0] ss:$16 sps:$4 sm:$0xff]  }
 0x5c5   :  { %1444 = vmatpush1.bf16.msra.mxu0 %v2845_v33  ;;  %1485 = vmatpush1.bf16.msra.mxu1 %v2848_v34 }
 0x5c6   :  { %1445 = vmatprep.subr.bf16.mxu0 %v2851_v35  ;;  %1486 = vmatprep.subr.bf16.mxu1 %v2854_v53 }
 0x5c7   :  { %1475 = vmatprep.mubr.bf16.mxu0 %v3046_v14  ;;  %1516 = vmatprep.mubr.bf16.mxu1 %v3046_v14 }
 0x5c9   :  { %1446 = vmatpush1.bf16.msra.mxu0 %v2859_v6  ;;  %1487 = vmatpush1.bf16.msra.mxu1 %v2862_v30 }
 0x5ca   :  { %1447 = vmatprep.subr.bf16.mxu0 %v2865_v8  ;;  %1488 = vmatprep.subr.bf16.mxu1 %v2868_v23 }
 0x5cd   :  { %1448 = vmatpush1.bf16.msra.mxu0 %v2871_v44  ;;  %1489 = vmatpush1.bf16.msra.mxu1 %v2874_v11 }
 0x5ce   :  { %1449 = vmatprep.subr.bf16.mxu0 %v2877_v7  ;;  %1490 = vmatprep.subr.bf16.mxu1 %v2880_v13 }
 0x5d1   :  { %1450 = vmatpush1.bf16.msra.mxu0 %v2883_v24  ;;  %1491 = vmatpush1.bf16.msra.mxu1 %v2886_v12 }
 0x5d2   :  { %1451 = vmatprep.subr.bf16.mxu0 %v2889_v32  ;;  %1492 = vmatprep.subr.bf16.mxu1 %v2892_v31 }
 0x5d5   :  { %1452 = vmatpush1.bf16.msra.mxu0 %v2895_v16  ;;  %1493 = vmatpush1.bf16.msra.mxu1 %v2898_v15 }
 0x5d6   :  { %1453 = vmatprep.subr.bf16.mxu0 %v2901_v38  ;;  %1494 = vmatprep.subr.bf16.mxu1 %v2904_v39 }
 0x5d9   :  { %1454 = vmatpush1.bf16.msra.mxu0 %v2907_v40  ;;  %1495 = vmatpush1.bf16.msra.mxu1 %v2910_v41 }
 0x5da   :  { %1455 = vmatprep.subr.bf16.mxu0 %v2522_v60  ;;  %1496 = vmatprep.subr.bf16.mxu1 %v2524_v61 }
 0x5dd   :  { %1456 = vmatpush1.bf16.msra.mxu0 %v2530_v63  ;;  %1497 = vmatpush1.bf16.msra.mxu1 %v2532_v1 }
 0x5de   :  { %1457 = vmatprep.subr.bf16.mxu0 %v2536_v2  ;;  %1498 = vmatprep.subr.bf16.mxu1 %v2538_v3 }
 0x5e1   :  { %1458 = vmatpush1.bf16.msra.mxu0 %v2542_v4  ;;  %1499 = vmatpush1.bf16.msra.mxu1 %v2544_v5 }
 0x5e2   :  { %1561 = vmatprep.subr.bf16.mxu0 %v2831_v36  ;;  %1602 = vmatprep.subr.bf16.mxu1 %v2834_v37 }
 0x697   :  { %v1359_v42 = vpop.f32.mrb[36].mxu0  ;;  %v1400_v60 = vpop.f32.mrb[36].mxu1 }
 0x698   :  { %v1407_v61 = vadd.f32 %v1359_v42, %v3056_v43  ;;  %v1409_v63 = vadd.f32 %v1400_v60, %v3057_v45  ;;  %v1361_v46 = vpop.f32.mrb[37].mxu0  ;;  %v1402_v1 = vpop.f32.mrb[37].mxu1 }
 0x699   :  { %v1408_v2 = vadd.f32 %v1361_v46, %v3058_v47  ;;  %v1410_v3 = vadd.f32 %v1402_v1, %v3059_v48  ;;  %v1363_v49 = vpop.f32.mrb[38].mxu0  ;;  %v1404_v4 = vpop.f32.mrb[38].mxu1 }
 0x69a   :  { %v1812_v50 = vmul.f32 -1.442695, %v1407_v61  ;;  %v1364_v5 = vpop.f32.mrb[39].mxu0  ;;  %v1405_v51 = vpop.f32.mrb[39].mxu1  ;;  %v1814_v37 = vmul.f32 -1.442695, %v1409_v63 }
 0x69b   :  { %v1813_v36 = vmul.f32 -1.442695, %v1408_v2  ;;  %v3064_v51 = vld [vmem:[#allocation43_spill] sm:$0xff] }
 0x69c   :  { %2017 = vpow2.f32 %v1812_v50 }
 0x69d   :  { %2019 = vpow2.f32 %v1813_v36 }
 0x69e   :  { %2021 = vtanh.f32 %v1410_v3 }
 0x69f   :  { %2023 = vpow2.f32 %v1814_v37  ;;  %v3065_v37 = vld [vmem:[#allocation44_spill] sm:$0xff] }
 0x6a6   :  { %v2018_v52 = vpop.eup %2017 }
 0x6a7   :  { %v1420_v54 = vadd.f32 1.0, %v2018_v52  ;;  %v2020_v55 = vpop.eup %2019 }
 0x6a8   :  { %v1421_v56 = vadd.f32 1.0, %v2020_v55  ;;  %v2022_v57 = vpop.eup %2021 }
 0x6a9   :  { %2025 = vrcp.f32 %v1420_v54  ;;  %v2024_v58 = vpop.eup %2023 }
 0x6aa   :  { %2027 = vrcp.f32 %v1421_v56  ;;  %v1422_v19 = vadd.f32 1.0, %v2024_v58  ;;  %v3066_v56 = vld [vmem:[#allocation45_spill] sm:$0xff]  ;;  %v3067_v58 = vld [vmem:[#allocation46_spill] sm:$0xff] }
 0x6ac   :  { %2029 = vrcp.f32 %v1422_v19 }
 0x6b3   :  { %v2026_v59 = vpop.eup %2025 }
 0x6b4   :  { %v1431_v9 = vmul.f32 %v2026_v59, %v2022_v57  ;;  %v2028_v17 = vpop.eup %2027 }
 0x6b5   :  { %v1430_v18 = vmul.f32 %v2028_v17, %v2842_v62  ;;  %v2091_v62 = vld [vmem:[#allocation10 + $0xc0] ss:$16 sps:$4 sm:$0xff]  }
 0x6b6   :  { %v2030_v20 = vpop.eup %2029 }
 0x6b7   :  { %v2928_v0 = vadd.f32 %v1431_v9, %v1430_v18 }
 0x6b9   :  { %2031 = vtanh.f32 %v2928_v0 }
 0x6c3   :  { %v2032_v21 = vpop.eup %2031 }
 0x6c4   :  { %v1434_v22 = vmul.f32 %v2032_v21, %v2030_v20 }
 0x6c6   :  { %1436 = vst [vmem:[#allocation16 + $0x28] sm:$0xff] %v1434_v22  ;;  %v1442_v28 = vpack.c.bf16 %v1434_v22, %v1434_v22 }
 0x6c8   :  { %1476 = vmatmul.mubr.bf16.vlgmr.msra.gmra.mrb[40].mxu0 %v1442_v28  ;;  %1517 = vmatmul.mubr.bf16.vlgmr.msra.gmra.mrb[40].mxu1 %v1442_v28 }
 0x6c9   :  { %1562 = vmatpush1.bf16.msra.mxu0 %v2845_v33  ;;  %1603 = vmatpush1.bf16.msra.mxu1 %v2848_v34  ;;  %v2096_v33 = vld [vmem:[#allocation10 + $0xe8] ss:$16 sps:$4 sm:$0xff]  }
 0x6ca   :  { %1563 = vmatprep.subr.bf16.mxu0 %v2851_v35  ;;  %1604 = vmatprep.subr.bf16.mxu1 %v2854_v53  ;;  %v3060_v53 = vld [vmem:[#allocation39_spill] sm:$0xff] }
 0x6cb   :  { %1593 = vmatprep.mubr.bf16.mxu0 %v3046_v14  ;;  %1634 = vmatprep.mubr.bf16.mxu1 %v3046_v14  ;;  %v2089_v14 = vld [vmem:[#allocation10 + $0xc4] ss:$16 sps:$4 sm:$0xff]  }
 0x6cd   :  { %1564 = vmatpush1.bf16.msra.mxu0 %v2859_v6  ;;  %1605 = vmatpush1.bf16.msra.mxu1 %v2862_v30  ;;  %v3061_v30 = vld [vmem:[#allocation40_spill] sm:$0xff] }
 0x6ce   :  { %1565 = vmatprep.subr.bf16.mxu0 %v2865_v8  ;;  %1606 = vmatprep.subr.bf16.mxu1 %v2868_v23 }
 0x6d1   :  { %1566 = vmatpush1.bf16.msra.mxu0 %v2871_v44  ;;  %1607 = vmatpush1.bf16.msra.mxu1 %v2874_v11  ;;  %v3062_v11 = vld [vmem:[#allocation41_spill] sm:$0xff] }
 0x6d2   :  { %1567 = vmatprep.subr.bf16.mxu0 %v2877_v7  ;;  %1608 = vmatprep.subr.bf16.mxu1 %v2880_v13  ;;  %v3063_v13 = vld [vmem:[#allocation42_spill] sm:$0xff] }
 0x6d5   :  { %1568 = vmatpush1.bf16.msra.mxu0 %v2883_v24  ;;  %1609 = vmatpush1.bf16.msra.mxu1 %v2886_v12 }
 0x6d6   :  { %1569 = vmatprep.subr.bf16.mxu0 %v2889_v32  ;;  %1610 = vmatprep.subr.bf16.mxu1 %v2892_v31 }
 0x6d9   :  { %1570 = vmatpush1.bf16.msra.mxu0 %v2895_v16  ;;  %1611 = vmatpush1.bf16.msra.mxu1 %v2898_v15 }
 0x6da   :  { %1571 = vmatprep.subr.bf16.mxu0 %v2901_v38  ;;  %1612 = vmatprep.subr.bf16.mxu1 %v2904_v39 }
 0x6dd   :  { %1572 = vmatpush1.bf16.msra.mxu0 %v2907_v40  ;;  %1613 = vmatpush1.bf16.msra.mxu1 %v2910_v41 }
 0x6de   :  { %1573 = vmatprep.subr.bf16.mxu0 %v2089_v14  ;;  %1614 = vmatprep.subr.bf16.mxu1 %v2090_v10 }
 0x6e1   :  { %1574 = vmatpush1.bf16.msra.mxu0 %v2091_v62  ;;  %1615 = vmatpush1.bf16.msra.mxu1 %v2092_v25 }
 0x6e2   :  { %1575 = vmatprep.subr.bf16.mxu0 %v2093_v27  ;;  %1616 = vmatprep.subr.bf16.mxu1 %v2094_v29 }
 0x6e5   :  { %1576 = vmatpush1.bf16.msra.mxu0 %v2095_v26  ;;  %1617 = vmatpush1.bf16.msra.mxu1 %v2096_v33 }
 0x79b   :  { %v1477_v34 = vpop.f32.mrb[40].mxu0  ;;  %v1518_v35 = vpop.f32.mrb[40].mxu1 }
 0x79c   :  { %v1525_v6 = vadd.f32 %v1477_v34, %v3060_v53  ;;  %v1527_v8 = vadd.f32 %v1518_v35, %v3061_v30  ;;  %v1479_v23 = vpop.f32.mrb[41].mxu0  ;;  %v1520_v44 = vpop.f32.mrb[41].mxu1 }
 0x79d   :  { %v1526_v7 = vadd.f32 %v1479_v23, %v3062_v11  ;;  %v1528_v24 = vadd.f32 %v1520_v44, %v3063_v13  ;;  %v1481_v12 = vpop.f32.mrb[42].mxu0  ;;  %v1522_v32 = vpop.f32.mrb[42].mxu1 }
 0x79e   :  { %v1815_v31 = vmul.f32 -1.442695, %v1525_v6  ;;  %v1482_v16 = vpop.f32.mrb[43].mxu0  ;;  %v1523_v15 = vpop.f32.mrb[43].mxu1  ;;  %v1817_v39 = vmul.f32 -1.442695, %v1527_v8 }
 0x79f   :  { %v1816_v38 = vmul.f32 -1.442695, %v1526_v7 }
 0x7a0   :  { %2033 = vpow2.f32 %v1815_v31 }
 0x7a1   :  { %2035 = vpow2.f32 %v1816_v38 }
 0x7a2   :  { %2037 = vtanh.f32 %v1528_v24 }
 0x7a3   :  { %2039 = vpow2.f32 %v1817_v39 }
 0x7aa   :  { %v2034_v40 = vpop.eup %2033 }
 0x7ab   :  { %v1538_v41 = vadd.f32 1.0, %v2034_v40  ;;  %v2036_v42 = vpop.eup %2035 }
 0x7ac   :  { %v1539_v60 = vadd.f32 1.0, %v2036_v42  ;;  %v2038_v43 = vpop.eup %2037 }
 0x7ad   :  { %2041 = vrcp.f32 %v1538_v41  ;;  %v2040_v61 = vpop.eup %2039 }
 0x7ae   :  { %2043 = vrcp.f32 %v1539_v60  ;;  %v1540_v1 = vadd.f32 1.0, %v2040_v61 }
 0x7b0   :  { %2045 = vrcp.f32 %v1540_v1 }
 0x7b7   :  { %v2042_v45 = vpop.eup %2041 }
 0x7b8   :  { %v1549_v63 = vmul.f32 %v2042_v45, %v2038_v43  ;;  %v2044_v46 = vpop.eup %2043 }
 0x7b9   :  { %v1548_v47 = vmul.f32 %v2044_v46, %v2928_v0 }
 0x7ba   :  { %v2046_v48 = vpop.eup %2045 }
 0x7bb   :  { %v1550_v2 = vadd.f32 %v1549_v63, %v1548_v47 }
 0x7bd   :  { %2047 = vtanh.f32 %v1550_v2 }
 0x7c7   :  { %v2048_v3 = vpop.eup %2047 }
 0x7c8   :  { %v1552_v49 = vmul.f32 %v2048_v3, %v2046_v48 }
 0x7ca   :  { %1554 = vst [vmem:[#allocation16 + $0x30] sm:$0xff] %v1552_v49  ;;  %v1560_v4 = vpack.c.bf16 %v1552_v49, %v1552_v49 }
 0x7cc   :  { %1594 = vmatmul.mubr.bf16.vlgmr.msra.gmra.mrb[44].mxu0 %v1560_v4  ;;  %1635 = vmatmul.mubr.bf16.vlgmr.msra.gmra.mrb[44].mxu1 %v1560_v4 }
 0x89f   :  { %v1595_v50 = vpop.f32.mrb[44].mxu0  ;;  %v1636_v5 = vpop.f32.mrb[44].mxu1 }
 0x8a0   :  { %v1643_v36 = vadd.f32 %v1595_v50, %v3064_v51  ;;  %v1645_v52 = vadd.f32 %v1636_v5, %v3065_v37  ;;  %v1597_v54 = vpop.f32.mrb[45].mxu0  ;;  %v1638_v55 = vpop.f32.mrb[45].mxu1 }
 0x8a1   :  { %v1644_v57 = vadd.f32 %v1597_v54, %v3066_v56  ;;  %v1646_v59 = vadd.f32 %v1638_v55, %v3067_v58  ;;  %v1599_v9 = vpop.f32.mrb[46].mxu0  ;;  %v1640_v17 = vpop.f32.mrb[46].mxu1 }
 0x8a2   :  { %v1818_v19 = vmul.f32 -1.442695, %v1643_v36  ;;  %v1600_v18 = vpop.f32.mrb[47].mxu0  ;;  %v1641_v0 = vpop.f32.mrb[47].mxu1  ;;  %v1820_v21 = vmul.f32 -1.442695, %v1645_v52 }
 0x8a3   :  { %v1819_v20 = vmul.f32 -1.442695, %v1644_v57 }
 0x8a4   :  { %2049 = vpow2.f32 %v1818_v19 }
 0x8a5   :  { %2051 = vpow2.f32 %v1819_v20 }
 0x8a6   :  { %2053 = vtanh.f32 %v1646_v59 }
 0x8a7   :  { %2055 = vpow2.f32 %v1820_v21 }
 0x8ae   :  { %v2050_v22 = vpop.eup %2049 }
 0x8af   :  { %v1656_v28 = vadd.f32 1.0, %v2050_v22  ;;  %v2052_v14 = vpop.eup %2051 }
 0x8b0   :  { %v1657_v10 = vadd.f32 1.0, %v2052_v14  ;;  %v2054_v62 = vpop.eup %2053 }
 0x8b1   :  { %2057 = vrcp.f32 %v1656_v28  ;;  %v2056_v25 = vpop.eup %2055 }
 0x8b2   :  { %2059 = vrcp.f32 %v1657_v10  ;;  %v1658_v33 = vadd.f32 1.0, %v2056_v25 }
 0x8b4   :  { %2061 = vrcp.f32 %v1658_v33 }
 0x8bb   :  { %v2058_v27 = vpop.eup %2057 }
 0x8bc   :  { %v1667_v29 = vmul.f32 %v2058_v27, %v2054_v62  ;;  %v2060_v26 = vpop.eup %2059 }
 0x8bd   :  { %v1666_v34 = vmul.f32 %v2060_v26, %v1550_v2 }
 0x8be   :  { %v2062_v53 = vpop.eup %2061 }
 0x8bf   :  { %v1668_v35 = vadd.f32 %v1667_v29, %v1666_v34 }
 0x8c1   :  { %1681 = vst [vmem:[#allocation19] sm:$0xff] %v1668_v35  ;;  %2063 = vtanh.f32 %v1668_v35 }
 0x8cb   :  { %v2064_v6 = vpop.eup %2063 }
 0x8cc   :  { %v1670_v30 = vmul.f32 %v2064_v6, %v2062_v53 }
 0x8ce   :  { %1672 = vst [vmem:[#allocation16 + $0x38] sm:$0xff] %v1670_v30  ;;  %1679 = vst [vmem:[#allocation17] sm:$0xff] %v1670_v30 }
 0x8cf   :  { %2240 = shalt.err (!%p2237_p10)
}
 0x8d0   :  { %s2241_s18 = scalar_lea.hbm %s3021_s7, 128 }
 0x8d1   :  { %p2242_p11 = scmp.ne.s32.totalorder %s3021_s7, %s2241_s18  ;;  %p2245_p12 = scmp.lt.u32.totalorder %s2241_s18, %s3021_s7 }
 0x8d3   :  { %p2247_p13 = pnand %p2245_p12, %p2242_p11 }
 0x8d5   :  { %2250 = shalt.err (!%p2247_p13)
}
 0x8d6   :  { %1703 = dma.vmem_to_hbm [thread:$0]  %s1701_s10, 128, %s3021_s7, [#allocation18]  }
 0x8d7   :  { %s2251_s16 = scalar_lea.vmem %s2964_s0, 1024  ;;  %p2256_p1 = scmp.lt.s32.totalorder %s2964_s0, %s2964_s0 }
 0x8d8   :  { %p2252_p0 = scmp.ne.s32.totalorder %s2964_s0, %s2251_s16  ;;  %p2257_p2 = scmp.lt.s32.totalorder %s2251_s16, %s2251_s16 }
 0x8da   :  { %p2258_p3 = por %p2257_p2, %p2256_p1 }
 0x8dc   :  { %p2259_p4 = pnand %p2258_p3, %p2252_p0 }
 0x8de   :  { %2262 = shalt.err (!%p2259_p4)
}
 0x8df   :  { %s2263_s25 = scalar_lea.hbm %s3020_s6, 1024 }
 0x8e0   :  { %p2264_p5 = scmp.ne.s32.totalorder %s3020_s6, %s2263_s25  ;;  %p2267_p6 = scmp.lt.u32.totalorder %s2263_s25, %s3020_s6 }
 0x8e2   :  { %p2269_p7 = pnand %p2267_p6, %p2264_p5 }
 0x8e4   :  { %2272 = shalt.err (!%p2269_p7)
}
 0x8e5   :  { %s2321_s7 = smov 128   ;;  %s2322_s28 = smov 8  }
 0x8e6   :  { %1693 = dma.vmem_to_hbm [thread:$0]  %s2964_s0, 1024, %s3020_s6, [#allocation7], %s2321_s7, %s2321_s7, %s2322_s28  }
 0x8e7   :  { %s2273_s27 = scalar_lea.vmem %s2966_s12, 128  ;;  %p2278_p9 = scmp.lt.s32.totalorder %s2966_s12, %s2966_s12 }
 0x8e8   :  { %p2274_p8 = scmp.ne.s32.totalorder %s2966_s12, %s2273_s27  ;;  %p2279_p10 = scmp.lt.s32.totalorder %s2273_s27, %s2273_s27 }
 0x8ea   :  { %p2280_p11 = por %p2279_p10, %p2278_p9 }
 0x8ec   :  { %p2281_p12 = pnand %p2280_p11, %p2274_p8 }
 0x8ee   :  { %2284 = shalt.err (!%p2281_p12)
}
 0x8ef   :  { %s2285_s11 = scalar_lea.hbm %s3022_s8, 128 }
 0x8f0   :  { %p2286_p13 = scmp.ne.s32.totalorder %s3022_s8, %s2285_s11  ;;  %p2289_p0 = scmp.lt.u32.totalorder %s2285_s11, %s3022_s8 }
 0x8f2   :  { %p2291_p1 = pnand %p2289_p0, %p2286_p13 }
 0x8f4   :  { %2294 = shalt.err (!%p2291_p1)
}
 0x8f5   :  { %1713 = dma.vmem_to_hbm [thread:$0]  %s2966_s12, 128, %s3022_s8, [#allocation18]  }
 0x8f6   :  { %2303 = dma.done.wait [#allocation7], 1024  }
 0x8f7   :  { %2304 = vsyncadd [#allocation7], 4294966272 }
 0x8f8   :  { %2305 = dma.done.wait [#allocation18], 256  }
 0x8f9   :  { %2306 = vsyncadd [#allocation18], 4294967040 }
 0x8fa   :  { %1723 = vsyncpa [#allocation6], 1 }
 0x8fb   :  { %1724 = vsyncpa [#allocation9], 1 }
 0x8fc   :  { %1725 = vsyncpa [#allocation12], 1 }
 0x8fd   :  { %1726 = vsyncpa [#allocation15], 1 }
 0x8fe   :  { %1727 = vsyncpa [#allocation7], 1 }
 0x8ff   :  { %1728 = vsyncpa [#allocation18], 1 }

</bundles_post_ra>
